<compile_context>
chip_gen: v7x
topology: tpu7x:2x2x1
jax: 0.10.0
libtpu: 0.0.40
codegen_flags: <defaults>
</compile_context>

<pallas_src>
import jax
import jax.numpy as jnp
from jax.experimental import pallas as pl
from jax.experimental.pallas import tpu as pltpu

NDF = 64
KSIZE = 4
BN_EPS = 1e-5
LRELU_SLOPE = 0.2
VMEM_LIMIT = 32 << 20  # leaves headroom on v7x (64 MiB physical) and v5e/v6e


# ---------------------------------------------------------------------------
# tile-size helpers (operate on static Python ints)
# ---------------------------------------------------------------------------
def _choose_tm(m, target=256):
    """Largest M tile <= target that divides M (multiple of 8 when possible)."""
    if m <= target:
        return m
    t = target
    while t >= 8:
        if m % t == 0:
            return t
        t -= 8
    return m


def _choose_tk(k):
    """K tile giving >=4 pipelined reduction steps where possible."""
    if k % 512 == 0 and k // 512 >= 4:
        return 512
    if k % 256 == 0:
        return 256
    return k


# ---------------------------------------------------------------------------
# Pallas kernel 1: bf16 matmul, f32 accumulation directly into the resident
# output block, optional fused bias / LeakyReLU epilogue, optional per-M-tile
# BatchNorm partial statistics (sum, sum of squares) emitted at the last K step.
# ---------------------------------------------------------------------------
def _make_matmul_kernel(has_bias, apply_lrelu, emit_stats):
    def kernel(*refs):
        a_ref, b_ref = refs[0], refs[1]
        i = 2
        bias_ref = None
        if has_bias:
            bias_ref = refs[i]
            i += 1
        y_ref = refs[i]
        i += 1
        if emit_stats:
            sum_ref, sq_ref = refs[i], refs[i + 1]

        k = pl.program_id(1)

        @pl.when(k == 0)
        def _():
            y_ref[...] = jnp.zeros_like(y_ref)

        y_ref[...] += jnp.dot(
            a_ref[...], b_ref[...], preferred_element_type=jnp.float32
        )

        if has_bias or apply_lrelu or emit_stats:
            @pl.when(k == pl.num_programs(1) - 1)
            def _():
                y = y_ref[...]
                if has_bias:
                    y = y + bias_ref[...]
                if apply_lrelu:
                    y = jnp.where(y > 0, y, LRELU_SLOPE * y)
                if has_bias or apply_lrelu:
                    y_ref[...] = y
                if emit_stats:
                    # Per-tile partials; reduced globally outside the kernel so
                    # BN statistics stay exact over all N*H*W rows.
                    sum_ref[...] = jnp.sum(y, axis=0, keepdims=True)[None]
                    sq_ref[...] = jnp.sum(y * y, axis=0, keepdims=True)[None]

    return kernel


def matmul_fused(a, b, bias=None, *, apply_lrelu=False, emit_stats=False):
    """a: (M, K) bf16, b: (K, N) bf16, bias: (1, N) f32 or None.

    Returns f32 (M, N); with emit_stats also per-M-tile partial sum / sumsq.
    """
    m, k = a.shape
    kb, n = b.shape
    assert k == kb
    tm = _choose_tm(m)
    tk = _choose_tk(k)
    n_m, n_k = m // tm, k // tk

    has_bias = bias is not None
    kernel = _make_matmul_kernel(has_bias, apply_lrelu, emit_stats)

    in_specs = [
        pl.BlockSpec((tm, tk), lambda i, j: (i, j)),
        pl.BlockSpec((tk, n), lambda i, j: (j, 0)),
    ]
    args = [a, b]
    if has_bias:
        in_specs.append(pl.BlockSpec((1, n), lambda i, j: (0, 0)))
        args.append(bias)

    out_shape = [jax.ShapeDtypeStruct((m, n), jnp.float32)]
    out_specs = [pl.BlockSpec((tm, n), lambda i, j: (i, 0))]
    if emit_stats:
        out_shape += [jax.ShapeDtypeStruct((n_m, 1, n), jnp.float32)] * 2
        out_specs += [pl.BlockSpec((1, 1, n), lambda i, j: (i, 0, 0))] * 2

    res = pl.pallas_call(
        kernel,
        out_shape=out_shape,
        grid_spec=pltpu.PrefetchScalarGridSpec(
            num_scalar_prefetch=0,
            grid=(n_m, n_k),
            in_specs=in_specs,
            out_specs=out_specs,
        ),
        compiler_params=pltpu.CompilerParams(
            dimension_semantics=("parallel", "arbitrary"),
            vmem_limit_bytes=VMEM_LIMIT,
        ),
    )(*args)
    if emit_stats:
        return res[0], res[1], res[2]
    return res[0]


# ---------------------------------------------------------------------------
# Pallas kernel 2: apply BatchNorm (precomputed per-channel scale/shift) and
# LeakyReLU, storing bf16 for the next layer.
# ---------------------------------------------------------------------------
def _bn_lrelu_kernel(y_ref, scale_ref, shift_ref, o_ref):
    z = y_ref[...] * scale_ref[...] + shift_ref[...]
    o_ref[...] = jnp.where(z > 0, z, LRELU_SLOPE * z).astype(o_ref.dtype)


def batchnorm_lrelu(y, psum, psq):
    m, n = y.shape
    inv_m = 1.0 / m
    mean = jnp.sum(psum, axis=(0, 1)) * inv_m                      # (n,)
    var = jnp.maximum(jnp.sum(psq, axis=(0, 1)) * inv_m - mean * mean, 0.0)
    scale = jax.lax.rsqrt(var + BN_EPS)                            # gamma=1
    shift = -mean * scale                                          # beta=0
    scale = scale.reshape(1, n).astype(jnp.float32)
    shift = shift.reshape(1, n).astype(jnp.float32)

    tm = _choose_tm(m)
    return pl.pallas_call(
        _bn_lrelu_kernel,
        out_shape=jax.ShapeDtypeStruct((m, n), jnp.bfloat16),
        grid_spec=pltpu.PrefetchScalarGridSpec(
            num_scalar_prefetch=0,
            grid=(m // tm,),
            in_specs=[
                pl.BlockSpec((tm, n), lambda i: (i, 0)),
                pl.BlockSpec((1, n), lambda i: (0, 0)),
                pl.BlockSpec((1, n), lambda i: (0, 0)),
            ],
            out_specs=pl.BlockSpec((tm, n), lambda i: (i, 0)),
        ),
        compiler_params=pltpu.CompilerParams(
            dimension_semantics=("parallel",),
            vmem_limit_bytes=VMEM_LIMIT,
        ),
    )(y, scale, shift)


# ---------------------------------------------------------------------------
# Glue: NHWC im2col (no transposes) so each conv becomes a matmul.
# ---------------------------------------------------------------------------
def _im2col_nhwc(x, k, stride, pad):
    n, h, w, c = x.shape
    xp = jnp.pad(x, ((0, 0), (pad, pad), (pad, pad), (0, 0)))
    ho = (h + 2 * pad - k) // stride + 1
    wo = (w + 2 * pad - k) // stride + 1
    cols = [
        xp[:, kh:kh + stride * ho:stride, kw:kw + stride * wo:stride, :]
        for kh in range(k) for kw in range(k)
    ]
    patches = jnp.stack(cols, axis=3)                 # (n, ho, wo, k*k, c)
    return patches.reshape(n * ho * wo, k * k * c), n, ho, wo


def conv_lrelu(x_nhwc, w_mat, *, stride, pad):
    # TODO(synk): fuse the im2col gather into the matmul kernel (Element /
    # scalar-prefetch index maps) to avoid materializing the patch matrix.
    patches, n, ho, wo = _im2col_nhwc(
        x_nhwc.astype(jnp.bfloat16), KSIZE, stride, pad)
    cout = w_mat.shape[1]
    y = matmul_fused(patches, w_mat, apply_lrelu=True)            # f32
    return y.reshape(n, ho, wo, cout)


def conv_bn_lrelu(x_nhwc, w_mat, *, stride, pad):
    patches, n, ho, wo = _im2col_nhwc(
        x_nhwc.astype(jnp.bfloat16), KSIZE, stride, pad)
    cout = w_mat.shape[1]
    y, psum, psq = matmul_fused(patches, w_mat, emit_stats=True)  # f32 + stats
    y = batchnorm_lrelu(y, psum, psq)                             # bf16
    return y.reshape(n, ho, wo, cout)


# ---------------------------------------------------------------------------
# Parameters: raw (PyTorch-like OIHW, DCGAN N(0, 0.02) init) + one-time prep
# into the (K, N) bf16 layout the kernels consume, with conv5+Linear folded.
# ---------------------------------------------------------------------------
def init_raw_params(key, img_embedding_size):
    ks = jax.random.split(key, 6)
    std = 0.02
    return {
        "w1": std * jax.random.normal(ks[0], (NDF, 3, 4, 4), jnp.float32),
        "w2": std * jax.random.normal(ks[1], (NDF * 2, NDF, 4, 4), jnp.float32),
        "w3": std * jax.random.normal(ks[2], (NDF * 4, NDF * 2, 4, 4), jnp.float32),
        "w4": std * jax.random.normal(ks[3], (NDF * 8, NDF * 4, 4, 4), jnp.float32),
        "w5": std * jax.random.normal(ks[4], (NDF * 16, NDF * 8, 4, 4), jnp.float32),
        "lin_w": std * jax.random.normal(
            ks[5], (img_embedding_size, NDF * 16), jnp.float32),
        "lin_b": jnp.zeros((img_embedding_size,), jnp.float32),
    }


def _conv_w_mat(w_oihw):
    co, ci, kh, kw = w_oihw.shape
    # patch layout is (kh, kw, cin) -> row index (kh*k + kw)*cin + c
    return w_oihw.transpose(2, 3, 1, 0).reshape(kh * kw * ci, co).astype(jnp.bfloat16)


def prepare_params(raw):
    p = {
        "w1": _conv_w_mat(raw["w1"]),   # (48,   64)
        "w2": _conv_w_mat(raw["w2"]),   # (1024, 128)
        "w3": _conv_w_mat(raw["w3"]),   # (2048, 256)
        "w4": _conv_w_mat(raw["w4"]),   # (4096, 512)
    }
    # conv5 has no BN/activation before the Linear -> fold exactly:
    #   (x @ W5) @ lin_w.T + b == x @ (W5 @ lin_w.T) + b
    w5_mat = raw["w5"].transpose(2, 3, 1, 0).reshape(-1, raw["w5"].shape[0])
    p["w5_lin"] = (
        w5_mat.astype(jnp.float32) @ raw["lin_w"].T.astype(jnp.float32)
    ).astype(jnp.bfloat16)                                        # (8192, emb)
    p["lin_b"] = raw["lin_b"].astype(jnp.float32).reshape(1, -1)  # (1, emb)
    return p


# ---------------------------------------------------------------------------
# Full forward pass (matches ImageEncoder.forward; BN in training mode).
# ---------------------------------------------------------------------------
@jax.jit
def image_encoder_forward(params, x_nchw):
    x = jnp.transpose(x_nchw, (0, 2, 3, 1))                       # NCHW -> NHWC once
    x = conv_lrelu(x, params["w1"], stride=2, pad=1)              # (B,32,32, 64) f32
    x = conv_bn_lrelu(x, params["w2"], stride=2, pad=1)           # (B,16,16,128) bf16
    x = conv_bn_lrelu(x, params["w3"], stride=2, pad=1)           # (B, 8, 8,256) bf16
    x = conv_bn_lrelu(x, params["w4"], stride=2, pad=1)           # (B, 4, 4,512) bf16
    # conv5 (k4,s1,p0 on 4x4 -> 1x1) + view(B,1024) + Linear folded into one matmul.
    b = x.shape[0]
    flat = x.reshape(b, -1).astype(jnp.bfloat16)                  # (B, 8192)
    return matmul_fused(flat, params["w5_lin"], bias=params["lin_b"])


if __name__ == "__main__":
    img_embedding_size = 32
    key = jax.random.PRNGKey(0)
    kp, kx = jax.random.split(key)
    raw = init_raw_params(kp, img_embedding_size)
    params = prepare_params(raw)
    # Input must be 64x64 so the final 4x4/s1/p0 conv collapses spatial to 1x1.
    x = jax.random.normal(kx, (2, 3, 64, 64), jnp.float32)

    out = image_encoder_forward(params, x)
    out = jax.block_until_ready(out)
    assert out.shape == (2, img_embedding_size), out.shape
    assert bool(jnp.all(jnp.isfinite(out)))
    print("KERNEL_OK")
</pallas_src>

<mosaic_0001>
module attributes {stable_mosaic.version = 11 : i64} {
  func.func @kernel(%arg0: i32, %arg1: i32, %arg2: memref<256x48xbf16, #tpu.memory_space<vmem>>, %arg3: memref<48x64xbf16, #tpu.memory_space<vmem>>, %arg4: memref<256x64xf32, #tpu.memory_space<vmem>>) attributes {dimension_semantics = [#tpu.dimension_semantics<parallel>, #tpu.dimension_semantics<arbitrary>], iteration_bounds = array<i64: 8, 1>, scalar_prefetch = 0 : i64, scratch_operands = 0 : i64, tpu.core_type = #tpu.core_type<tc>, window_params = [{transform_indices = @transform_0, window_bounds = array<i64: 256, 48>}, {transform_indices = @transform_1, window_bounds = array<i64: 48, 64>}, {transform_indices = @transform_2, window_bounds = array<i64: 256, 64>}]} {
    %c0_i32 = arith.constant 0 : i32
    %0 = arith.cmpi eq, %arg1, %c0_i32 : i32
    %1 = arith.extui %0 : i1 to i32
    %c0_i32_0 = arith.constant 0 : i32
    %2 = arith.cmpi ne, %1, %c0_i32_0 : i32
    scf.if %2 {
      %cst_10 = arith.constant 0.000000e+00 : f32
      %12 = vector.broadcast %cst_10 : f32 to vector<256x64xf32>
      %c0_11 = arith.constant 0 : index
      %c0_12 = arith.constant 0 : index
      %13 = vector.load %arg4[%c0_11, %c0_12] : memref<256x64xf32, #tpu.memory_space<vmem>>, vector<256x64xf32>
      tpu.vector_store %arg4[%c0_11, %c0_12], %12 {strides = array<i32>} : memref<256x64xf32, #tpu.memory_space<vmem>>, vector<256x64xf32>,
    } else {
    }
    %c0 = arith.constant 0 : index
    %c0_1 = arith.constant 0 : index
    %3 = vector.load %arg4[%c0, %c0_1] : memref<256x64xf32, #tpu.memory_space<vmem>>, vector<256x64xf32>
    %c0_2 = arith.constant 0 : index
    %c0_3 = arith.constant 0 : index
    %4 = vector.load %arg2[%c0_2, %c0_3] : memref<256x48xbf16, #tpu.memory_space<vmem>>, vector<256x48xbf16>
    %c0_4 = arith.constant 0 : index
    %c0_5 = arith.constant 0 : index
    %5 = vector.load %arg3[%c0_4, %c0_5] : memref<48x64xbf16, #tpu.memory_space<vmem>>, vector<48x64xbf16>
    %cst = arith.constant dense<0.000000e+00> : vector<256x64xf32>
    %6 = tpu.matmul %4, %5, %cst {dimension_numbers = #tpu.dot_dimension_numbers<[1], [0], [0], [1], [0, 0, 1, 1], [], []>} : vector<256x48xbf16>, vector<48x64xbf16>, vector<256x64xf32> -> vector<256x64xf32>
    %7 = arith.addf %3, %6 : vector<256x64xf32>
    %c0_6 = arith.constant 0 : index
    %c0_7 = arith.constant 0 : index
    %8 = vector.load %arg4[%c0_6, %c0_7] : memref<256x64xf32, #tpu.memory_space<vmem>>, vector<256x64xf32>
    tpu.vector_store %arg4[%c0_6, %c0_7], %7 {strides = array<i32>} : memref<256x64xf32, #tpu.memory_space<vmem>>, vector<256x64xf32>,
    %c0_i32_8 = arith.constant 0 : i32
    %9 = arith.cmpi eq, %arg1, %c0_i32_8 : i32
    %10 = arith.extui %9 : i1 to i32
    %c0_i32_9 = arith.constant 0 : i32
    %11 = arith.cmpi ne, %10, %c0_i32_9 : i32
    scf.if %11 {
      %c0_10 = arith.constant 0 : index
      %c0_11 = arith.constant 0 : index
      %12 = vector.load %arg4[%c0_10, %c0_11] : memref<256x64xf32, #tpu.memory_space<vmem>>, vector<256x64xf32>
      %cst_12 = arith.constant 0.000000e+00 : f32
      %13 = vector.broadcast %cst_12 : f32 to vector<256x64xf32>
      %14 = arith.cmpf ogt, %12, %13 : vector<256x64xf32>
      %cst_13 = arith.constant 2.000000e-01 : f32
      %15 = vector.broadcast %cst_13 : f32 to vector<256x64xf32>
      %16 = arith.mulf %15, %12 : vector<256x64xf32>
      %17 = arith.select %14, %12, %16 : vector<256x64xi1>, vector<256x64xf32>
      %c0_14 = arith.constant 0 : index
      %c0_15 = arith.constant 0 : index
      %18 = vector.load %arg4[%c0_14, %c0_15] : memref<256x64xf32, #tpu.memory_space<vmem>>, vector<256x64xf32>
      tpu.vector_store %arg4[%c0_14, %c0_15], %17 {strides = array<i32>} : memref<256x64xf32, #tpu.memory_space<vmem>>, vector<256x64xf32>,
    } else {
    }
    return
  }
  func.func @transform_0(%arg0: i32, %arg1: i32) -> (i32, i32) {
    %c0_i32 = arith.constant 0 : i32
    return %arg0, %arg1 : i32, i32
  }
  func.func @transform_1(%arg0: i32, %arg1: i32) -> (i32, i32) {
    %c0_i32 = arith.constant 0 : i32
    %c0_i32_0 = arith.constant 0 : i32
    return %arg1, %c0_i32 : i32, i32
  }
  func.func @transform_2(%arg0: i32, %arg1: i32) -> (i32, i32) {
    %c0_i32 = arith.constant 0 : i32
    %c0_i32_0 = arith.constant 0 : i32
    return %arg0, %c0_i32 : i32, i32
  }
}

module attributes {stable_mosaic.version = 11 : i64} {
  func.func @kernel(%arg0: i32, %arg1: i32, %arg2: memref<256x256xbf16, #tpu.memory_space<vmem>>, %arg3: memref<256x128xbf16, #tpu.memory_space<vmem>>, %arg4: memref<256x128xf32, #tpu.memory_space<vmem>>, %arg5: memref<1x1x128xf32, #tpu.memory_space<vmem>>, %arg6: memref<1x1x128xf32, #tpu.memory_space<vmem>>) attributes {dimension_semantics = [#tpu.dimension_semantics<parallel>, #tpu.dimension_semantics<arbitrary>], iteration_bounds = array<i64: 2, 4>, scalar_prefetch = 0 : i64, scratch_operands = 0 : i64, tpu.core_type = #tpu.core_type<tc>, window_params = [{transform_indices = @transform_0, window_bounds = array<i64: 256, 256>}, {transform_indices = @transform_1, window_bounds = array<i64: 256, 128>}, {transform_indices = @transform_2, window_bounds = array<i64: 256, 128>}, {transform_indices = @transform_3, window_bounds = array<i64: 1, 1, 128>}, {transform_indices = @transform_4, window_bounds = array<i64: 1, 1, 128>}]} {
    %c0_i32 = arith.constant 0 : i32
    %0 = arith.cmpi eq, %arg1, %c0_i32 : i32
    %1 = arith.extui %0 : i1 to i32
    %c0_i32_0 = arith.constant 0 : i32
    %2 = arith.cmpi ne, %1, %c0_i32_0 : i32
    scf.if %2 {
      %cst_9 = arith.constant 0.000000e+00 : f32
      %12 = vector.broadcast %cst_9 : f32 to vector<256x128xf32>
      %c0_10 = arith.constant 0 : index
      %c0_11 = arith.constant 0 : index
      %13 = vector.load %arg4[%c0_10, %c0_11] : memref<256x128xf32, #tpu.memory_space<vmem>>, vector<256x128xf32>
      tpu.vector_store %arg4[%c0_10, %c0_11], %12 {strides = array<i32>} : memref<256x128xf32, #tpu.memory_space<vmem>>, vector<256x128xf32>,
    } else {
    }
    %c0 = arith.constant 0 : index
    %c0_1 = arith.constant 0 : index
    %3 = vector.load %arg4[%c0, %c0_1] : memref<256x128xf32, #tpu.memory_space<vmem>>, vector<256x128xf32>
    %c0_2 = arith.constant 0 : index
    %c0_3 = arith.constant 0 : index
    %4 = vector.load %arg2[%c0_2, %c0_3] : memref<256x256xbf16, #tpu.memory_space<vmem>>, vector<256x256xbf16>
    %c0_4 = arith.constant 0 : index
    %c0_5 = arith.constant 0 : index
    %5 = vector.load %arg3[%c0_4, %c0_5] : memref<256x128xbf16, #tpu.memory_space<vmem>>, vector<256x128xbf16>
    %cst = arith.constant dense<0.000000e+00> : vector<256x128xf32>
    %6 = tpu.matmul %4, %5, %cst {dimension_numbers = #tpu.dot_dimension_numbers<[1], [0], [0], [1], [0, 0, 1, 1], [], []>} : vector<256x256xbf16>, vector<256x128xbf16>, vector<256x128xf32> -> vector<256x128xf32>
    %7 = arith.addf %3, %6 : vector<256x128xf32>
    %c0_6 = arith.constant 0 : index
    %c0_7 = arith.constant 0 : index
    %8 = vector.load %arg4[%c0_6, %c0_7] : memref<256x128xf32, #tpu.memory_space<vmem>>, vector<256x128xf32>
    tpu.vector_store %arg4[%c0_6, %c0_7], %7 {strides = array<i32>} : memref<256x128xf32, #tpu.memory_space<vmem>>, vector<256x128xf32>,
    %c3_i32 = arith.constant 3 : i32
    %9 = arith.cmpi eq, %arg1, %c3_i32 : i32
    %10 = arith.extui %9 : i1 to i32
    %c0_i32_8 = arith.constant 0 : i32
    %11 = arith.cmpi ne, %10, %c0_i32_8 : i32
    scf.if %11 {
      %c0_9 = arith.constant 0 : index
      %c0_10 = arith.constant 0 : index
      %12 = vector.load %arg4[%c0_9, %c0_10] : memref<256x128xf32, #tpu.memory_space<vmem>>, vector<256x128xf32>
      %cst_11 = arith.constant dense<0.000000e+00> : vector<128xf32>
      %13 = vector.multi_reduction <add>, %12, %cst_11 [0] : vector<256x128xf32> to vector<128xf32>
      %14 = vector.shape_cast %13 : vector<128xf32> to vector<1x128xf32>
      %15 = vector.shape_cast %14 : vector<1x128xf32> to vector<1x1x128xf32>
      %c0_12 = arith.constant 0 : index
      %c0_13 = arith.constant 0 : index
      %c0_14 = arith.constant 0 : index
      %16 = vector.load %arg5[%c0_12, %c0_13, %c0_14] : memref<1x1x128xf32, #tpu.memory_space<vmem>>, vector<1x1x128xf32>
      tpu.vector_store %arg5[%c0_12, %c0_13, %c0_14], %15 {strides = array<i32>} : memref<1x1x128xf32, #tpu.memory_space<vmem>>, vector<1x1x128xf32>,
      %17 = arith.mulf %12, %12 : vector<256x128xf32>
      %cst_15 = arith.constant dense<0.000000e+00> : vector<128xf32>
      %18 = vector.multi_reduction <add>, %17, %cst_15 [0] : vector<256x128xf32> to vector<128xf32>
      %19 = vector.shape_cast %18 : vector<128xf32> to vector<1x128xf32>
      %20 = vector.shape_cast %19 : vector<1x128xf32> to vector<1x1x128xf32>
      %c0_16 = arith.constant 0 : index
      %c0_17 = arith.constant 0 : index
      %c0_18 = arith.constant 0 : index
      %21 = vector.load %arg6[%c0_16, %c0_17, %c0_18] : memref<1x1x128xf32, #tpu.memory_space<vmem>>, vector<1x1x128xf32>
      tpu.vector_store %arg6[%c0_16, %c0_17, %c0_18], %20 {strides = array<i32>} : memref<1x1x128xf32, #tpu.memory_space<vmem>>, vector<1x1x128xf32>,
    } else {
    }
    return
  }
  func.func @transform_0(%arg0: i32, %arg1: i32) -> (i32, i32) {
    %c0_i32 = arith.constant 0 : i32
    return %arg0, %arg1 : i32, i32
  }
  func.func @transform_1(%arg0: i32, %arg1: i32) -> (i32, i32) {
    %c0_i32 = arith.constant 0 : i32
    %c0_i32_0 = arith.constant 0 : i32
    return %arg1, %c0_i32 : i32, i32
  }
  func.func @transform_2(%arg0: i32, %arg1: i32) -> (i32, i32) {
    %c0_i32 = arith.constant 0 : i32
    %c0_i32_0 = arith.constant 0 : i32
    return %arg0, %c0_i32 : i32, i32
  }
  func.func @transform_3(%arg0: i32, %arg1: i32) -> (i32, i32, i32) {
    %c0_i32 = arith.constant 0 : i32
    %c0_i32_0 = arith.constant 0 : i32
    %c0_i32_1 = arith.constant 0 : i32
    return %arg0, %c0_i32, %c0_i32_0 : i32, i32, i32
  }
  func.func @transform_4(%arg0: i32, %arg1: i32) -> (i32, i32, i32) {
    %c0_i32 = arith.constant 0 : i32
    %c0_i32_0 = arith.constant 0 : i32
    %c0_i32_1 = arith.constant 0 : i32
    return %arg0, %c0_i32, %c0_i32_0 : i32, i32, i32
  }
}

module attributes {stable_mosaic.version = 11 : i64} {
  func.func @_bn_lrelu_kernel(%arg0: i32, %arg1: memref<256x128xf32, #tpu.memory_space<vmem>>, %arg2: memref<1x128xf32, #tpu.memory_space<vmem>>, %arg3: memref<1x128xf32, #tpu.memory_space<vmem>>, %arg4: memref<256x128xbf16, #tpu.memory_space<vmem>>) attributes {dimension_semantics = [#tpu.dimension_semantics<parallel>], iteration_bounds = array<i64: 2>, scalar_prefetch = 0 : i64, scratch_operands = 0 : i64, tpu.core_type = #tpu.core_type<tc>, window_params = [{transform_indices = @transform_0, window_bounds = array<i64: 256, 128>}, {pipeline_mode = #tpu.pipeline_mode<synchronous>, transform_indices = @transform_1, window_bounds = array<i64: 1, 128>}, {pipeline_mode = #tpu.pipeline_mode<synchronous>, transform_indices = @transform_2, window_bounds = array<i64: 1, 128>}, {transform_indices = @transform_3, window_bounds = array<i64: 256, 128>}]} {
    %c0 = arith.constant 0 : index
    %c0_0 = arith.constant 0 : index
    %0 = vector.load %arg1[%c0, %c0_0] : memref<256x128xf32, #tpu.memory_space<vmem>>, vector<256x128xf32>
    %c0_1 = arith.constant 0 : index
    %c0_2 = arith.constant 0 : index
    %1 = vector.load %arg2[%c0_1, %c0_2] : memref<1x128xf32, #tpu.memory_space<vmem>>, vector<1x128xf32>
    %2 = vector.broadcast %1 : vector<1x128xf32> to vector<256x128xf32>
    %3 = arith.mulf %0, %2 : vector<256x128xf32>
    %c0_3 = arith.constant 0 : index
    %c0_4 = arith.constant 0 : index
    %4 = vector.load %arg3[%c0_3, %c0_4] : memref<1x128xf32, #tpu.memory_space<vmem>>, vector<1x128xf32>
    %5 = vector.broadcast %4 : vector<1x128xf32> to vector<256x128xf32>
    %6 = arith.addf %3, %5 : vector<256x128xf32>
    %cst = arith.constant 0.000000e+00 : f32
    %7 = vector.broadcast %cst : f32 to vector<256x128xf32>
    %8 = arith.cmpf ogt, %6, %7 : vector<256x128xf32>
    %cst_5 = arith.constant 2.000000e-01 : f32
    %9 = vector.broadcast %cst_5 : f32 to vector<256x128xf32>
    %10 = arith.mulf %9, %6 : vector<256x128xf32>
    %11 = arith.select %8, %6, %10 : vector<256x128xi1>, vector<256x128xf32>
    %12 = arith.truncf %11 : vector<256x128xf32> to vector<256x128xbf16>
    %c0_6 = arith.constant 0 : index
    %c0_7 = arith.constant 0 : index
    %13 = vector.load %arg4[%c0_6, %c0_7] : memref<256x128xbf16, #tpu.memory_space<vmem>>, vector<256x128xbf16>
    tpu.vector_store %arg4[%c0_6, %c0_7], %12 {strides = array<i32>} : memref<256x128xbf16, #tpu.memory_space<vmem>>, vector<256x128xbf16>,
    return
  }
  func.func @transform_0(%arg0: i32) -> (i32, i32) {
    %c0_i32 = arith.constant 0 : i32
    %c0_i32_0 = arith.constant 0 : i32
    return %arg0, %c0_i32 : i32, i32
  }
  func.func @transform_1(%arg0: i32) -> (i32, i32) {
    %c0_i32 = arith.constant 0 : i32
    %c0_i32_0 = arith.constant 0 : i32
    %c0_i32_1 = arith.constant 0 : i32
    return %c0_i32, %c0_i32_0 : i32, i32
  }
  func.func @transform_2(%arg0: i32) -> (i32, i32) {
    %c0_i32 = arith.constant 0 : i32
    %c0_i32_0 = arith.constant 0 : i32
    %c0_i32_1 = arith.constant 0 : i32
    return %c0_i32, %c0_i32_0 : i32, i32
  }
  func.func @transform_3(%arg0: i32) -> (i32, i32) {
    %c0_i32 = arith.constant 0 : i32
    %c0_i32_0 = arith.constant 0 : i32
    return %arg0, %c0_i32 : i32, i32
  }
}

module attributes {stable_mosaic.version = 11 : i64} {
  func.func @kernel(%arg0: i32, %arg1: i32, %arg2: memref<128x512xbf16, #tpu.memory_space<vmem>>, %arg3: memref<512x256xbf16, #tpu.memory_space<vmem>>, %arg4: memref<128x256xf32, #tpu.memory_space<vmem>>, %arg5: memref<1x1x256xf32, #tpu.memory_space<vmem>>, %arg6: memref<1x1x256xf32, #tpu.memory_space<vmem>>) attributes {dimension_semantics = [#tpu.dimension_semantics<parallel>, #tpu.dimension_semantics<arbitrary>], iteration_bounds = array<i64: 1, 4>, scalar_prefetch = 0 : i64, scratch_operands = 0 : i64, tpu.core_type = #tpu.core_type<tc>, window_params = [{transform_indices = @transform_0, window_bounds = array<i64: 128, 512>}, {transform_indices = @transform_1, window_bounds = array<i64: 512, 256>}, {transform_indices = @transform_2, window_bounds = array<i64: 128, 256>}, {transform_indices = @transform_3, window_bounds = array<i64: 1, 1, 256>}, {transform_indices = @transform_4, window_bounds = array<i64: 1, 1, 256>}]} {
    %c0_i32 = arith.constant 0 : i32
    %0 = arith.cmpi eq, %arg1, %c0_i32 : i32
    %1 = arith.extui %0 : i1 to i32
    %c0_i32_0 = arith.constant 0 : i32
    %2 = arith.cmpi ne, %1, %c0_i32_0 : i32
    scf.if %2 {
      %cst_9 = arith.constant 0.000000e+00 : f32
      %12 = vector.broadcast %cst_9 : f32 to vector<128x256xf32>
      %c0_10 = arith.constant 0 : index
      %c0_11 = arith.constant 0 : index
      %13 = vector.load %arg4[%c0_10, %c0_11] : memref<128x256xf32, #tpu.memory_space<vmem>>, vector<128x256xf32>
      tpu.vector_store %arg4[%c0_10, %c0_11], %12 {strides = array<i32>} : memref<128x256xf32, #tpu.memory_space<vmem>>, vector<128x256xf32>,
    } else {
    }
    %c0 = arith.constant 0 : index
    %c0_1 = arith.constant 0 : index
    %3 = vector.load %arg4[%c0, %c0_1] : memref<128x256xf32, #tpu.memory_space<vmem>>, vector<128x256xf32>
    %c0_2 = arith.constant 0 : index
    %c0_3 = arith.constant 0 : index
    %4 = vector.load %arg2[%c0_2, %c0_3] : memref<128x512xbf16, #tpu.memory_space<vmem>>, vector<128x512xbf16>
    %c0_4 = arith.constant 0 : index
    %c0_5 = arith.constant 0 : index
    %5 = vector.load %arg3[%c0_4, %c0_5] : memref<512x256xbf16, #tpu.memory_space<vmem>>, vector<512x256xbf16>
    %cst = arith.constant dense<0.000000e+00> : vector<128x256xf32>
    %6 = tpu.matmul %4, %5, %cst {dimension_numbers = #tpu.dot_dimension_numbers<[1], [0], [0], [1], [0, 0, 1, 1], [], []>} : vector<128x512xbf16>, vector<512x256xbf16>, vector<128x256xf32> -> vector<128x256xf32>
    %7 = arith.addf %3, %6 : vector<128x256xf32>
    %c0_6 = arith.constant 0 : index
    %c0_7 = arith.constant 0 : index
    %8 = vector.load %arg4[%c0_6, %c0_7] : memref<128x256xf32, #tpu.memory_space<vmem>>, vector<128x256xf32>
    tpu.vector_store %arg4[%c0_6, %c0_7], %7 {strides = array<i32>} : memref<128x256xf32, #tpu.memory_space<vmem>>, vector<128x256xf32>,
    %c3_i32 = arith.constant 3 : i32
    %9 = arith.cmpi eq, %arg1, %c3_i32 : i32
    %10 = arith.extui %9 : i1 to i32
    %c0_i32_8 = arith.constant 0 : i32
    %11 = arith.cmpi ne, %10, %c0_i32_8 : i32
    scf.if %11 {
      %c0_9 = arith.constant 0 : index
      %c0_10 = arith.constant 0 : index
      %12 = vector.load %arg4[%c0_9, %c0_10] : memref<128x256xf32, #tpu.memory_space<vmem>>, vector<128x256xf32>
      %cst_11 = arith.constant dense<0.000000e+00> : vector<256xf32>
      %13 = vector.multi_reduction <add>, %12, %cst_11 [0] : vector<128x256xf32> to vector<256xf32>
      %14 = vector.shape_cast %13 : vector<256xf32> to vector<1x256xf32>
      %15 = vector.shape_cast %14 : vector<1x256xf32> to vector<1x1x256xf32>
      %c0_12 = arith.constant 0 : index
      %c0_13 = arith.constant 0 : index
      %c0_14 = arith.constant 0 : index
      %16 = vector.load %arg5[%c0_12, %c0_13, %c0_14] : memref<1x1x256xf32, #tpu.memory_space<vmem>>, vector<1x1x256xf32>
      tpu.vector_store %arg5[%c0_12, %c0_13, %c0_14], %15 {strides = array<i32>} : memref<1x1x256xf32, #tpu.memory_space<vmem>>, vector<1x1x256xf32>,
      %17 = arith.mulf %12, %12 : vector<128x256xf32>
      %cst_15 = arith.constant dense<0.000000e+00> : vector<256xf32>
      %18 = vector.multi_reduction <add>, %17, %cst_15 [0] : vector<128x256xf32> to vector<256xf32>
      %19 = vector.shape_cast %18 : vector<256xf32> to vector<1x256xf32>
      %20 = vector.shape_cast %19 : vector<1x256xf32> to vector<1x1x256xf32>
      %c0_16 = arith.constant 0 : index
      %c0_17 = arith.constant 0 : index
      %c0_18 = arith.constant 0 : index
      %21 = vector.load %arg6[%c0_16, %c0_17, %c0_18] : memref<1x1x256xf32, #tpu.memory_space<vmem>>, vector<1x1x256xf32>
      tpu.vector_store %arg6[%c0_16, %c0_17, %c0_18], %20 {strides = array<i32>} : memref<1x1x256xf32, #tpu.memory_space<vmem>>, vector<1x1x256xf32>,
    } else {
    }
    return
  }
  func.func @transform_0(%arg0: i32, %arg1: i32) -> (i32, i32) {
    %c0_i32 = arith.constant 0 : i32
    return %arg0, %arg1 : i32, i32
  }
  func.func @transform_1(%arg0: i32, %arg1: i32) -> (i32, i32) {
    %c0_i32 = arith.constant 0 : i32
    %c0_i32_0 = arith.constant 0 : i32
    return %arg1, %c0_i32 : i32, i32
  }
  func.func @transform_2(%arg0: i32, %arg1: i32) -> (i32, i32) {
    %c0_i32 = arith.constant 0 : i32
    %c0_i32_0 = arith.constant 0 : i32
    return %arg0, %c0_i32 : i32, i32
  }
  func.func @transform_3(%arg0: i32, %arg1: i32) -> (i32, i32, i32) {
    %c0_i32 = arith.constant 0 : i32
    %c0_i32_0 = arith.constant 0 : i32
    %c0_i32_1 = arith.constant 0 : i32
    return %arg0, %c0_i32, %c0_i32_0 : i32, i32, i32
  }
  func.func @transform_4(%arg0: i32, %arg1: i32) -> (i32, i32, i32) {
    %c0_i32 = arith.constant 0 : i32
    %c0_i32_0 = arith.constant 0 : i32
    %c0_i32_1 = arith.constant 0 : i32
    return %arg0, %c0_i32, %c0_i32_0 : i32, i32, i32
  }
}

module attributes {stable_mosaic.version = 11 : i64} {
  func.func @_bn_lrelu_kernel(%arg0: i32, %arg1: memref<128x256xf32, #tpu.memory_space<vmem>>, %arg2: memref<1x256xf32, #tpu.memory_space<vmem>>, %arg3: memref<1x256xf32, #tpu.memory_space<vmem>>, %arg4: memref<128x256xbf16, #tpu.memory_space<vmem>>) attributes {dimension_semantics = [#tpu.dimension_semantics<parallel>], iteration_bounds = array<i64: 1>, scalar_prefetch = 0 : i64, scratch_operands = 0 : i64, tpu.core_type = #tpu.core_type<tc>, window_params = [{transform_indices = @transform_0, window_bounds = array<i64: 128, 256>}, {pipeline_mode = #tpu.pipeline_mode<synchronous>, transform_indices = @transform_1, window_bounds = array<i64: 1, 256>}, {pipeline_mode = #tpu.pipeline_mode<synchronous>, transform_indices = @transform_2, window_bounds = array<i64: 1, 256>}, {transform_indices = @transform_3, window_bounds = array<i64: 128, 256>}]} {
    %c0 = arith.constant 0 : index
    %c0_0 = arith.constant 0 : index
    %0 = vector.load %arg1[%c0, %c0_0] : memref<128x256xf32, #tpu.memory_space<vmem>>, vector<128x256xf32>
    %c0_1 = arith.constant 0 : index
    %c0_2 = arith.constant 0 : index
    %1 = vector.load %arg2[%c0_1, %c0_2] : memref<1x256xf32, #tpu.memory_space<vmem>>, vector<1x256xf32>
    %2 = vector.broadcast %1 : vector<1x256xf32> to vector<128x256xf32>
    %3 = arith.mulf %0, %2 : vector<128x256xf32>
    %c0_3 = arith.constant 0 : index
    %c0_4 = arith.constant 0 : index
    %4 = vector.load %arg3[%c0_3, %c0_4] : memref<1x256xf32, #tpu.memory_space<vmem>>, vector<1x256xf32>
    %5 = vector.broadcast %4 : vector<1x256xf32> to vector<128x256xf32>
    %6 = arith.addf %3, %5 : vector<128x256xf32>
    %cst = arith.constant 0.000000e+00 : f32
    %7 = vector.broadcast %cst : f32 to vector<128x256xf32>
    %8 = arith.cmpf ogt, %6, %7 : vector<128x256xf32>
    %cst_5 = arith.constant 2.000000e-01 : f32
    %9 = vector.broadcast %cst_5 : f32 to vector<128x256xf32>
    %10 = arith.mulf %9, %6 : vector<128x256xf32>
    %11 = arith.select %8, %6, %10 : vector<128x256xi1>, vector<128x256xf32>
    %12 = arith.truncf %11 : vector<128x256xf32> to vector<128x256xbf16>
    %c0_6 = arith.constant 0 : index
    %c0_7 = arith.constant 0 : index
    %13 = vector.load %arg4[%c0_6, %c0_7] : memref<128x256xbf16, #tpu.memory_space<vmem>>, vector<128x256xbf16>
    tpu.vector_store %arg4[%c0_6, %c0_7], %12 {strides = array<i32>} : memref<128x256xbf16, #tpu.memory_space<vmem>>, vector<128x256xbf16>,
    return
  }
  func.func @transform_0(%arg0: i32) -> (i32, i32) {
    %c0_i32 = arith.constant 0 : i32
    %c0_i32_0 = arith.constant 0 : i32
    return %arg0, %c0_i32 : i32, i32
  }
  func.func @transform_1(%arg0: i32) -> (i32, i32) {
    %c0_i32 = arith.constant 0 : i32
    %c0_i32_0 = arith.constant 0 : i32
    %c0_i32_1 = arith.constant 0 : i32
    return %c0_i32, %c0_i32_0 : i32, i32
  }
  func.func @transform_2(%arg0: i32) -> (i32, i32) {
    %c0_i32 = arith.constant 0 : i32
    %c0_i32_0 = arith.constant 0 : i32
    %c0_i32_1 = arith.constant 0 : i32
    return %c0_i32, %c0_i32_0 : i32, i32
  }
  func.func @transform_3(%arg0: i32) -> (i32, i32) {
    %c0_i32 = arith.constant 0 : i32
    %c0_i32_0 = arith.constant 0 : i32
    return %arg0, %c0_i32 : i32, i32
  }
}

module attributes {stable_mosaic.version = 11 : i64} {
  func.func @kernel(%arg0: i32, %arg1: i32, %arg2: memref<32x512xbf16, #tpu.memory_space<vmem>>, %arg3: memref<512x512xbf16, #tpu.memory_space<vmem>>, %arg4: memref<32x512xf32, #tpu.memory_space<vmem>>, %arg5: memref<1x1x512xf32, #tpu.memory_space<vmem>>, %arg6: memref<1x1x512xf32, #tpu.memory_space<vmem>>) attributes {dimension_semantics = [#tpu.dimension_semantics<parallel>, #tpu.dimension_semantics<arbitrary>], iteration_bounds = array<i64: 1, 8>, scalar_prefetch = 0 : i64, scratch_operands = 0 : i64, tpu.core_type = #tpu.core_type<tc>, window_params = [{transform_indices = @transform_0, window_bounds = array<i64: 32, 512>}, {transform_indices = @transform_1, window_bounds = array<i64: 512, 512>}, {transform_indices = @transform_2, window_bounds = array<i64: 32, 512>}, {transform_indices = @transform_3, window_bounds = array<i64: 1, 1, 512>}, {transform_indices = @transform_4, window_bounds = array<i64: 1, 1, 512>}]} {
    %c0_i32 = arith.constant 0 : i32
    %0 = arith.cmpi eq, %arg1, %c0_i32 : i32
    %1 = arith.extui %0 : i1 to i32
    %c0_i32_0 = arith.constant 0 : i32
    %2 = arith.cmpi ne, %1, %c0_i32_0 : i32
    scf.if %2 {
      %cst_9 = arith.constant 0.000000e+00 : f32
      %12 = vector.broadcast %cst_9 : f32 to vector<32x512xf32>
      %c0_10 = arith.constant 0 : index
      %c0_11 = arith.constant 0 : index
      %13 = vector.load %arg4[%c0_10, %c0_11] : memref<32x512xf32, #tpu.memory_space<vmem>>, vector<32x512xf32>
      tpu.vector_store %arg4[%c0_10, %c0_11], %12 {strides = array<i32>} : memref<32x512xf32, #tpu.memory_space<vmem>>, vector<32x512xf32>,
    } else {
    }
    %c0 = arith.constant 0 : index
    %c0_1 = arith.constant 0 : index
    %3 = vector.load %arg4[%c0, %c0_1] : memref<32x512xf32, #tpu.memory_space<vmem>>, vector<32x512xf32>
    %c0_2 = arith.constant 0 : index
    %c0_3 = arith.constant 0 : index
    %4 = vector.load %arg2[%c0_2, %c0_3] : memref<32x512xbf16, #tpu.memory_space<vmem>>, vector<32x512xbf16>
    %c0_4 = arith.constant 0 : index
    %c0_5 = arith.constant 0 : index
    %5 = vector.load %arg3[%c0_4, %c0_5] : memref<512x512xbf16, #tpu.memory_space<vmem>>, vector<512x512xbf16>
    %cst = arith.constant dense<0.000000e+00> : vector<32x512xf32>
    %6 = tpu.matmul %4, %5, %cst {dimension_numbers = #tpu.dot_dimension_numbers<[1], [0], [0], [1], [0, 0, 1, 1], [], []>} : vector<32x512xbf16>, vector<512x512xbf16>, vector<32x512xf32> -> vector<32x512xf32>
    %7 = arith.addf %3, %6 : vector<32x512xf32>
    %c0_6 = arith.constant 0 : index
    %c0_7 = arith.constant 0 : index
    %8 = vector.load %arg4[%c0_6, %c0_7] : memref<32x512xf32, #tpu.memory_space<vmem>>, vector<32x512xf32>
    tpu.vector_store %arg4[%c0_6, %c0_7], %7 {strides = array<i32>} : memref<32x512xf32, #tpu.memory_space<vmem>>, vector<32x512xf32>,
    %c7_i32 = arith.constant 7 : i32
    %9 = arith.cmpi eq, %arg1, %c7_i32 : i32
    %10 = arith.extui %9 : i1 to i32
    %c0_i32_8 = arith.constant 0 : i32
    %11 = arith.cmpi ne, %10, %c0_i32_8 : i32
    scf.if %11 {
      %c0_9 = arith.constant 0 : index
      %c0_10 = arith.constant 0 : index
      %12 = vector.load %arg4[%c0_9, %c0_10] : memref<32x512xf32, #tpu.memory_space<vmem>>, vector<32x512xf32>
      %cst_11 = arith.constant dense<0.000000e+00> : vector<512xf32>
      %13 = vector.multi_reduction <add>, %12, %cst_11 [0] : vector<32x512xf32> to vector<512xf32>
      %14 = vector.shape_cast %13 : vector<512xf32> to vector<1x512xf32>
      %15 = vector.shape_cast %14 : vector<1x512xf32> to vector<1x1x512xf32>
      %c0_12 = arith.constant 0 : index
      %c0_13 = arith.constant 0 : index
      %c0_14 = arith.constant 0 : index
      %16 = vector.load %arg5[%c0_12, %c0_13, %c0_14] : memref<1x1x512xf32, #tpu.memory_space<vmem>>, vector<1x1x512xf32>
      tpu.vector_store %arg5[%c0_12, %c0_13, %c0_14], %15 {strides = array<i32>} : memref<1x1x512xf32, #tpu.memory_space<vmem>>, vector<1x1x512xf32>,
      %17 = arith.mulf %12, %12 : vector<32x512xf32>
      %cst_15 = arith.constant dense<0.000000e+00> : vector<512xf32>
      %18 = vector.multi_reduction <add>, %17, %cst_15 [0] : vector<32x512xf32> to vector<512xf32>
      %19 = vector.shape_cast %18 : vector<512xf32> to vector<1x512xf32>
      %20 = vector.shape_cast %19 : vector<1x512xf32> to vector<1x1x512xf32>
      %c0_16 = arith.constant 0 : index
      %c0_17 = arith.constant 0 : index
      %c0_18 = arith.constant 0 : index
      %21 = vector.load %arg6[%c0_16, %c0_17, %c0_18] : memref<1x1x512xf32, #tpu.memory_space<vmem>>, vector<1x1x512xf32>
      tpu.vector_store %arg6[%c0_16, %c0_17, %c0_18], %20 {strides = array<i32>} : memref<1x1x512xf32, #tpu.memory_space<vmem>>, vector<1x1x512xf32>,
    } else {
    }
    return
  }
  func.func @transform_0(%arg0: i32, %arg1: i32) -> (i32, i32) {
    %c0_i32 = arith.constant 0 : i32
    return %arg0, %arg1 : i32, i32
  }
  func.func @transform_1(%arg0: i32, %arg1: i32) -> (i32, i32) {
    %c0_i32 = arith.constant 0 : i32
    %c0_i32_0 = arith.constant 0 : i32
    return %arg1, %c0_i32 : i32, i32
  }
  func.func @transform_2(%arg0: i32, %arg1: i32) -> (i32, i32) {
    %c0_i32 = arith.constant 0 : i32
    %c0_i32_0 = arith.constant 0 : i32
    return %arg0, %c0_i32 : i32, i32
  }
  func.func @transform_3(%arg0: i32, %arg1: i32) -> (i32, i32, i32) {
    %c0_i32 = arith.constant 0 : i32
    %c0_i32_0 = arith.constant 0 : i32
    %c0_i32_1 = arith.constant 0 : i32
    return %arg0, %c0_i32, %c0_i32_0 : i32, i32, i32
  }
  func.func @transform_4(%arg0: i32, %arg1: i32) -> (i32, i32, i32) {
    %c0_i32 = arith.constant 0 : i32
    %c0_i32_0 = arith.constant 0 : i32
    %c0_i32_1 = arith.constant 0 : i32
    return %arg0, %c0_i32, %c0_i32_0 : i32, i32, i32
  }
}

module attributes {stable_mosaic.version = 11 : i64} {
  func.func @_bn_lrelu_kernel(%arg0: i32, %arg1: memref<32x512xf32, #tpu.memory_space<vmem>>, %arg2: memref<1x512xf32, #tpu.memory_space<vmem>>, %arg3: memref<1x512xf32, #tpu.memory_space<vmem>>, %arg4: memref<32x512xbf16, #tpu.memory_space<vmem>>) attributes {dimension_semantics = [#tpu.dimension_semantics<parallel>], iteration_bounds = array<i64: 1>, scalar_prefetch = 0 : i64, scratch_operands = 0 : i64, tpu.core_type = #tpu.core_type<tc>, window_params = [{transform_indices = @transform_0, window_bounds = array<i64: 32, 512>}, {pipeline_mode = #tpu.pipeline_mode<synchronous>, transform_indices = @transform_1, window_bounds = array<i64: 1, 512>}, {pipeline_mode = #tpu.pipeline_mode<synchronous>, transform_indices = @transform_2, window_bounds = array<i64: 1, 512>}, {transform_indices = @transform_3, window_bounds = array<i64: 32, 512>}]} {
    %c0 = arith.constant 0 : index
    %c0_0 = arith.constant 0 : index
    %0 = vector.load %arg1[%c0, %c0_0] : memref<32x512xf32, #tpu.memory_space<vmem>>, vector<32x512xf32>
    %c0_1 = arith.constant 0 : index
    %c0_2 = arith.constant 0 : index
    %1 = vector.load %arg2[%c0_1, %c0_2] : memref<1x512xf32, #tpu.memory_space<vmem>>, vector<1x512xf32>
    %2 = vector.broadcast %1 : vector<1x512xf32> to vector<32x512xf32>
    %3 = arith.mulf %0, %2 : vector<32x512xf32>
    %c0_3 = arith.constant 0 : index
    %c0_4 = arith.constant 0 : index
    %4 = vector.load %arg3[%c0_3, %c0_4] : memref<1x512xf32, #tpu.memory_space<vmem>>, vector<1x512xf32>
    %5 = vector.broadcast %4 : vector<1x512xf32> to vector<32x512xf32>
    %6 = arith.addf %3, %5 : vector<32x512xf32>
    %cst = arith.constant 0.000000e+00 : f32
    %7 = vector.broadcast %cst : f32 to vector<32x512xf32>
    %8 = arith.cmpf ogt, %6, %7 : vector<32x512xf32>
    %cst_5 = arith.constant 2.000000e-01 : f32
    %9 = vector.broadcast %cst_5 : f32 to vector<32x512xf32>
    %10 = arith.mulf %9, %6 : vector<32x512xf32>
    %11 = arith.select %8, %6, %10 : vector<32x512xi1>, vector<32x512xf32>
    %12 = arith.truncf %11 : vector<32x512xf32> to vector<32x512xbf16>
    %c0_6 = arith.constant 0 : index
    %c0_7 = arith.constant 0 : index
    %13 = vector.load %arg4[%c0_6, %c0_7] : memref<32x512xbf16, #tpu.memory_space<vmem>>, vector<32x512xbf16>
    tpu.vector_store %arg4[%c0_6, %c0_7], %12 {strides = array<i32>} : memref<32x512xbf16, #tpu.memory_space<vmem>>, vector<32x512xbf16>,
    return
  }
  func.func @transform_0(%arg0: i32) -> (i32, i32) {
    %c0_i32 = arith.constant 0 : i32
    %c0_i32_0 = arith.constant 0 : i32
    return %arg0, %c0_i32 : i32, i32
  }
  func.func @transform_1(%arg0: i32) -> (i32, i32) {
    %c0_i32 = arith.constant 0 : i32
    %c0_i32_0 = arith.constant 0 : i32
    %c0_i32_1 = arith.constant 0 : i32
    return %c0_i32, %c0_i32_0 : i32, i32
  }
  func.func @transform_2(%arg0: i32) -> (i32, i32) {
    %c0_i32 = arith.constant 0 : i32
    %c0_i32_0 = arith.constant 0 : i32
    %c0_i32_1 = arith.constant 0 : i32
    return %c0_i32, %c0_i32_0 : i32, i32
  }
  func.func @transform_3(%arg0: i32) -> (i32, i32) {
    %c0_i32 = arith.constant 0 : i32
    %c0_i32_0 = arith.constant 0 : i32
    return %arg0, %c0_i32 : i32, i32
  }
}

module attributes {stable_mosaic.version = 11 : i64} {
  func.func @kernel(%arg0: i32, %arg1: i32, %arg2: memref<2x512xbf16, #tpu.memory_space<vmem>>, %arg3: memref<512x32xbf16, #tpu.memory_space<vmem>>, %arg4: memref<1x32xf32, #tpu.memory_space<vmem>>, %arg5: memref<2x32xf32, #tpu.memory_space<vmem>>) attributes {dimension_semantics = [#tpu.dimension_semantics<parallel>, #tpu.dimension_semantics<arbitrary>], iteration_bounds = array<i64: 1, 16>, scalar_prefetch = 0 : i64, scratch_operands = 0 : i64, tpu.core_type = #tpu.core_type<tc>, window_params = [{transform_indices = @transform_0, window_bounds = array<i64: 2, 512>}, {transform_indices = @transform_1, window_bounds = array<i64: 512, 32>}, {pipeline_mode = #tpu.pipeline_mode<synchronous>, transform_indices = @transform_2, window_bounds = array<i64: 1, 32>}, {transform_indices = @transform_3, window_bounds = array<i64: 2, 32>}]} {
    %c0_i32 = arith.constant 0 : i32
    %0 = arith.cmpi eq, %arg1, %c0_i32 : i32
    %1 = arith.extui %0 : i1 to i32
    %c0_i32_0 = arith.constant 0 : i32
    %2 = arith.cmpi ne, %1, %c0_i32_0 : i32
    scf.if %2 {
      %cst_9 = arith.constant 0.000000e+00 : f32
      %12 = vector.broadcast %cst_9 : f32 to vector<2x32xf32>
      %c0_10 = arith.constant 0 : index
      %c0_11 = arith.constant 0 : index
      %13 = vector.load %arg5[%c0_10, %c0_11] : memref<2x32xf32, #tpu.memory_space<vmem>>, vector<2x32xf32>
      tpu.vector_store %arg5[%c0_10, %c0_11], %12 {strides = array<i32>} : memref<2x32xf32, #tpu.memory_space<vmem>>, vector<2x32xf32>,
    } else {
    }
    %c0 = arith.constant 0 : index
    %c0_1 = arith.constant 0 : index
    %3 = vector.load %arg5[%c0, %c0_1] : memref<2x32xf32, #tpu.memory_space<vmem>>, vector<2x32xf32>
    %c0_2 = arith.constant 0 : index
    %c0_3 = arith.constant 0 : index
    %4 = vector.load %arg2[%c0_2, %c0_3] : memref<2x512xbf16, #tpu.memory_space<vmem>>, vector<2x512xbf16>
    %c0_4 = arith.constant 0 : index
    %c0_5 = arith.constant 0 : index
    %5 = vector.load %arg3[%c0_4, %c0_5] : memref<512x32xbf16, #tpu.memory_space<vmem>>, vector<512x32xbf16>
    %cst = arith.constant dense<0.000000e+00> : vector<2x32xf32>
    %6 = tpu.matmul %4, %5, %cst {dimension_numbers = #tpu.dot_dimension_numbers<[1], [0], [0], [1], [0, 0, 1, 1], [], []>} : vector<2x512xbf16>, vector<512x32xbf16>, vector<2x32xf32> -> vector<2x32xf32>
    %7 = arith.addf %3, %6 : vector<2x32xf32>
    %c0_6 = arith.constant 0 : index
    %c0_7 = arith.constant 0 : index
    %8 = vector.load %arg5[%c0_6, %c0_7] : memref<2x32xf32, #tpu.memory_space<vmem>>, vector<2x32xf32>
    tpu.vector_store %arg5[%c0_6, %c0_7], %7 {strides = array<i32>} : memref<2x32xf32, #tpu.memory_space<vmem>>, vector<2x32xf32>,
    %c15_i32 = arith.constant 15 : i32
    %9 = arith.cmpi eq, %arg1, %c15_i32 : i32
    %10 = arith.extui %9 : i1 to i32
    %c0_i32_8 = arith.constant 0 : i32
    %11 = arith.cmpi ne, %10, %c0_i32_8 : i32
    scf.if %11 {
      %c0_9 = arith.constant 0 : index
      %c0_10 = arith.constant 0 : index
      %12 = vector.load %arg5[%c0_9, %c0_10] : memref<2x32xf32, #tpu.memory_space<vmem>>, vector<2x32xf32>
      %c0_11 = arith.constant 0 : index
      %c0_12 = arith.constant 0 : index
      %13 = vector.load %arg4[%c0_11, %c0_12] : memref<1x32xf32, #tpu.memory_space<vmem>>, vector<1x32xf32>
      %14 = vector.broadcast %13 : vector<1x32xf32> to vector<2x32xf32>
      %15 = arith.addf %12, %14 : vector<2x32xf32>
      %c0_13 = arith.constant 0 : index
      %c0_14 = arith.constant 0 : index
      %16 = vector.load %arg5[%c0_13, %c0_14] : memref<2x32xf32, #tpu.memory_space<vmem>>, vector<2x32xf32>
      tpu.vector_store %arg5[%c0_13, %c0_14], %15 {strides = array<i32>} : memref<2x32xf32, #tpu.memory_space<vmem>>, vector<2x32xf32>,
    } else {
    }
    return
  }
  func.func @transform_0(%arg0: i32, %arg1: i32) -> (i32, i32) {
    %c0_i32 = arith.constant 0 : i32
    return %arg0, %arg1 : i32, i32
  }
  func.func @transform_1(%arg0: i32, %arg1: i32) -> (i32, i32) {
    %c0_i32 = arith.constant 0 : i32
    %c0_i32_0 = arith.constant 0 : i32
    return %arg1, %c0_i32 : i32, i32
  }
  func.func @transform_2(%arg0: i32, %arg1: i32) -> (i32, i32) {
    %c0_i32 = arith.constant 0 : i32
    %c0_i32_0 = arith.constant 0 : i32
    %c0_i32_1 = arith.constant 0 : i32
    return %c0_i32, %c0_i32_0 : i32, i32
  }
  func.func @transform_3(%arg0: i32, %arg1: i32) -> (i32, i32) {
    %c0_i32 = arith.constant 0 : i32
    %c0_i32_0 = arith.constant 0 : i32
    return %arg0, %c0_i32 : i32, i32
  }
}

</mosaic_0001>

<bundles_post_ra>
// kernel: image_encoder_forward.8
= control target key start
LH: loop header
LB: loop body
LE: loop exit
PB: predicated region body
PF: predicated region fallthrough
CT: control target
= control target key end

     0   :  { %s1113_s9 = smov 0   ;;  %s1115_s10 = smov 0   ;;  %s1455_s0 = inlined_call_operand.vmem [shape: bf16[2048,48], index: 0, kind: input, shape index: {}]   ;;  %s1456_s1 = inlined_call_operand.vmem [shape: bf16[48,64], index: 1, kind: input, shape index: {}]   ;;  %s1457_s2 = inlined_call_operand.vmem [shape: f32[2048,64], index: 2, kind: output, shape index: {}]  }
   0x1   :  { %s1117_s11 = smov 0  }
   0x2 LB: > { %s24_s12 = sadd.s32 1, %s1091_s10  ;;  %p924_p0 = scmp.ge.s32.totalorder %s1095_s11, 1  ;;  %s1095_s11 = sphi %s1117_s11, %s12_s11   ;;  %s1091_s10 = sphi %s1115_s10, %s1459_s10   ;;  %s1087_s9 = sphi %s1113_s9, %s1458_s9  }
   0x3   : > { %p26_p1 = scmp.ge.s32.totalorder %s24_s12, 8  ;;  %p141_p2 = scmp.lt.s32.totalorder %s1095_s11, 9 }
   0x5   : > { %s1461_s12 = smov (%p26_p1, %s24_s12), 0  ;;  %p142_p3 = pnand %p924_p0, %p141_p2 }
   0x6   : > { %v1054_v0 = vld [vmem:[%s1456_s1] sm:$0xff] (!%p142_p3)   ;;  %s925_s15 = sshll.u32 (!%p142_p3), %s1087_s9, 5  ;;  %v1055_v1 = vld [vmem:[%s1456_s1 + $0x8] sm:$0xff] (!%p142_p3)   ;;  %v1056_v2 = vld [vmem:[%s1456_s1 + $0x10] sm:$0xff] (!%p142_p3)   ;;  %vm197_vm0 = vcmask (!%p142_p3), 523264   ;;  %vm398_vm1 = vcmask (!%p142_p3), 392192  }
   0x7   : > { %145 = sbr.rel (%p142_p3) target bundleno = 280 (0x118), region = 28  ;;  %p172_p4 = scmp.lt.s32.totalorder (!%p142_p3), %s925_s15, 255  ;;  %985 = vmatprep.subr.bf16.mxu0 (!%p142_p3), %v1054_v0  ;;  %1023 = vmatprep.subr.bf16.mxu1 (!%p142_p3), %v1054_v0  ;;  %v1097_v4 = vmov (!%p142_p3), 0.0  }
   0x8   : > { %986 = vmatpush3.bf16.msra.mxu0 (!%p142_p3), %v1054_v0  ;;  %1026 = vmatpush3.bf16.msra.mxu1 (!%p142_p3), %v1054_v0 }
   0x9   : > { %987 = vmatprep.subr.bf16.mxu0 (!%p142_p3), %v1055_v1  ;;  %1024 = vmatprep.subr.bf16.mxu1 (!%p142_p3), %v1055_v1 }
   0xc   : > { %988 = vmatpush3.bf16.msra.mxu0 (!%p142_p3), %v1055_v1  ;;  %1027 = vmatpush3.bf16.msra.mxu1 (!%p142_p3), %v1055_v1 }
   0xd   : > { %989 = vmatprep.subr.bf16.mxu0 (!%p142_p3), %v1056_v2  ;;  %1025 = vmatprep.subr.bf16.mxu1 (!%p142_p3), %v1056_v2 }
   0xe   : > { %s1463_s15 = smov (!%p172_p4, %s925_s15), 255 }
   0xf   : > { %s926_s20 = sshll.u32 %s1463_s15, 2  ;;  %s928_s21 = sshll.u32 %s1463_s15, 3 }
  0x10   : > { %s1143_s24 = scalar_lea.vmem %s1455_s0, %s926_s20  ;;  %s1148_s27 = scalar_lea.vmem %s1457_s2, %s928_s21  ;;  %990 = vmatpush3.bf16.msra.mxu0 %v1056_v2  ;;  %1028 = vmatpush3.bf16.msra.mxu1 %v1056_v2 }
  0x11   : > { %v1057_v3 = vld [vmem:[%s1143_s24] sm:$0xff]   ;;  %200 = vst.msk [vmem:[%s1148_s27 + $0x10] sm:$0xff] %vm197_vm0, %v1097_v4  ;;  %198 = vst.msk [vmem:[%s1148_s27] sm:$0xff] %vm197_vm0, %v1097_v4  ;;  %v1059_v6 = vld [vmem:[%s1143_s24 + $0x8] sm:$0xff]  }
  0x12   : > { %199 = vst.msk [vmem:[%s1148_s27 + $0x8] sm:$0xff] %vm197_vm0, %v1097_v4  ;;  %201 = vst.msk [vmem:[%s1148_s27 + $0x18] sm:$0xff] %vm197_vm0, %v1097_v4  ;;  %v1058_v5 = vld [vmem:[%s1143_s24 + $0x40] sm:$0xff]   ;;  %991 = vmatprep.mubr.msk.bf16.mxu0 %vm398_vm1, %v1057_v3  ;;  %v1060_v7 = vld [vmem:[%s1143_s24 + $0x48] sm:$0xff]  }
  0x13   : > { %202 = vst.msk [vmem:[%s1148_s27 + $0x20] sm:$0xff] %vm197_vm0, %v1097_v4  ;;  %203 = vst.msk [vmem:[%s1148_s27 + $0x28] sm:$0xff] %vm197_vm0, %v1097_v4  ;;  %1007 = vmatprep.mubr.msk.bf16.mxu1 %vm398_vm1, %v1058_v5  ;;  %v1061_v8 = vld [vmem:[%s1143_s24 + $0x10] sm:$0xff]   ;;  %992 = vmatmul.mubr.msk.bf16.vlgmr.msra.gmra.mrb[0].mxu0 %vm398_vm1, %v1059_v6  ;;  %v1063_v10 = vld [vmem:[%s1143_s24 + $0x18] sm:$0xff]  }
  0x14   : > { %204 = vst.msk [vmem:[%s1148_s27 + $0x30] sm:$0xff] %vm197_vm0, %v1097_v4  ;;  %205 = vst.msk [vmem:[%s1148_s27 + $0x38] sm:$0xff] %vm197_vm0, %v1097_v4  ;;  %v1062_v9 = vld [vmem:[%s1143_s24 + $0x50] sm:$0xff]   ;;  %1008 = vmatmul.mubr.msk.bf16.vlgmr.msra.gmra.mrb[0].mxu1 %vm398_vm1, %v1060_v7  ;;  %995 = vmatprep.mubr.msk.bf16.mxu0 %vm398_vm1, %v1061_v8  ;;  %v1064_v11 = vld [vmem:[%s1143_s24 + $0x58] sm:$0xff]  }
  0x15   : > { %206 = vst.msk [vmem:[%s1148_s27 + $0x40] sm:$0xff] %vm197_vm0, %v1097_v4  ;;  %207 = vst.msk [vmem:[%s1148_s27 + $0x48] sm:$0xff] %vm197_vm0, %v1097_v4  ;;  %1011 = vmatprep.mubr.msk.bf16.mxu1 %vm398_vm1, %v1062_v9  ;;  %v1065_v12 = vld [vmem:[%s1143_s24 + $0x20] sm:$0xff]   ;;  %v1067_v14 = vld [vmem:[%s1143_s24 + $0x28] sm:$0xff]  }
  0x16   : > { %208 = vst.msk [vmem:[%s1148_s27 + $0x50] sm:$0xff] %vm197_vm0, %v1097_v4  ;;  %209 = vst.msk [vmem:[%s1148_s27 + $0x58] sm:$0xff] %vm197_vm0, %v1097_v4  ;;  %v1066_v13 = vld [vmem:[%s1143_s24 + $0x60] sm:$0xff]   ;;  %v1068_v15 = vld [vmem:[%s1143_s24 + $0x68] sm:$0xff]  }
  0x17   : > { %210 = vst.msk [vmem:[%s1148_s27 + $0x60] sm:$0xff] %vm197_vm0, %v1097_v4  ;;  %211 = vst.msk [vmem:[%s1148_s27 + $0x68] sm:$0xff] %vm197_vm0, %v1097_v4  ;;  %v1069_v16 = vld [vmem:[%s1143_s24 + $0x30] sm:$0xff]   ;;  %v1071_v18 = vld [vmem:[%s1143_s24 + $0x38] sm:$0xff]  }
  0x18   : > { %212 = vst.msk [vmem:[%s1148_s27 + $0x70] sm:$0xff] %vm197_vm0, %v1097_v4  ;;  %213 = vst.msk [vmem:[%s1148_s27 + $0x78] sm:$0xff] %vm197_vm0, %v1097_v4  ;;  %v1070_v17 = vld [vmem:[%s1143_s24 + $0x70] sm:$0xff]   ;;  %v1072_v19 = vld [vmem:[%s1143_s24 + $0x78] sm:$0xff]  }
  0x19   : > { %214 = vst.msk [vmem:[%s1148_s27 + $0x80] sm:$0xff] %vm197_vm0, %v1097_v4  ;;  %215 = vst.msk [vmem:[%s1148_s27 + $0x88] sm:$0xff] %vm197_vm0, %v1097_v4  ;;  %v232_v20 = vld [vmem:[%s1148_s27 + $0x10] sm:$0xff]  ;;  %v230_v22 = vld [vmem:[%s1148_s27] sm:$0xff] }
  0x1a   : > { %216 = vst.msk [vmem:[%s1148_s27 + $0x90] sm:$0xff] %vm197_vm0, %v1097_v4  ;;  %217 = vst.msk [vmem:[%s1148_s27 + $0x98] sm:$0xff] %vm197_vm0, %v1097_v4  ;;  %v233_v26 = vld [vmem:[%s1148_s27 + $0x18] sm:$0xff]  ;;  %v231_v32 = vld [vmem:[%s1148_s27 + $0x8] sm:$0xff] }
  0x1b   : > { %218 = vst.msk [vmem:[%s1148_s27 + $0xa0] sm:$0xff] %vm197_vm0, %v1097_v4  ;;  %219 = vst.msk [vmem:[%s1148_s27 + $0xa8] sm:$0xff] %vm197_vm0, %v1097_v4  ;;  %996 = vmatmul.mubr.msk.bf16.gmra.mrb[4].mxu0 %vm398_vm1, %v1063_v10  ;;  %v236_v44 = vld [vmem:[%s1148_s27 + $0x30] sm:$0xff]  ;;  %v234_v46 = vld [vmem:[%s1148_s27 + $0x20] sm:$0xff] }
  0x1c   : > { %220 = vst.msk [vmem:[%s1148_s27 + $0xb0] sm:$0xff] %vm197_vm0, %v1097_v4  ;;  %221 = vst.msk [vmem:[%s1148_s27 + $0xb8] sm:$0xff] %vm197_vm0, %v1097_v4  ;;  %1012 = vmatmul.mubr.msk.bf16.gmra.mrb[4].mxu1 %vm398_vm1, %v1064_v11  ;;  %999 = vmatprep.mubr.msk.bf16.mxu0 %vm398_vm1, %v1065_v12  ;;  %v237_v54 = vld [vmem:[%s1148_s27 + $0x38] sm:$0xff]  ;;  %v235_v5 = vld [vmem:[%s1148_s27 + $0x28] sm:$0xff] }
  0x1d   : > { %222 = vst.msk [vmem:[%s1148_s27 + $0xc0] sm:$0xff] %vm197_vm0, %v1097_v4  ;;  %223 = vst.msk [vmem:[%s1148_s27 + $0xc8] sm:$0xff] %vm197_vm0, %v1097_v4  ;;  %1015 = vmatprep.mubr.msk.bf16.mxu1 %vm398_vm1, %v1066_v13 }
  0x1e   : > { %224 = vst.msk [vmem:[%s1148_s27 + $0xd0] sm:$0xff] %vm197_vm0, %v1097_v4  ;;  %225 = vst.msk [vmem:[%s1148_s27 + $0xd8] sm:$0xff] %vm197_vm0, %v1097_v4 }
  0x1f   : > { %226 = vst.msk [vmem:[%s1148_s27 + $0xe0] sm:$0xff] %vm197_vm0, %v1097_v4  ;;  %227 = vst.msk [vmem:[%s1148_s27 + $0xe8] sm:$0xff] %vm197_vm0, %v1097_v4 }
  0x20   : > { %228 = vst.msk [vmem:[%s1148_s27 + $0xf0] sm:$0xff] %vm197_vm0, %v1097_v4  ;;  %229 = vst.msk [vmem:[%s1148_s27 + $0xf8] sm:$0xff] %vm197_vm0, %v1097_v4  ;;  %v246_v23 = vld [vmem:[%s1148_s27 + $0x80] sm:$0xff]  ;;  %v247_v33 = vld [vmem:[%s1148_s27 + $0x88] sm:$0xff] }
  0x21   : > { %v248_v21 = vld [vmem:[%s1148_s27 + $0x90] sm:$0xff]  ;;  %v249_v27 = vld [vmem:[%s1148_s27 + $0x98] sm:$0xff] }
  0x22   : > { %v250_v47 = vld [vmem:[%s1148_s27 + $0xa0] sm:$0xff]  ;;  %v251_v7 = vld [vmem:[%s1148_s27 + $0xa8] sm:$0xff] }
  0x23   : > { %1000 = vmatmul.mubr.msk.bf16.gmra.mrb[8].mxu0 %vm398_vm1, %v1067_v14  ;;  %v252_v45 = vld [vmem:[%s1148_s27 + $0xb0] sm:$0xff]  ;;  %v253_v55 = vld [vmem:[%s1148_s27 + $0xb8] sm:$0xff] }
  0x24   : > { %1016 = vmatmul.mubr.msk.bf16.gmra.mrb[8].mxu1 %vm398_vm1, %v1068_v15  ;;  %1003 = vmatprep.mubr.msk.bf16.mxu0 %vm398_vm1, %v1069_v16  ;;  %v240_v15 = vld [vmem:[%s1148_s27 + $0x50] sm:$0xff] }
  0x25   : > { %1019 = vmatprep.mubr.msk.bf16.mxu1 %vm398_vm1, %v1070_v17 }
  0x2b   : > { %1004 = vmatmul.mubr.msk.bf16.gmra.mrb[12].mxu0 %vm398_vm1, %v1071_v18 }
  0x2c   : > { %1020 = vmatmul.mubr.msk.bf16.gmra.mrb[12].mxu1 %vm398_vm1, %v1072_v19 }
  0xe6   : > { %v993_v24 = vpop.f32.mrb[0].mxu0 }
  0xe7   : > { %v1009_v25 = vpop.f32.mrb[0].mxu1  ;;  %v610_v28 = vadd.f32 %v993_v24, %v232_v20  ;;  %v481_v30 = vpop.f32.mrb[1].mxu0  ;;  %v256_v20 = vld [vmem:[%s1148_s27 + $0xd0] sm:$0xff] }
  0xe8   : > { %v626_v29 = vadd.f32 %v1009_v25, %v248_v21  ;;  %v545_v31 = vpop.f32.mrb[1].mxu1  ;;  %v608_v34 = vadd.f32 %v481_v30, %v230_v22  ;;  %v994_v36 = vpop.f32.mrb[2].mxu0  ;;  %v238_v21 = vld [vmem:[%s1148_s27 + $0x40] sm:$0xff] }
  0xe9   : > { %v624_v35 = vadd.f32 %v545_v31, %v246_v23  ;;  %v1010_v37 = vpop.f32.mrb[2].mxu1  ;;  %643 = vst.msk [vmem:[%s1148_s27 + $0x10] sm:$0xff] %vm197_vm0, %v610_v28  ;;  %v611_v38 = vadd.f32 %v994_v36, %v233_v26  ;;  %v484_v40 = vpop.f32.mrb[3].mxu0 }
  0xea   : > { %659 = vst.msk [vmem:[%s1148_s27 + $0x90] sm:$0xff] %vm197_vm0, %v626_v29  ;;  %v627_v39 = vadd.f32 %v1010_v37, %v249_v27  ;;  %v548_v41 = vpop.f32.mrb[3].mxu1  ;;  %641 = vst.msk [vmem:[%s1148_s27] sm:$0xff] %vm197_vm0, %v608_v34  ;;  %v609_v42 = vadd.f32 %v484_v40, %v231_v32  ;;  %v254_v32 = vld [vmem:[%s1148_s27 + $0xc0] sm:$0xff]  ;;  %v241_v34 = vld [vmem:[%s1148_s27 + $0x58] sm:$0xff] }
  0xeb   : > { %657 = vst.msk [vmem:[%s1148_s27 + $0x80] sm:$0xff] %vm197_vm0, %v624_v35  ;;  %v625_v43 = vadd.f32 %v548_v41, %v247_v33  ;;  %644 = vst.msk [vmem:[%s1148_s27 + $0x18] sm:$0xff] %vm197_vm0, %v611_v38 }
  0xec   : > { %660 = vst.msk [vmem:[%s1148_s27 + $0x98] sm:$0xff] %vm197_vm0, %v627_v39  ;;  %642 = vst.msk [vmem:[%s1148_s27 + $0x8] sm:$0xff] %vm197_vm0, %v609_v42  ;;  %v257_v42 = vld [vmem:[%s1148_s27 + $0xd8] sm:$0xff] }
  0xed   : > { %658 = vst.msk [vmem:[%s1148_s27 + $0x88] sm:$0xff] %vm197_vm0, %v625_v43 }
  0xee   : > { %v997_v48 = vpop.f32.mrb[4].mxu0 }
  0xef   : > { %v1013_v49 = vpop.f32.mrb[4].mxu1  ;;  %v614_v50 = vadd.f32 %v997_v48, %v236_v44  ;;  %v497_v52 = vpop.f32.mrb[5].mxu0  ;;  %v239_v48 = vld [vmem:[%s1148_s27 + $0x48] sm:$0xff] }
  0xf0   : > { %v630_v51 = vadd.f32 %v1013_v49, %v252_v45  ;;  %v561_v53 = vpop.f32.mrb[5].mxu1  ;;  %v678_v56 = vld [vmem:[%s1148_s27 + $0x10] sm:$0xff]  ;;  %v612_v58 = vadd.f32 %v497_v52, %v234_v46  ;;  %v998_v60 = vpop.f32.mrb[6].mxu0  ;;  %v255_v49 = vld [vmem:[%s1148_s27 + $0xc8] sm:$0xff] }
  0xf1   : > { %v694_v57 = vld [vmem:[%s1148_s27 + $0x90] sm:$0xff]  ;;  %v628_v59 = vadd.f32 %v561_v53, %v250_v47  ;;  %v1014_v61 = vpop.f32.mrb[6].mxu1  ;;  %vm710_vm2 = vcmp.gt.f32.partialorder %v678_v56, 0.0  ;;  %v742_v62 = vmul.f32 0.2, %v678_v56  ;;  %647 = vst.msk [vmem:[%s1148_s27 + $0x30] sm:$0xff] %vm197_vm0, %v614_v50  ;;  %v615_v3 = vadd.f32 %v998_v60, %v237_v54 }
  0xf2   : > { %vm726_vm3 = vcmp.gt.f32.partialorder %v694_v57, 0.0  ;;  %v758_v63 = vmul.f32 0.2, %v694_v57  ;;  %663 = vst.msk [vmem:[%s1148_s27 + $0xb0] sm:$0xff] %vm197_vm0, %v630_v51  ;;  %v676_v0 = vld [vmem:[%s1148_s27] sm:$0xff]  ;;  %v679_v2 = vld [vmem:[%s1148_s27 + $0x18] sm:$0xff]  ;;  %v631_v4 = vadd.f32 %v1014_v61, %v253_v55 }
  0xf3   : > { %v692_v1 = vld [vmem:[%s1148_s27 + $0x80] sm:$0xff]  ;;  %645 = vst.msk [vmem:[%s1148_s27 + $0x20] sm:$0xff] %vm197_vm0, %v612_v58  ;;  %661 = vst.msk [vmem:[%s1148_s27 + $0xa0] sm:$0xff] %vm197_vm0, %v628_v59  ;;  %v500_v6 = vpop.f32.mrb[7].mxu0  ;;  %v564_v8 = vpop.f32.mrb[7].mxu1  ;;  %v774_v9 = vsel %vm710_vm2, %v678_v56, %v742_v62  ;;  %vm708_vm4 = vcmp.gt.f32.partialorder %v676_v0, 0.0 }
  0xf4   : > { %v790_v10 = vsel %vm726_vm3, %v694_v57, %v758_v63  ;;  %v740_v11 = vmul.f32 0.2, %v676_v0  ;;  %v695_v12 = vld [vmem:[%s1148_s27 + $0x98] sm:$0xff]  ;;  %v677_v13 = vld [vmem:[%s1148_s27 + $0x8] sm:$0xff]  ;;  %806 = vst.msk [vmem:[%s1148_s27 + $0x10] sm:$0xff] %vm197_vm0, %v774_v9  ;;  %vm724_vm5 = vcmp.gt.f32.partialorder %v692_v1, 0.0  ;;  %v613_v29 = vadd.f32 %v500_v6, %v235_v5 }
  0xf5   : > { %v693_v14 = vld [vmem:[%s1148_s27 + $0x88] sm:$0xff]  ;;  %822 = vst.msk [vmem:[%s1148_s27 + $0x90] sm:$0xff] %vm197_vm0, %v790_v10  ;;  %v756_v16 = vmul.f32 0.2, %v692_v1  ;;  %vm711_vm6 = vcmp.gt.f32.partialorder %v679_v2, 0.0  ;;  %648 = vst.msk [vmem:[%s1148_s27 + $0x38] sm:$0xff] %vm197_vm0, %v615_v3  ;;  %v629_v30 = vadd.f32 %v564_v8, %v251_v7 }
  0xf6   : > { %v743_v17 = vmul.f32 0.2, %v679_v2  ;;  %664 = vst.msk [vmem:[%s1148_s27 + $0xb8] sm:$0xff] %vm197_vm0, %v631_v4  ;;  %v772_v18 = vsel %vm708_vm4, %v676_v0, %v740_v11  ;;  %vm727_vm7 = vcmp.gt.f32.partialorder %v695_v12, 0.0  ;;  %v759_v19 = vmul.f32 0.2, %v695_v12 }
  0xf7   : > { %vm709_vm8 = vcmp.gt.f32.partialorder %v677_v13, 0.0  ;;  %804 = vst.msk [vmem:[%s1148_s27] sm:$0xff] %vm197_vm0, %v772_v18  ;;  %v788_v22 = vsel %vm724_vm5, %v692_v1, %v756_v16  ;;  %v741_v24 = vmul.f32 0.2, %v677_v13  ;;  %vm725_vm9 = vcmp.gt.f32.partialorder %v693_v14, 0.0  ;;  %v1001_v25 = vpop.f32.mrb[8].mxu0 }
  0xf8   : > { %v775_v23 = vsel %vm711_vm6, %v679_v2, %v743_v17  ;;  %v1017_v26 = vpop.f32.mrb[8].mxu1  ;;  %820 = vst.msk [vmem:[%s1148_s27 + $0x80] sm:$0xff] %vm197_vm0, %v788_v22  ;;  %v791_v27 = vsel %vm727_vm7, %v695_v12, %v759_v19  ;;  %v757_v28 = vmul.f32 0.2, %v693_v14  ;;  %v513_v31 = vpop.f32.mrb[9].mxu0  ;;  %v682_v36 = vld [vmem:[%s1148_s27 + $0x30] sm:$0xff]  ;;  %v618_v38 = vadd.f32 %v1001_v25, %v240_v15 }
  0xf9   : > { %807 = vst.msk [vmem:[%s1148_s27 + $0x18] sm:$0xff] %vm197_vm0, %v775_v23  ;;  %v577_v33 = vpop.f32.mrb[9].mxu1  ;;  %823 = vst.msk [vmem:[%s1148_s27 + $0x98] sm:$0xff] %vm197_vm0, %v791_v27  ;;  %v773_v35 = vsel %vm709_vm8, %v677_v13, %v741_v24  ;;  %v698_v37 = vld [vmem:[%s1148_s27 + $0xb0] sm:$0xff]  ;;  %v634_v39 = vadd.f32 %v1017_v26, %v256_v20  ;;  %v616_v40 = vadd.f32 %v513_v31, %v238_v21  ;;  %v1002_v41 = vpop.f32.mrb[10].mxu0  ;;  %vm714_vm10 = vcmp.gt.f32.partialorder %v682_v36, 0.0 }
  0xfa   : > { %v1018_v43 = vpop.f32.mrb[10].mxu1  ;;  %805 = vst.msk [vmem:[%s1148_s27 + $0x8] sm:$0xff] %vm197_vm0, %v773_v35  ;;  %v789_v44 = vsel %vm725_vm9, %v693_v14, %v757_v28  ;;  %v746_v45 = vmul.f32 0.2, %v682_v36  ;;  %vm730_vm11 = vcmp.gt.f32.partialorder %v698_v37, 0.0  ;;  %v680_v46 = vld [vmem:[%s1148_s27 + $0x20] sm:$0xff]  ;;  %v632_v56 = vadd.f32 %v577_v33, %v254_v32 }
  0xfb   : > { %v696_v47 = vld [vmem:[%s1148_s27 + $0xa0] sm:$0xff]  ;;  %646 = vst.msk [vmem:[%s1148_s27 + $0x28] sm:$0xff] %vm197_vm0, %v613_v29  ;;  %662 = vst.msk [vmem:[%s1148_s27 + $0xa8] sm:$0xff] %vm197_vm0, %v629_v30  ;;  %v762_v50 = vmul.f32 0.2, %v698_v37  ;;  %vm712_vm12 = vcmp.gt.f32.partialorder %v680_v46, 0.0  ;;  %v619_v57 = vadd.f32 %v1002_v41, %v241_v34  ;;  %v635_v3 = vadd.f32 %v1018_v43, %v257_v42 }
  0xfc   : > { %821 = vst.msk [vmem:[%s1148_s27 + $0x88] sm:$0xff] %vm197_vm0, %v789_v44  ;;  %v744_v51 = vmul.f32 0.2, %v680_v46  ;;  %vm728_vm13 = vcmp.gt.f32.partialorder %v696_v47, 0.0  ;;  %651 = vst.msk [vmem:[%s1148_s27 + $0x50] sm:$0xff] %vm197_vm0, %v618_v38  ;;  %v778_v52 = vsel %vm714_vm10, %v682_v36, %v746_v45  ;;  %v683_v54 = vld [vmem:[%s1148_s27 + $0x38] sm:$0xff] }
  0xfd   : > { %667 = vst.msk [vmem:[%s1148_s27 + $0xd0] sm:$0xff] %vm197_vm0, %v634_v39  ;;  %649 = vst.msk [vmem:[%s1148_s27 + $0x40] sm:$0xff] %vm197_vm0, %v616_v40  ;;  %v760_v53 = vmul.f32 0.2, %v696_v47  ;;  %v699_v55 = vld [vmem:[%s1148_s27 + $0xb8] sm:$0xff]  ;;  %v516_v58 = vpop.f32.mrb[11].mxu0  ;;  %v794_v60 = vsel %vm730_vm11, %v698_v37, %v762_v50 }
  0xfe   : > { %v580_v59 = vpop.f32.mrb[11].mxu1  ;;  %810 = vst.msk [vmem:[%s1148_s27 + $0x30] sm:$0xff] %vm197_vm0, %v778_v52  ;;  %v776_v61 = vsel %vm712_vm12, %v680_v46, %v744_v51  ;;  %vm715_vm14 = vcmp.gt.f32.partialorder %v683_v54, 0.0  ;;  %v747_v62 = vmul.f32 0.2, %v683_v54  ;;  %v244_v63 = vld [vmem:[%s1148_s27 + $0x70] sm:$0xff]  ;;  %v617_v7 = vadd.f32 %v516_v58, %v239_v48 }
  0xff   : > { %v260_v0 = vld [vmem:[%s1148_s27 + $0xf0] sm:$0xff]  ;;  %826 = vst.msk [vmem:[%s1148_s27 + $0xb0] sm:$0xff] %vm197_vm0, %v794_v60  ;;  %808 = vst.msk [vmem:[%s1148_s27 + $0x20] sm:$0xff] %vm197_vm0, %v776_v61  ;;  %v792_v1 = vsel %vm728_vm13, %v696_v47, %v760_v53  ;;  %vm731_vm15 = vcmp.gt.f32.partialorder %v699_v55, 0.0  ;;  %v763_v2 = vmul.f32 0.2, %v699_v55  ;;  %v633_v8 = vadd.f32 %v580_v59, %v255_v49 }
 0x100   : > { %665 = vst.msk [vmem:[%s1148_s27 + $0xc0] sm:$0xff] %vm197_vm0, %v632_v56  ;;  %652 = vst.msk [vmem:[%s1148_s27 + $0x58] sm:$0xff] %vm197_vm0, %v619_v57  ;;  %v242_v4 = vld [vmem:[%s1148_s27 + $0x60] sm:$0xff]  ;;  %v779_v6 = vsel %vm715_vm14, %v683_v54, %v747_v62  ;;  %v1005_v9 = vpop.f32.mrb[12].mxu0  ;;  %v1021_v10 = vpop.f32.mrb[12].mxu1  ;;  %v245_v16 = vld [vmem:[%s1148_s27 + $0x78] sm:$0xff] }
 0x101   : > { %v258_v5 = vld [vmem:[%s1148_s27 + $0xe0] sm:$0xff]  ;;  %824 = vst.msk [vmem:[%s1148_s27 + $0xa0] sm:$0xff] %vm197_vm0, %v792_v1  ;;  %811 = vst.msk [vmem:[%s1148_s27 + $0x38] sm:$0xff] %vm197_vm0, %v779_v6  ;;  %v795_v11 = vsel %vm731_vm15, %v699_v55, %v763_v2  ;;  %v622_v12 = vadd.f32 %v1005_v9, %v244_v63  ;;  %v638_v13 = vadd.f32 %v1021_v10, %v260_v0  ;;  %v529_v14 = vpop.f32.mrb[13].mxu0  ;;  %v593_v15 = vpop.f32.mrb[13].mxu1  ;;  %v261_v17 = vld [vmem:[%s1148_s27 + $0xf8] sm:$0xff] }
 0x102   : > { %668 = vst.msk [vmem:[%s1148_s27 + $0xd8] sm:$0xff] %vm197_vm0, %v635_v3  ;;  %827 = vst.msk [vmem:[%s1148_s27 + $0xb8] sm:$0xff] %vm197_vm0, %v795_v11  ;;  %v681_v18 = vld [vmem:[%s1148_s27 + $0x28] sm:$0xff]  ;;  %v620_v20 = vadd.f32 %v529_v14, %v242_v4  ;;  %v636_v21 = vadd.f32 %v593_v15, %v258_v5  ;;  %v1006_v22 = vpop.f32.mrb[14].mxu0  ;;  %v1022_v23 = vpop.f32.mrb[14].mxu1 }
 0x103   : > { %v697_v19 = vld [vmem:[%s1148_s27 + $0xa8] sm:$0xff]  ;;  %650 = vst.msk [vmem:[%s1148_s27 + $0x48] sm:$0xff] %vm197_vm0, %v617_v7  ;;  %666 = vst.msk [vmem:[%s1148_s27 + $0xc8] sm:$0xff] %vm197_vm0, %v633_v8  ;;  %vm713_vm1 = vcmp.gt.f32.partialorder %v681_v18, 0.0  ;;  %v745_v26 = vmul.f32 0.2, %v681_v18  ;;  %v623_v31 = vadd.f32 %v1006_v22, %v245_v16  ;;  %v639_v32 = vadd.f32 %v1022_v23, %v261_v17 }
 0x104   : > { %v243_v24 = vld [vmem:[%s1148_s27 + $0x68] sm:$0xff]  ;;  %vm729_vm2 = vcmp.gt.f32.partialorder %v697_v19, 0.0  ;;  %v761_v27 = vmul.f32 0.2, %v697_v19  ;;  %655 = vst.msk [vmem:[%s1148_s27 + $0x70] sm:$0xff] %vm197_vm0, %v622_v12  ;;  %671 = vst.msk [vmem:[%s1148_s27 + $0xf0] sm:$0xff] %vm197_vm0, %v638_v13 }
 0x105   : > { %v259_v25 = vld [vmem:[%s1148_s27 + $0xe8] sm:$0xff]  ;;  %v686_v28 = vld [vmem:[%s1148_s27 + $0x50] sm:$0xff]  ;;  %v684_v30 = vld [vmem:[%s1148_s27 + $0x40] sm:$0xff]  ;;  %653 = vst.msk [vmem:[%s1148_s27 + $0x60] sm:$0xff] %vm197_vm0, %v620_v20  ;;  %v532_v33 = vpop.f32.mrb[15].mxu0  ;;  %v596_v34 = vpop.f32.mrb[15].mxu1  ;;  %v777_v35 = vsel %vm713_vm1, %v681_v18, %v745_v26 }
 0x106   : > { %v702_v29 = vld [vmem:[%s1148_s27 + $0xd0] sm:$0xff]  ;;  %669 = vst.msk [vmem:[%s1148_s27 + $0xe0] sm:$0xff] %vm197_vm0, %v636_v21  ;;  %v793_v36 = vsel %vm729_vm2, %v697_v19, %v761_v27  ;;  %vm718_vm3 = vcmp.gt.f32.partialorder %v686_v28, 0.0  ;;  %v750_v37 = vmul.f32 0.2, %v686_v28  ;;  %809 = vst.msk [vmem:[%s1148_s27 + $0x28] sm:$0xff] %vm197_vm0, %v777_v35  ;;  %v621_v43 = vadd.f32 %v532_v33, %v243_v24 }
 0x107   : > { %825 = vst.msk [vmem:[%s1148_s27 + $0xa8] sm:$0xff] %vm197_vm0, %v793_v36  ;;  %vm734_vm4 = vcmp.gt.f32.partialorder %v702_v29, 0.0  ;;  %v766_v38 = vmul.f32 0.2, %v702_v29  ;;  %vm716_vm5 = vcmp.gt.f32.partialorder %v684_v30, 0.0  ;;  %656 = vst.msk [vmem:[%s1148_s27 + $0x78] sm:$0xff] %vm197_vm0, %v623_v31  ;;  %v637_v44 = vadd.f32 %v596_v34, %v259_v25 }
 0x108   : > { %v748_v39 = vmul.f32 0.2, %v684_v30  ;;  %672 = vst.msk [vmem:[%s1148_s27 + $0xf8] sm:$0xff] %vm197_vm0, %v639_v32  ;;  %v782_v40 = vsel %vm718_vm3, %v686_v28, %v750_v37  ;;  %v700_v41 = vld [vmem:[%s1148_s27 + $0xc0] sm:$0xff]  ;;  %v687_v42 = vld [vmem:[%s1148_s27 + $0x58] sm:$0xff]  ;;  %654 = vst.msk [vmem:[%s1148_s27 + $0x68] sm:$0xff] %vm197_vm0, %v621_v43 }
 0x109   : > { %814 = vst.msk [vmem:[%s1148_s27 + $0x50] sm:$0xff] %vm197_vm0, %v782_v40  ;;  %v798_v45 = vsel %vm734_vm4, %v702_v29, %v766_v38  ;;  %vm732_vm6 = vcmp.gt.f32.partialorder %v700_v41, 0.0  ;;  %v764_v47 = vmul.f32 0.2, %v700_v41  ;;  %v703_v48 = vld [vmem:[%s1148_s27 + $0xd8] sm:$0xff]  ;;  %vm719_vm7 = vcmp.gt.f32.partialorder %v687_v42, 0.0 }
 0x10a   : > { %v780_v46 = vsel %vm716_vm5, %v684_v30, %v748_v39  ;;  %830 = vst.msk [vmem:[%s1148_s27 + $0xd0] sm:$0xff] %vm197_vm0, %v798_v45  ;;  %v751_v49 = vmul.f32 0.2, %v687_v42  ;;  %vm735_vm8 = vcmp.gt.f32.partialorder %v703_v48, 0.0  ;;  %v767_v50 = vmul.f32 0.2, %v703_v48 }
 0x10b   : > { %812 = vst.msk [vmem:[%s1148_s27 + $0x40] sm:$0xff] %vm197_vm0, %v780_v46  ;;  %670 = vst.msk [vmem:[%s1148_s27 + $0xe8] sm:$0xff] %vm197_vm0, %v637_v44  ;;  %v796_v51 = vsel %vm732_vm6, %v700_v41, %v764_v47  ;;  %v685_v52 = vld [vmem:[%s1148_s27 + $0x48] sm:$0xff]  ;;  %v690_v54 = vld [vmem:[%s1148_s27 + $0x70] sm:$0xff] }
 0x10c   : > { %v701_v53 = vld [vmem:[%s1148_s27 + $0xc8] sm:$0xff]  ;;  %828 = vst.msk [vmem:[%s1148_s27 + $0xc0] sm:$0xff] %vm197_vm0, %v796_v51  ;;  %v783_v55 = vsel %vm719_vm7, %v687_v42, %v751_v49  ;;  %v799_v56 = vsel %vm735_vm8, %v703_v48, %v767_v50  ;;  %vm717_vm9 = vcmp.gt.f32.partialorder %v685_v52, 0.0  ;;  %v749_v57 = vmul.f32 0.2, %v685_v52  ;;  %v706_v58 = vld [vmem:[%s1148_s27 + $0xf0] sm:$0xff] }
 0x10d   : > { %v688_v59 = vld [vmem:[%s1148_s27 + $0x60] sm:$0xff]  ;;  %815 = vst.msk [vmem:[%s1148_s27 + $0x58] sm:$0xff] %vm197_vm0, %v783_v55  ;;  %831 = vst.msk [vmem:[%s1148_s27 + $0xd8] sm:$0xff] %vm197_vm0, %v799_v56  ;;  %vm733_vm10 = vcmp.gt.f32.partialorder %v701_v53, 0.0  ;;  %v765_v61 = vmul.f32 0.2, %v701_v53 }
 0x10e   : > { %v704_v60 = vld [vmem:[%s1148_s27 + $0xe0] sm:$0xff]  ;;  %vm722_vm11 = vcmp.gt.f32.partialorder %v690_v54, 0.0  ;;  %v754_v62 = vmul.f32 0.2, %v690_v54  ;;  %v781_v63 = vsel %vm717_vm9, %v685_v52, %v749_v57  ;;  %vm738_vm12 = vcmp.gt.f32.partialorder %v706_v58, 0.0  ;;  %v691_v1 = vld [vmem:[%s1148_s27 + $0x78] sm:$0xff] }
 0x10f   : > { %v770_v0 = vmul.f32 0.2, %v706_v58  ;;  %vm720_vm13 = vcmp.gt.f32.partialorder %v688_v59, 0.0  ;;  %v707_v2 = vld [vmem:[%s1148_s27 + $0xf8] sm:$0xff]  ;;  %813 = vst.msk [vmem:[%s1148_s27 + $0x48] sm:$0xff] %vm197_vm0, %v781_v63  ;;  %v797_v3 = vsel %vm733_vm10, %v701_v53, %v765_v61  ;;  %vm736_vm14 = vcmp.gt.f32.partialorder %v704_v60, 0.0 }
 0x110   : > { %v786_v4 = vsel %vm722_vm11, %v690_v54, %v754_v62  ;;  %v752_v5 = vmul.f32 0.2, %v688_v59  ;;  %829 = vst.msk [vmem:[%s1148_s27 + $0xc8] sm:$0xff] %vm197_vm0, %v797_v3  ;;  %v768_v7 = vmul.f32 0.2, %v704_v60  ;;  %vm723_vm15 = vcmp.gt.f32.partialorder %v691_v1, 0.0 }
 0x111   : > { %818 = vst.msk [vmem:[%s1148_s27 + $0x70] sm:$0xff] %vm197_vm0, %v786_v4  ;;  %v802_v6 = vsel %vm738_vm12, %v706_v58, %v770_v0  ;;  %v755_v8 = vmul.f32 0.2, %v691_v1  ;;  %vm739_vm1 = vcmp.gt.f32.partialorder %v707_v2, 0.0  ;;  %v771_v10 = vmul.f32 0.2, %v707_v2 }
 0x112   : > { %834 = vst.msk [vmem:[%s1148_s27 + $0xf0] sm:$0xff] %vm197_vm0, %v802_v6  ;;  %v784_v9 = vsel %vm720_vm13, %v688_v59, %v752_v5  ;;  %v689_v11 = vld [vmem:[%s1148_s27 + $0x68] sm:$0xff]  ;;  %v800_v13 = vsel %vm736_vm14, %v704_v60, %v768_v7 }
 0x113   : > { %v705_v12 = vld [vmem:[%s1148_s27 + $0xe8] sm:$0xff]  ;;  %816 = vst.msk [vmem:[%s1148_s27 + $0x60] sm:$0xff] %vm197_vm0, %v784_v9  ;;  %v787_v14 = vsel %vm723_vm15, %v691_v1, %v755_v8  ;;  %vm721_vm2 = vcmp.gt.f32.partialorder %v689_v11, 0.0  ;;  %v753_v15 = vmul.f32 0.2, %v689_v11  ;;  %832 = vst.msk [vmem:[%s1148_s27 + $0xe0] sm:$0xff] %vm197_vm0, %v800_v13  ;;  %v803_v16 = vsel %vm739_vm1, %v707_v2, %v771_v10 }
 0x114   : > { %819 = vst.msk [vmem:[%s1148_s27 + $0x78] sm:$0xff] %vm197_vm0, %v787_v14  ;;  %vm737_vm3 = vcmp.gt.f32.partialorder %v705_v12, 0.0  ;;  %v769_v17 = vmul.f32 0.2, %v705_v12  ;;  %835 = vst.msk [vmem:[%s1148_s27 + $0xf8] sm:$0xff] %vm197_vm0, %v803_v16 }
 0x115   : > { %v785_v18 = vsel %vm721_vm2, %v689_v11, %v753_v15 }
 0x116   : > { %817 = vst.msk [vmem:[%s1148_s27 + $0x68] sm:$0xff] %vm197_vm0, %v785_v18  ;;  %v801_v19 = vsel %vm737_vm3, %v705_v12, %v769_v17 }
 0x117   : > { %833 = vst.msk [vmem:[%s1148_s27 + $0xe8] sm:$0xff] %vm197_vm0, %v801_v19 }
 0x118 PF: > { %s12_s11 = sadd.s32 1, %s1095_s11   ;;  %s1458_s9 = smov %s1091_s10 }
 0x119   : > { %p9_p5 = scmp.ge.s32.totalorder %s12_s11, 10   ;;  %s1459_s10 = smov %s1461_s12 }
 0x11b   :  { %11 = sbr.rel (!%p9_p5) target bundleno = 2 (0x2), region = 69 }

// kernel: image_encoder_forward.10
= control target key start
LH: loop header
LB: loop body
LE: loop exit
PB: predicated region body
PF: predicated region fallthrough
CT: control target
= control target key end

     0   :  { %s804_s12 = smov 0   ;;  %s952_s0 = inlined_call_operand.vmem [shape: f32[512,128], index: 0, kind: input, shape index: {}]   ;;  %s953_s1 = inlined_call_operand.vmem [shape: f32[1,128], index: 1, kind: input, shape index: {}]   ;;  %s954_s2 = inlined_call_operand.vmem [shape: f32[1,128], index: 2, kind: input, shape index: {}]   ;;  %s955_s3 = inlined_call_operand.vmem [shape: bf16[512,128], index: 3, kind: output, shape index: {}]  }
   0x1 LB: > { %s596_s13 = sadd.s32 4294967295, %s782_s12   ;;  %p600_p0 = scmp.ge.s32.totalorder %s782_s12, 1  ;;  %s782_s12 = sphi %s804_s12, %s13_s12  }
   0x2   : > { %p138_p1 = scmp.lt.s32.totalorder %s782_s12, 3 }
   0x4   : > { %p139_p2 = pnand %p600_p0, %p138_p1 }
   0x5   : > { %s601_s14 = sshll.u32 (!%p139_p2), %s596_s13, 5  ;;  %v818_v0 = vld [vmem:[%s953_s1] ss:$0 sm:$0xff] (!%p139_p2) }
   0x6   : > { %142 = sbr.rel (%p139_p2) target bundleno = 67 (0x43), region = 32  ;;  %p163_p3 = scmp.lt.s32.totalorder (!%p139_p2), %s601_s14, 63  ;;  %v828_v1 = vld [vmem:[%s954_s2] ss:$0 sm:$0xff] (!%p139_p2) }
   0xd   : > { %s957_s14 = smov (!%p163_p3, %s601_s14), 63 }
   0xe   : > { %s602_s15 = sshll.u32 %s957_s14, 3  ;;  %s604_s23 = sshll.u32 %s957_s14, 2 }
   0xf   : > { %s823_s20 = scalar_lea.vmem %s952_s0, %s602_s15  ;;  %s856_s26 = scalar_lea.vmem %s955_s3, %s604_s23 }
  0x10   : > { %v174_v2 = vld [vmem:[%s823_s20] sm:$0xff]  ;;  %v175_v3 = vld [vmem:[%s823_s20 + $0x8] sm:$0xff]  ;;  %v176_v4 = vld [vmem:[%s823_s20 + $0x10] sm:$0xff] }
  0x11   : > { %v213_v5 = vmul.f32 %v818_v0, %v174_v2  ;;  %v214_v6 = vmul.f32 %v818_v0, %v175_v3  ;;  %v177_v7 = vld [vmem:[%s823_s20 + $0x18] sm:$0xff]  ;;  %v215_v8 = vmul.f32 %v818_v0, %v176_v4  ;;  %v178_v9 = vld [vmem:[%s823_s20 + $0x20] sm:$0xff]  ;;  %v179_v10 = vld [vmem:[%s823_s20 + $0x28] sm:$0xff] }
  0x12   : > { %v216_v11 = vmul.f32 %v818_v0, %v177_v7  ;;  %v217_v12 = vmul.f32 %v818_v0, %v178_v9  ;;  %v218_v13 = vmul.f32 %v818_v0, %v179_v10  ;;  %v180_v14 = vld [vmem:[%s823_s20 + $0x30] sm:$0xff]  ;;  %v181_v15 = vld [vmem:[%s823_s20 + $0x38] sm:$0xff]  ;;  %v182_v30 = vld [vmem:[%s823_s20 + $0x40] sm:$0xff] }
  0x13   : > { %v252_v16 = vadd.f32 %v828_v1, %v213_v5  ;;  %v253_v17 = vadd.f32 %v828_v1, %v214_v6  ;;  %v254_v18 = vadd.f32 %v828_v1, %v215_v8  ;;  %v219_v19 = vmul.f32 %v818_v0, %v180_v14  ;;  %v183_v31 = vld [vmem:[%s823_s20 + $0x48] sm:$0xff]  ;;  %v184_v32 = vld [vmem:[%s823_s20 + $0x50] sm:$0xff]  ;;  %v185_v44 = vld [vmem:[%s823_s20 + $0x58] sm:$0xff] }
  0x14   : > { %v255_v20 = vadd.f32 %v828_v1, %v216_v11  ;;  %v256_v21 = vadd.f32 %v828_v1, %v217_v12  ;;  %v257_v22 = vadd.f32 %v828_v1, %v218_v13  ;;  %v220_v23 = vmul.f32 %v818_v0, %v181_v15  ;;  %v186_v46 = vld [vmem:[%s823_s20 + $0x60] sm:$0xff]  ;;  %v187_v56 = vld [vmem:[%s823_s20 + $0x68] sm:$0xff]  ;;  %v188_v60 = vld [vmem:[%s823_s20 + $0x70] sm:$0xff] }
  0x15   : > { %vm284_vm0 = vcmp.gt.f32.partialorder %v252_v16, 0.0  ;;  %vm285_vm1 = vcmp.gt.f32.partialorder %v253_v17, 0.0  ;;  %v316_v24 = vmul.f32 0.2, %v252_v16  ;;  %v317_v25 = vmul.f32 0.2, %v253_v17 }
  0x16   : > { %vm286_vm2 = vcmp.gt.f32.partialorder %v254_v18, 0.0  ;;  %vm287_vm3 = vcmp.gt.f32.partialorder %v255_v20, 0.0  ;;  %v318_v26 = vmul.f32 0.2, %v254_v18  ;;  %v319_v27 = vmul.f32 0.2, %v255_v20 }
  0x17   : > { %v348_v28 = vsel %vm284_vm0, %v252_v16, %v316_v24  ;;  %v349_v29 = vsel %vm285_vm1, %v253_v17, %v317_v25  ;;  %vm288_vm4 = vcmp.gt.f32.partialorder %v256_v21, 0.0  ;;  %vm289_vm5 = vcmp.gt.f32.partialorder %v257_v22, 0.0  ;;  %v189_v6 = vld [vmem:[%s823_s20 + $0x78] sm:$0xff]  ;;  %v190_v10 = vld [vmem:[%s823_s20 + $0x80] sm:$0xff] }
  0x18   : > { %v676_v33 = vpack.c.bf16 %v349_v29, %v348_v28  ;;  %v350_v34 = vsel %vm286_vm2, %v254_v18, %v318_v26  ;;  %v351_v35 = vsel %vm287_vm3, %v255_v20, %v319_v27  ;;  %v320_v36 = vmul.f32 0.2, %v256_v21  ;;  %v191_v18 = vld [vmem:[%s823_s20 + $0x88] sm:$0xff]  ;;  %v193_v26 = vld [vmem:[%s823_s20 + $0x98] sm:$0xff] }
  0x19   : > { %v681_v37 = vpack.c.bf16 %v351_v35, %v350_v34  ;;  %v321_v38 = vmul.f32 0.2, %v257_v22  ;;  %v258_v39 = vadd.f32 %v828_v1, %v219_v19  ;;  %v259_v40 = vadd.f32 %v828_v1, %v220_v23  ;;  %v192_v19 = vld [vmem:[%s823_s20 + $0x90] sm:$0xff] }
  0x1a   : > { %677 = vst [vmem:[%s856_s26] sm:$0xff] %v676_v33   ;;  %v352_v41 = vsel %vm288_vm4, %v256_v21, %v320_v36  ;;  %v221_v42 = vmul.f32 %v818_v0, %v182_v30  ;;  %v222_v43 = vmul.f32 %v818_v0, %v183_v31  ;;  %v223_v45 = vmul.f32 %v818_v0, %v184_v32  ;;  %v194_v31 = vld [vmem:[%s823_s20 + $0xa0] sm:$0xff]  ;;  %v195_v32 = vld [vmem:[%s823_s20 + $0xa8] sm:$0xff] }
  0x1b   : > { %753 = vst [vmem:[%s856_s26 + $0x8] sm:$0xff] %v681_v37   ;;  %v353_v47 = vsel %vm289_vm5, %v257_v22, %v321_v38  ;;  %vm290_vm6 = vcmp.gt.f32.partialorder %v258_v39, 0.0  ;;  %vm291_vm7 = vcmp.gt.f32.partialorder %v259_v40, 0.0  ;;  %v322_v48 = vmul.f32 0.2, %v258_v39 }
  0x1c   : > { %v686_v49 = vpack.c.bf16 %v353_v47, %v352_v41  ;;  %v323_v50 = vmul.f32 0.2, %v259_v40  ;;  %v260_v51 = vadd.f32 %v828_v1, %v221_v42  ;;  %v261_v52 = vadd.f32 %v828_v1, %v222_v43  ;;  %v196_v43 = vld [vmem:[%s823_s20 + $0xb0] sm:$0xff] }
  0x1d   : > { %v354_v53 = vsel %vm290_vm6, %v258_v39, %v322_v48  ;;  %v224_v54 = vmul.f32 %v818_v0, %v185_v44  ;;  %v262_v55 = vadd.f32 %v828_v1, %v223_v45  ;;  %v225_v57 = vmul.f32 %v818_v0, %v186_v46  ;;  %v197_v44 = vld [vmem:[%s823_s20 + $0xb8] sm:$0xff] }
  0x1e   : > { %754 = vst [vmem:[%s856_s26 + $0x10] sm:$0xff] %v686_v49   ;;  %v355_v58 = vsel %vm291_vm7, %v259_v40, %v323_v50  ;;  %vm292_vm8 = vcmp.gt.f32.partialorder %v260_v51, 0.0  ;;  %vm293_vm9 = vcmp.gt.f32.partialorder %v261_v52, 0.0  ;;  %v324_v59 = vmul.f32 0.2, %v260_v51 }
  0x1f   : > { %v691_v61 = vpack.c.bf16 %v355_v58, %v354_v53  ;;  %v325_v62 = vmul.f32 0.2, %v261_v52  ;;  %v263_v63 = vadd.f32 %v828_v1, %v224_v54  ;;  %vm294_vm10 = vcmp.gt.f32.partialorder %v262_v55, 0.0 }
  0x20   : > { %v356_v2 = vsel %vm292_vm8, %v260_v51, %v324_v59  ;;  %v326_v3 = vmul.f32 0.2, %v262_v55  ;;  %v226_v4 = vmul.f32 %v818_v0, %v187_v56  ;;  %v264_v5 = vadd.f32 %v828_v1, %v225_v57  ;;  %v199_v59 = vld [vmem:[%s823_s20 + $0xc8] sm:$0xff] }
  0x21   : > { %755 = vst [vmem:[%s856_s26 + $0x18] sm:$0xff] %v691_v61   ;;  %v357_v7 = vsel %vm293_vm9, %v261_v52, %v325_v62  ;;  %vm295_vm11 = vcmp.gt.f32.partialorder %v263_v63, 0.0  ;;  %v327_v8 = vmul.f32 0.2, %v263_v63  ;;  %v227_v9 = vmul.f32 %v818_v0, %v188_v60 }
  0x22   : > { %v696_v11 = vpack.c.bf16 %v357_v7, %v356_v2  ;;  %v358_v12 = vsel %vm294_vm10, %v262_v55, %v326_v3  ;;  %v265_v13 = vadd.f32 %v828_v1, %v226_v4  ;;  %vm296_vm12 = vcmp.gt.f32.partialorder %v264_v5, 0.0  ;;  %v198_v55 = vld [vmem:[%s823_s20 + $0xc0] sm:$0xff]  ;;  %v200_v4 = vld [vmem:[%s823_s20 + $0xd0] sm:$0xff] }
  0x23   : > { %v359_v14 = vsel %vm295_vm11, %v263_v63, %v327_v8  ;;  %v328_v15 = vmul.f32 0.2, %v264_v5  ;;  %v228_v16 = vmul.f32 %v818_v0, %v189_v6  ;;  %v266_v17 = vadd.f32 %v828_v1, %v227_v9  ;;  %v201_v9 = vld [vmem:[%s823_s20 + $0xd8] sm:$0xff] }
  0x24   : > { %756 = vst [vmem:[%s856_s26 + $0x20] sm:$0xff] %v696_v11   ;;  %v701_v20 = vpack.c.bf16 %v359_v14, %v358_v12  ;;  %vm297_vm13 = vcmp.gt.f32.partialorder %v265_v13, 0.0  ;;  %v329_v21 = vmul.f32 0.2, %v265_v13  ;;  %v229_v22 = vmul.f32 %v818_v0, %v190_v10  ;;  %v202_v10 = vld [vmem:[%s823_s20 + $0xe0] sm:$0xff]  ;;  %v203_v11 = vld [vmem:[%s823_s20 + $0xe8] sm:$0xff] }
  0x25   : > { %v360_v23 = vsel %vm296_vm12, %v264_v5, %v328_v15  ;;  %v267_v24 = vadd.f32 %v828_v1, %v228_v16  ;;  %vm298_vm14 = vcmp.gt.f32.partialorder %v266_v17, 0.0  ;;  %v330_v25 = vmul.f32 0.2, %v266_v17 }
  0x26   : > { %757 = vst [vmem:[%s856_s26 + $0x28] sm:$0xff] %v701_v20   ;;  %v361_v27 = vsel %vm297_vm13, %v265_v13, %v329_v21  ;;  %v230_v28 = vmul.f32 %v818_v0, %v191_v18  ;;  %v268_v29 = vadd.f32 %v828_v1, %v229_v22  ;;  %v231_v30 = vmul.f32 %v818_v0, %v192_v19  ;;  %v204_v22 = vld [vmem:[%s823_s20 + $0xf0] sm:$0xff] }
  0x27   : > { %v706_v33 = vpack.c.bf16 %v361_v27, %v360_v23  ;;  %vm299_vm15 = vcmp.gt.f32.partialorder %v267_v24, 0.0  ;;  %v331_v34 = vmul.f32 0.2, %v267_v24  ;;  %v362_v35 = vsel %vm298_vm14, %v266_v17, %v330_v25 }
  0x28   : > { %v269_v36 = vadd.f32 %v828_v1, %v230_v28  ;;  %vm300_vm0 = vcmp.gt.f32.partialorder %v268_v29, 0.0  ;;  %v332_v37 = vmul.f32 0.2, %v268_v29  ;;  %v232_v38 = vmul.f32 %v818_v0, %v193_v26 }
  0x29   : > { %758 = vst [vmem:[%s856_s26 + $0x30] sm:$0xff] %v706_v33   ;;  %v363_v39 = vsel %vm299_vm15, %v267_v24, %v331_v34  ;;  %v270_v40 = vadd.f32 %v828_v1, %v231_v30  ;;  %v233_v41 = vmul.f32 %v818_v0, %v194_v31  ;;  %v234_v42 = vmul.f32 %v818_v0, %v195_v32  ;;  %v205_v32 = vld [vmem:[%s823_s20 + $0xf8] sm:$0xff] }
  0x2a   : > { %v711_v45 = vpack.c.bf16 %v363_v39, %v362_v35  ;;  %vm301_vm1 = vcmp.gt.f32.partialorder %v269_v36, 0.0  ;;  %v333_v46 = vmul.f32 0.2, %v269_v36  ;;  %v364_v47 = vsel %vm300_vm0, %v268_v29, %v332_v37 }
  0x2b   : > { %v271_v48 = vadd.f32 %v828_v1, %v232_v38  ;;  %vm302_vm2 = vcmp.gt.f32.partialorder %v270_v40, 0.0  ;;  %v334_v49 = vmul.f32 0.2, %v270_v40  ;;  %v272_v50 = vadd.f32 %v828_v1, %v233_v41 }
  0x2c   : > { %759 = vst [vmem:[%s856_s26 + $0x38] sm:$0xff] %v711_v45   ;;  %v365_v51 = vsel %vm301_vm1, %v269_v36, %v333_v46  ;;  %v273_v52 = vadd.f32 %v828_v1, %v234_v42  ;;  %v235_v53 = vmul.f32 %v818_v0, %v196_v43  ;;  %v236_v54 = vmul.f32 %v818_v0, %v197_v44 }
  0x2d   : > { %v716_v56 = vpack.c.bf16 %v365_v51, %v364_v47  ;;  %vm303_vm3 = vcmp.gt.f32.partialorder %v271_v48, 0.0  ;;  %v335_v57 = vmul.f32 0.2, %v271_v48  ;;  %v366_v58 = vsel %vm302_vm2, %v270_v40, %v334_v49 }
  0x2e   : > { %vm304_vm4 = vcmp.gt.f32.partialorder %v272_v50, 0.0  ;;  %vm305_vm5 = vcmp.gt.f32.partialorder %v273_v52, 0.0  ;;  %v336_v60 = vmul.f32 0.2, %v272_v50  ;;  %v337_v61 = vmul.f32 0.2, %v273_v52 }
  0x2f   : > { %760 = vst [vmem:[%s856_s26 + $0x40] sm:$0xff] %v716_v56   ;;  %v367_v62 = vsel %vm303_vm3, %v271_v48, %v335_v57  ;;  %v274_v63 = vadd.f32 %v828_v1, %v235_v53  ;;  %v275_v2 = vadd.f32 %v828_v1, %v236_v54  ;;  %v237_v3 = vmul.f32 %v818_v0, %v198_v55 }
  0x30   : > { %v721_v5 = vpack.c.bf16 %v367_v62, %v366_v58  ;;  %v368_v6 = vsel %vm304_vm4, %v272_v50, %v336_v60  ;;  %v369_v7 = vsel %vm305_vm5, %v273_v52, %v337_v61  ;;  %v238_v8 = vmul.f32 %v818_v0, %v199_v59 }
  0x31   : > { %v726_v12 = vpack.c.bf16 %v369_v7, %v368_v6  ;;  %vm306_vm6 = vcmp.gt.f32.partialorder %v274_v63, 0.0  ;;  %vm307_vm7 = vcmp.gt.f32.partialorder %v275_v2, 0.0  ;;  %v338_v13 = vmul.f32 0.2, %v274_v63 }
  0x32   : > { %761 = vst [vmem:[%s856_s26 + $0x48] sm:$0xff] %v721_v5   ;;  %v339_v14 = vmul.f32 0.2, %v275_v2  ;;  %v276_v15 = vadd.f32 %v828_v1, %v237_v3  ;;  %v277_v16 = vadd.f32 %v828_v1, %v238_v8  ;;  %v239_v17 = vmul.f32 %v818_v0, %v200_v4 }
  0x33   : > { %762 = vst [vmem:[%s856_s26 + $0x50] sm:$0xff] %v726_v12   ;;  %v370_v18 = vsel %vm306_vm6, %v274_v63, %v338_v13  ;;  %v240_v19 = vmul.f32 %v818_v0, %v201_v9  ;;  %v241_v20 = vmul.f32 %v818_v0, %v202_v10  ;;  %v242_v21 = vmul.f32 %v818_v0, %v203_v11 }
  0x34   : > { %v371_v23 = vsel %vm307_vm7, %v275_v2, %v339_v14  ;;  %vm308_vm8 = vcmp.gt.f32.partialorder %v276_v15, 0.0  ;;  %vm309_vm9 = vcmp.gt.f32.partialorder %v277_v16, 0.0  ;;  %v340_v24 = vmul.f32 0.2, %v276_v15 }
  0x35   : > { %v731_v25 = vpack.c.bf16 %v371_v23, %v370_v18  ;;  %v341_v26 = vmul.f32 0.2, %v277_v16  ;;  %v278_v27 = vadd.f32 %v828_v1, %v239_v17  ;;  %v279_v28 = vadd.f32 %v828_v1, %v240_v19 }
  0x36   : > { %v372_v29 = vsel %vm308_vm8, %v276_v15, %v340_v24  ;;  %v280_v30 = vadd.f32 %v828_v1, %v241_v20  ;;  %v281_v31 = vadd.f32 %v828_v1, %v242_v21  ;;  %v243_v33 = vmul.f32 %v818_v0, %v204_v22 }
  0x37   : > { %763 = vst [vmem:[%s856_s26 + $0x58] sm:$0xff] %v731_v25   ;;  %v373_v34 = vsel %vm309_vm9, %v277_v16, %v341_v26  ;;  %vm310_vm10 = vcmp.gt.f32.partialorder %v278_v27, 0.0  ;;  %vm311_vm11 = vcmp.gt.f32.partialorder %v279_v28, 0.0  ;;  %v342_v35 = vmul.f32 0.2, %v278_v27 }
  0x38   : > { %v736_v36 = vpack.c.bf16 %v373_v34, %v372_v29  ;;  %v343_v37 = vmul.f32 0.2, %v279_v28  ;;  %vm312_vm12 = vcmp.gt.f32.partialorder %v280_v30, 0.0  ;;  %vm313_vm13 = vcmp.gt.f32.partialorder %v281_v31, 0.0 }
  0x39   : > { %v374_v38 = vsel %vm310_vm10, %v278_v27, %v342_v35  ;;  %v344_v39 = vmul.f32 0.2, %v280_v30  ;;  %v345_v40 = vmul.f32 0.2, %v281_v31  ;;  %v244_v41 = vmul.f32 %v818_v0, %v205_v32 }
  0x3a   : > { %764 = vst [vmem:[%s856_s26 + $0x60] sm:$0xff] %v736_v36   ;;  %v375_v42 = vsel %vm311_vm11, %v279_v28, %v343_v37  ;;  %v282_v43 = vadd.f32 %v828_v1, %v243_v33 }
  0x3b   : > { %v741_v44 = vpack.c.bf16 %v375_v42, %v374_v38  ;;  %v376_v45 = vsel %vm312_vm12, %v280_v30, %v344_v39  ;;  %v377_v46 = vsel %vm313_vm13, %v281_v31, %v345_v40  ;;  %v283_v47 = vadd.f32 %v828_v1, %v244_v41 }
  0x3c   : > { %v746_v48 = vpack.c.bf16 %v377_v46, %v376_v45  ;;  %vm314_vm14 = vcmp.gt.f32.partialorder %v282_v43, 0.0  ;;  %v346_v49 = vmul.f32 0.2, %v282_v43 }
  0x3d   : > { %765 = vst [vmem:[%s856_s26 + $0x68] sm:$0xff] %v741_v44   ;;  %vm315_vm15 = vcmp.gt.f32.partialorder %v283_v47, 0.0  ;;  %v347_v50 = vmul.f32 0.2, %v283_v47 }
  0x3e   : > { %766 = vst [vmem:[%s856_s26 + $0x70] sm:$0xff] %v746_v48   ;;  %v378_v51 = vsel %vm314_vm14, %v282_v43, %v346_v49 }
  0x3f   : > { %v379_v52 = vsel %vm315_vm15, %v283_v47, %v347_v50 }
  0x40   : > { %v751_v0 = vpack.c.bf16 %v379_v52, %v378_v51 }
  0x42   : > { %767 = vst [vmem:[%s856_s26 + $0x78] sm:$0xff] %v751_v0  }
  0x43 PF: > { %s13_s12 = sadd.s32 1, %s782_s12  }
  0x44   : > { %p10_p4 = scmp.ge.s32.totalorder %s13_s12, 4  }
  0x46   :  { %12 = sbr.rel (!%p10_p4) target bundleno = 1 (0x1), region = 62 }

// kernel: image_encoder_forward.9
= control target key start
LH: loop header
LB: loop body
LE: loop exit
PB: predicated region body
PF: predicated region fallthrough
CT: control target
= control target key end

     0   :  { %s1712_s15 = smov 0   ;;  %s1714_s16 = smov 0   ;;  %s2078_s0 = inlined_call_operand.vmem [shape: bf16[512,1024], index: 0, kind: input, shape index: {}]   ;;  %s2079_s1 = inlined_call_operand.vmem [shape: bf16[1024,128], index: 1, kind: input, shape index: {}]   ;;  %s2080_s2 = inlined_call_operand.vmem [shape: f32[512,128], index: 2, kind: output, shape index: {0}]   ;;  %s2081_s3 = inlined_call_operand.vmem [shape: f32[2,1,128], index: 3, kind: output, shape index: {1}]   ;;  %s2082_s4 = inlined_call_operand.vmem [shape: f32[2,1,128], index: 4, kind: output, shape index: {2}]  }
   0x1   :  { %s1716_s17 = smov 0   ;;  %s1718_s18 = smov 0  }
   0x2   :  { %s1720_s19 = smov 0   ;;  %s1722_s20 = smov 0  }
   0x3   :  { %s1724_s21 = smov 0  }
   0x4 LB: > { %s24_s22 = sadd.s32 1, %s1676_s19  ;;  %s27_s23 = sadd.s32 1, %s1680_s20  ;;  %s1684_s21 = sphi %s1724_s21, %s15_s21   ;;  %s1680_s20 = sphi %s1722_s20, %s2088_s20   ;;  %s1676_s19 = sphi %s1720_s19, %s2087_s19   ;;  %s1672_s18 = sphi %s1718_s18, %s2086_s18   ;;  %s1668_s17 = sphi %s1716_s17, %s2085_s17   ;;  %s1664_s16 = sphi %s1714_s16, %s2084_s16   ;;  %s1660_s15 = sphi %s1712_s15, %s2083_s15  }
   0x5   : > { %p25_p0 = scmp.ge.s32.totalorder %s24_s22, 4  ;;  %p43_p1 = scmp.ne.s32.totalorder %s1664_s16, %s1660_s15 }
   0x6   : > { %p44_p2 = scmp.eq.s32.totalorder %s1684_s21, 0  ;;  %s36_s27 = sadd.s32 1, %s1664_s16 }
   0x7   : > { %s2090_s22 = smov (%p25_p0, %s24_s22), 0  ;;  %s2092_s23 = smov (!%p25_p0, %s27_s23), %s1680_s20 }
   0x8   : > { %p45_p3 = por %p44_p2, %p43_p1  ;;  %p29_p4 = scmp.ge.s32.totalorder %s2092_s23, 2 }
   0x9   : > { %s32_s24 = ssub.s32 %s1676_s19, %s2090_s22  ;;  %p1316_p6 = scmp.ge.s32.totalorder %s1684_s21, 8 }
   0xa   : > { %s2094_s23 = smov (%p29_p4, %s2092_s23), 0 }
   0xb   : > { %s31_s25 = ssub.s32 %s1680_s20, %s2094_s23  ;;  %173 = sbr.rel (%p1316_p6) target bundleno = 57 (0x39), region = 16 }
   0xc   : > { %s33_s26 = sor.u32 %s32_s24, %s31_s25 }
   0xd   : > { %p34_p5 = scmp.eq.s32.totalorder %s33_s26, 0 }
   0xf   : > { %s1763_s28 = scalar_select %p34_p5, %s1664_s16, %s36_s27  }
  0x12   : > { %176 = sbr.rel (!%p45_p3) target bundleno = 57 (0x39), region = 20  ;;  %s178_s29 = sand.u32 (%p45_p3), 1, %s1664_s16  }
  0x13   : > { %s1319_s30 = sshll.u32 (%p45_p3), %s1676_s19, 1  ;;  %s1317_s5 = sshll.u32 (%p45_p3), %s178_s29, 8 }
  0x14   : > { %s1380_s6 = sshll.u32 (%p45_p3), %s1680_s20, 8  ;;  %s1777_s12 = scalar_lea.vmem (%p45_p3), [#allocation2], %s1317_s5 }
  0x15   : > { %s184_s7 = sadd.s32 (%p45_p3), %s1380_s6, %s1319_s30 }
  0x16   : > { %s1321_s8 = sshll.u32 (%p45_p3), %s184_s7, 2 }
  0x17   : > { %s1772_s11 = scalar_lea.vmem (%p45_p3), %s2078_s0, %s1321_s8 }
  0x18   : > { %v276_v0 = vld [vmem:[%s1772_s11] sm:$0xff] (%p45_p3) }
  0x19   : > { %v278_v1 = vld [vmem:[%s1772_s11 + $0x20] sm:$0xff]  ;;  %277 = vst [vmem:[%s1777_s12] sm:$0xff] %v276_v0 }
  0x1a   : > { %v280_v2 = vld [vmem:[%s1772_s11 + $0x40] sm:$0xff]  ;;  %279 = vst [vmem:[%s1777_s12 + $0x8] sm:$0xff] %v278_v1 }
  0x1b   : > { %281 = vst [vmem:[%s1777_s12 + $0x10] sm:$0xff] %v280_v2  ;;  %v282_v3 = vld [vmem:[%s1772_s11 + $0x60] sm:$0xff] }
  0x1c   : > { %v284_v4 = vld [vmem:[%s1772_s11 + $0x80] sm:$0xff]  ;;  %283 = vst [vmem:[%s1777_s12 + $0x18] sm:$0xff] %v282_v3 }
  0x1d   : > { %v286_v5 = vld [vmem:[%s1772_s11 + $0xa0] sm:$0xff]  ;;  %285 = vst [vmem:[%s1777_s12 + $0x20] sm:$0xff] %v284_v4 }
  0x1e   : > { %287 = vst [vmem:[%s1777_s12 + $0x28] sm:$0xff] %v286_v5  ;;  %v288_v6 = vld [vmem:[%s1772_s11 + $0xc0] sm:$0xff] }
  0x1f   : > { %v290_v7 = vld [vmem:[%s1772_s11 + $0xe0] sm:$0xff]  ;;  %289 = vst [vmem:[%s1777_s12 + $0x30] sm:$0xff] %v288_v6 }
  0x20   : > { %v292_v8 = vld [vmem:[%s1772_s11 + $0x100] sm:$0xff]  ;;  %291 = vst [vmem:[%s1777_s12 + $0x38] sm:$0xff] %v290_v7 }
  0x21   : > { %293 = vst [vmem:[%s1777_s12 + $0x40] sm:$0xff] %v292_v8  ;;  %v294_v9 = vld [vmem:[%s1772_s11 + $0x120] sm:$0xff] }
  0x22   : > { %v296_v10 = vld [vmem:[%s1772_s11 + $0x140] sm:$0xff]  ;;  %295 = vst [vmem:[%s1777_s12 + $0x48] sm:$0xff] %v294_v9 }
  0x23   : > { %v298_v11 = vld [vmem:[%s1772_s11 + $0x160] sm:$0xff]  ;;  %297 = vst [vmem:[%s1777_s12 + $0x50] sm:$0xff] %v296_v10 }
  0x24   : > { %299 = vst [vmem:[%s1777_s12 + $0x58] sm:$0xff] %v298_v11  ;;  %v300_v12 = vld [vmem:[%s1772_s11 + $0x180] sm:$0xff] }
  0x25   : > { %v302_v13 = vld [vmem:[%s1772_s11 + $0x1a0] sm:$0xff]  ;;  %301 = vst [vmem:[%s1777_s12 + $0x60] sm:$0xff] %v300_v12 }
  0x26   : > { %v304_v14 = vld [vmem:[%s1772_s11 + $0x1c0] sm:$0xff]  ;;  %303 = vst [vmem:[%s1777_s12 + $0x68] sm:$0xff] %v302_v13 }
  0x27   : > { %305 = vst [vmem:[%s1777_s12 + $0x70] sm:$0xff] %v304_v14  ;;  %v306_v15 = vld [vmem:[%s1772_s11 + $0x1e0] sm:$0xff] }
  0x28   : > { %v308_v16 = vld [vmem:[%s1772_s11 + $0x200] sm:$0xff]  ;;  %307 = vst [vmem:[%s1777_s12 + $0x78] sm:$0xff] %v306_v15 }
  0x29   : > { %v310_v17 = vld [vmem:[%s1772_s11 + $0x220] sm:$0xff]  ;;  %309 = vst [vmem:[%s1777_s12 + $0x80] sm:$0xff] %v308_v16 }
  0x2a   : > { %311 = vst [vmem:[%s1777_s12 + $0x88] sm:$0xff] %v310_v17  ;;  %v312_v18 = vld [vmem:[%s1772_s11 + $0x240] sm:$0xff] }
  0x2b   : > { %v314_v19 = vld [vmem:[%s1772_s11 + $0x260] sm:$0xff]  ;;  %313 = vst [vmem:[%s1777_s12 + $0x90] sm:$0xff] %v312_v18 }
  0x2c   : > { %v316_v20 = vld [vmem:[%s1772_s11 + $0x280] sm:$0xff]  ;;  %315 = vst [vmem:[%s1777_s12 + $0x98] sm:$0xff] %v314_v19 }
  0x2d   : > { %317 = vst [vmem:[%s1777_s12 + $0xa0] sm:$0xff] %v316_v20  ;;  %v318_v21 = vld [vmem:[%s1772_s11 + $0x2a0] sm:$0xff] }
  0x2e   : > { %v320_v22 = vld [vmem:[%s1772_s11 + $0x2c0] sm:$0xff]  ;;  %319 = vst [vmem:[%s1777_s12 + $0xa8] sm:$0xff] %v318_v21 }
  0x2f   : > { %v322_v23 = vld [vmem:[%s1772_s11 + $0x2e0] sm:$0xff]  ;;  %321 = vst [vmem:[%s1777_s12 + $0xb0] sm:$0xff] %v320_v22 }
  0x30   : > { %323 = vst [vmem:[%s1777_s12 + $0xb8] sm:$0xff] %v322_v23  ;;  %v324_v24 = vld [vmem:[%s1772_s11 + $0x300] sm:$0xff] }
  0x31   : > { %v326_v25 = vld [vmem:[%s1772_s11 + $0x320] sm:$0xff]  ;;  %325 = vst [vmem:[%s1777_s12 + $0xc0] sm:$0xff] %v324_v24 }
  0x32   : > { %v328_v26 = vld [vmem:[%s1772_s11 + $0x340] sm:$0xff]  ;;  %327 = vst [vmem:[%s1777_s12 + $0xc8] sm:$0xff] %v326_v25 }
  0x33   : > { %329 = vst [vmem:[%s1777_s12 + $0xd0] sm:$0xff] %v328_v26  ;;  %v330_v27 = vld [vmem:[%s1772_s11 + $0x360] sm:$0xff] }
  0x34   : > { %v332_v28 = vld [vmem:[%s1772_s11 + $0x380] sm:$0xff]  ;;  %331 = vst [vmem:[%s1777_s12 + $0xd8] sm:$0xff] %v330_v27 }
  0x35   : > { %v334_v29 = vld [vmem:[%s1772_s11 + $0x3a0] sm:$0xff]  ;;  %333 = vst [vmem:[%s1777_s12 + $0xe0] sm:$0xff] %v332_v28 }
  0x36   : > { %335 = vst [vmem:[%s1777_s12 + $0xe8] sm:$0xff] %v334_v29  ;;  %v336_v30 = vld [vmem:[%s1772_s11 + $0x3c0] sm:$0xff] }
  0x37   : > { %v338_v31 = vld [vmem:[%s1772_s11 + $0x3e0] sm:$0xff]  ;;  %337 = vst [vmem:[%s1777_s12 + $0xf0] sm:$0xff] %v336_v30 }
  0x38   : > { %339 = vst [vmem:[%s1777_s12 + $0xf8] sm:$0xff] %v338_v31 }
  0x39 PF: > { %p1322_p7 = scmp.ge.s32.totalorder %s1684_s21, 1  ;;  %p353_p8 = scmp.lt.s32.totalorder %s1684_s21, 9 }
  0x3b   : > { %p354_p9 = pnand %p1322_p7, %p353_p8 }
  0x3c   : > { %s360_s13 = sand.u32 (!%p354_p9), 1, %s1660_s15   ;;  %s1324_s14 = sshll.u32 (!%p354_p9), %s1668_s17, 5 }
  0x3d   : > { %357 = sbr.rel (%p354_p9) target bundleno = 454 (0x1c6), region = 62  ;;  %s1323_s24 = sshll.u32 (!%p354_p9), %s360_s13, 8 }
  0x3e   : > { %p399_p10 = scmp.lt.s32.totalorder (!%p354_p9), %s1324_s14, 127  ;;  %s1326_s25 = sshll.u32 (!%p354_p9), %s1672_s18, 5 }
  0x3f   : > { %p405_p11 = scmp.lt.s32.totalorder (!%p354_p9), %s1326_s25, 63  ;;  %p410_p12 = scmp.lt.s32.totalorder (!%p354_p9), %s1672_s18, 1 }
  0x40   : > { %p1328_p13 = scmp.ne.s32.totalorder (!%p354_p9), %s1668_s17, 0 }
  0x44   : > { %s2096_s14 = smov (!%p399_p10, %s1324_s14), 127  ;;  %s2098_s25 = smov (!%p405_p11, %s1326_s25), 63 }
  0x45   : > { %s1325_s26 = sshll.u32 %s2096_s14, 2  ;;  %s2100_s18 = smov (!%p410_p12, %s1672_s18), 1  ;;  %v1686_v32 = vmov (!%p1328_p13), 0.0  }
  0x46   : > { %s1849_s30 = scalar_lea.vmem %s2079_s1, %s1325_s26  ;;  %s1327_s5 = sshll.u32 %s2098_s25, 3 }
  0x47   : > { %s1857_s7 = scalar_lea.vmem %s2080_s2, %s1327_s5  ;;  %s412_s10 = scalar_lea.vmem %s2081_s3, %s2100_s18 }
  0x48   : > { %s415_s13 = scalar_lea.vmem %s2082_s4, %s2100_s18  ;;  %s1867_s14 = scalar_lea.vmem [#allocation2], %s1323_s24  ;;  %421 = vst [vmem:[%s1857_s7] sm:$0xff] (!%p1328_p13), %v1686_v32  ;;  %422 = vst [vmem:[%s1857_s7 + $0x8] sm:$0xff] (!%p1328_p13), %v1686_v32 }
  0x49   : > { %420 = sbr.rel (%p1328_p13) target bundleno = 88 (0x58), region = 70  ;;  %423 = vst [vmem:[%s1857_s7 + $0x10] sm:$0xff] (!%p1328_p13), %v1686_v32  ;;  %424 = vst [vmem:[%s1857_s7 + $0x18] sm:$0xff] (!%p1328_p13), %v1686_v32 }
  0x4a   : > { %425 = vst [vmem:[%s1857_s7 + $0x20] sm:$0xff] (!%p1328_p13), %v1686_v32  ;;  %426 = vst [vmem:[%s1857_s7 + $0x28] sm:$0xff] (!%p1328_p13), %v1686_v32 }
  0x4b   : > { %427 = vst [vmem:[%s1857_s7 + $0x30] sm:$0xff] (!%p1328_p13), %v1686_v32  ;;  %428 = vst [vmem:[%s1857_s7 + $0x38] sm:$0xff] (!%p1328_p13), %v1686_v32 }
  0x4c   : > { %429 = vst [vmem:[%s1857_s7 + $0x40] sm:$0xff] (!%p1328_p13), %v1686_v32  ;;  %430 = vst [vmem:[%s1857_s7 + $0x48] sm:$0xff] (!%p1328_p13), %v1686_v32 }
  0x4d   : > { %431 = vst [vmem:[%s1857_s7 + $0x50] sm:$0xff] (!%p1328_p13), %v1686_v32  ;;  %432 = vst [vmem:[%s1857_s7 + $0x58] sm:$0xff] (!%p1328_p13), %v1686_v32 }
  0x4e   : > { %433 = vst [vmem:[%s1857_s7 + $0x60] sm:$0xff] (!%p1328_p13), %v1686_v32  ;;  %434 = vst [vmem:[%s1857_s7 + $0x68] sm:$0xff] (!%p1328_p13), %v1686_v32 }
  0x4f   : > { %435 = vst [vmem:[%s1857_s7 + $0x70] sm:$0xff] (!%p1328_p13), %v1686_v32  ;;  %436 = vst [vmem:[%s1857_s7 + $0x78] sm:$0xff] (!%p1328_p13), %v1686_v32 }
  0x50   : > { %437 = vst [vmem:[%s1857_s7 + $0x80] sm:$0xff] %v1686_v32  ;;  %438 = vst [vmem:[%s1857_s7 + $0x88] sm:$0xff] %v1686_v32 }
  0x51   : > { %439 = vst [vmem:[%s1857_s7 + $0x90] sm:$0xff] %v1686_v32  ;;  %440 = vst [vmem:[%s1857_s7 + $0x98] sm:$0xff] %v1686_v32 }
  0x52   : > { %441 = vst [vmem:[%s1857_s7 + $0xa0] sm:$0xff] %v1686_v32  ;;  %442 = vst [vmem:[%s1857_s7 + $0xa8] sm:$0xff] %v1686_v32 }
  0x53   : > { %443 = vst [vmem:[%s1857_s7 + $0xb0] sm:$0xff] %v1686_v32  ;;  %444 = vst [vmem:[%s1857_s7 + $0xb8] sm:$0xff] %v1686_v32 }
  0x54   : > { %445 = vst [vmem:[%s1857_s7 + $0xc0] sm:$0xff] %v1686_v32  ;;  %446 = vst [vmem:[%s1857_s7 + $0xc8] sm:$0xff] %v1686_v32 }
  0x55   : > { %447 = vst [vmem:[%s1857_s7 + $0xd0] sm:$0xff] %v1686_v32  ;;  %448 = vst [vmem:[%s1857_s7 + $0xd8] sm:$0xff] %v1686_v32 }
  0x56   : > { %449 = vst [vmem:[%s1857_s7 + $0xe0] sm:$0xff] %v1686_v32  ;;  %450 = vst [vmem:[%s1857_s7 + $0xe8] sm:$0xff] %v1686_v32 }
  0x57   : > { %451 = vst [vmem:[%s1857_s7 + $0xf0] sm:$0xff] %v1686_v32  ;;  %452 = vst [vmem:[%s1857_s7 + $0xf8] sm:$0xff] %v1686_v32 }
  0x58 PF: > { %v1566_v33 = vld [vmem:[%s1849_s30 + $0x40] sm:$0xff]   ;;  %v1568_v35 = vld [vmem:[%s1849_s30 + $0x48] sm:$0xff]   ;;  %v1570_v37 = vld [vmem:[%s1849_s30 + $0x50] sm:$0xff]   ;;  %p1377_p0 = scmp.ne.s32.totalorder %s1668_s17, 3 }
  0x59   : > { %v1567_v34 = vld [vmem:[%s1849_s30] sm:$0xff]   ;;  %1381 = vmatprep.subr.bf16.mxu0 %v1566_v33  ;;  %1493 = vmatprep.subr.bf16.mxu1 %v1566_v33  ;;  %v1569_v36 = vld [vmem:[%s1849_s30 + $0x8] sm:$0xff]   ;;  %v1571_v38 = vld [vmem:[%s1849_s30 + $0x10] sm:$0xff]  }
  0x5a   : > { %1382 = vmatpush3.bf16.msra.mxu0 %v1567_v34  ;;  %1501 = vmatpush3.bf16.msra.mxu1 %v1567_v34  ;;  %v1572_v39 = vld [vmem:[%s1849_s30 + $0x58] sm:$0xff]   ;;  %v1574_v41 = vld [vmem:[%s1849_s30 + $0x60] sm:$0xff]   ;;  %v1576_v43 = vld [vmem:[%s1849_s30 + $0x68] sm:$0xff]  }
  0x5b   : > { %1383 = vmatprep.subr.bf16.mxu0 %v1568_v35  ;;  %1494 = vmatprep.subr.bf16.mxu1 %v1568_v35  ;;  %v1573_v40 = vld [vmem:[%s1849_s30 + $0x18] sm:$0xff]   ;;  %v1575_v42 = vld [vmem:[%s1849_s30 + $0x20] sm:$0xff]   ;;  %v1577_v46 = vld [vmem:[%s1849_s30 + $0x28] sm:$0xff]  }
  0x5c   : > { %v1584_v44 = vld [vmem:[%s1867_s14 + $0x4] ss:$8 sps:$4 sm:$0xff]   ;;  %v1578_v47 = vld [vmem:[%s1849_s30 + $0x70] sm:$0xff]   ;;  %v1580_v49 = vld [vmem:[%s1849_s30 + $0x78] sm:$0xff]  }
  0x5d   : > { %v1587_v45 = vld [vmem:[%s1867_s14 + $0x84] ss:$8 sps:$4 sm:$0xff]   ;;  %837 = vmatprep.mubr.bf16.mxu0 %v1584_v44  ;;  %v1579_v48 = vld [vmem:[%s1849_s30 + $0x30] sm:$0xff]   ;;  %v1581_v50 = vld [vmem:[%s1849_s30 + $0x38] sm:$0xff]  }
  0x5e   : > { %1384 = vmatpush3.bf16.msra.mxu0 %v1569_v36  ;;  %1502 = vmatpush3.bf16.msra.mxu1 %v1569_v36  ;;  %v1582_v51 = vld [vmem:[%s1867_s14] ss:$8 sps:$4 sm:$0xff]   ;;  %v1588_v53 = vld [vmem:[%s1867_s14 + $0x14] ss:$8 sps:$4 sm:$0xff]   ;;  %v1592_v55 = vld [vmem:[%s1867_s14 + $0x10] ss:$8 sps:$4 sm:$0xff]  }
  0x5f   : > { %1385 = vmatprep.subr.bf16.mxu0 %v1570_v37  ;;  %1495 = vmatprep.subr.bf16.mxu1 %v1570_v37  ;;  %v1585_v52 = vld [vmem:[%s1867_s14 + $0x80] ss:$8 sps:$4 sm:$0xff]   ;;  %v1590_v54 = vld [vmem:[%s1867_s14 + $0x94] ss:$8 sps:$4 sm:$0xff]   ;;  %v1593_v56 = vld [vmem:[%s1867_s14 + $0x90] ss:$8 sps:$4 sm:$0xff]  }
  0x60   : > { %901 = vmatprep.mubr.bf16.mxu1 %v1587_v45  ;;  %v1594_v57 = vld [vmem:[%s1867_s14 + $0x24] ss:$8 sps:$4 sm:$0xff]   ;;  %v1598_v59 = vld [vmem:[%s1867_s14 + $0x20] ss:$8 sps:$4 sm:$0xff]   ;;  %v1600_v61 = vld [vmem:[%s1867_s14 + $0x34] ss:$8 sps:$4 sm:$0xff]  }
  0x61   : > { %v1596_v58 = vld [vmem:[%s1867_s14 + $0xa4] ss:$8 sps:$4 sm:$0xff]   ;;  %v1599_v60 = vld [vmem:[%s1867_s14 + $0xa0] ss:$8 sps:$4 sm:$0xff]   ;;  %v1602_v62 = vld [vmem:[%s1867_s14 + $0xb4] ss:$8 sps:$4 sm:$0xff]  }
  0x62   : > { %1386 = vmatpush3.bf16.msra.mxu0 %v1571_v38  ;;  %1503 = vmatpush3.bf16.msra.mxu1 %v1571_v38  ;;  %v1604_v63 = vld [vmem:[%s1867_s14 + $0x30] ss:$8 sps:$4 sm:$0xff]   ;;  %v1606_v1 = vld [vmem:[%s1867_s14 + $0x44] ss:$8 sps:$4 sm:$0xff]   ;;  %v1610_v3 = vld [vmem:[%s1867_s14 + $0x40] ss:$8 sps:$4 sm:$0xff]  }
  0x63   : > { %1387 = vmatprep.subr.bf16.mxu0 %v1572_v39  ;;  %1496 = vmatprep.subr.bf16.mxu1 %v1572_v39  ;;  %v1605_v0 = vld [vmem:[%s1867_s14 + $0xb0] ss:$8 sps:$4 sm:$0xff]   ;;  %v1608_v2 = vld [vmem:[%s1867_s14 + $0xc4] ss:$8 sps:$4 sm:$0xff]   ;;  %v1611_v4 = vld [vmem:[%s1867_s14 + $0xc0] ss:$8 sps:$4 sm:$0xff]  }
  0x64   : > { %v1612_v5 = vld [vmem:[%s1867_s14 + $0x54] ss:$8 sps:$4 sm:$0xff]   ;;  %v1616_v7 = vld [vmem:[%s1867_s14 + $0x50] ss:$8 sps:$4 sm:$0xff]   ;;  %v1618_v9 = vld [vmem:[%s1867_s14 + $0x64] ss:$8 sps:$4 sm:$0xff]  }
  0x65   : > { %v1614_v6 = vld [vmem:[%s1867_s14 + $0xd4] ss:$8 sps:$4 sm:$0xff]   ;;  %v1617_v8 = vld [vmem:[%s1867_s14 + $0xd0] ss:$8 sps:$4 sm:$0xff]   ;;  %v1620_v10 = vld [vmem:[%s1867_s14 + $0xe4] ss:$8 sps:$4 sm:$0xff]  }
  0x66   : > { %1388 = vmatpush3.bf16.msra.mxu0 %v1573_v40  ;;  %1504 = vmatpush3.bf16.msra.mxu1 %v1573_v40  ;;  %v1622_v11 = vld [vmem:[%s1867_s14 + $0x60] ss:$8 sps:$4 sm:$0xff]   ;;  %v1624_v13 = vld [vmem:[%s1867_s14 + $0x74] ss:$8 sps:$4 sm:$0xff]   ;;  %v1628_v15 = vld [vmem:[%s1867_s14 + $0x70] ss:$8 sps:$4 sm:$0xff]  }
  0x67   : > { %1389 = vmatprep.subr.bf16.mxu0 %v1574_v41  ;;  %1497 = vmatprep.subr.bf16.mxu1 %v1574_v41  ;;  %v1623_v12 = vld [vmem:[%s1867_s14 + $0xe0] ss:$8 sps:$4 sm:$0xff]   ;;  %v1626_v14 = vld [vmem:[%s1867_s14 + $0xf4] ss:$8 sps:$4 sm:$0xff]   ;;  %v1629_v16 = vld [vmem:[%s1867_s14 + $0xf0] ss:$8 sps:$4 sm:$0xff]  }
  0x68   : > { %v453_v19 = vld [vmem:[%s1857_s7] sm:$0xff]  ;;  %v454_v27 = vld [vmem:[%s1857_s7 + $0x8] sm:$0xff]  ;;  %v455_v39 = vld [vmem:[%s1857_s7 + $0x10] sm:$0xff] }
  0x69   : > { %v469_v21 = vld [vmem:[%s1857_s7 + $0x80] sm:$0xff]  ;;  %v470_v29 = vld [vmem:[%s1857_s7 + $0x88] sm:$0xff]  ;;  %v471_v41 = vld [vmem:[%s1857_s7 + $0x90] sm:$0xff] }
  0x6a   : > { %1390 = vmatpush3.bf16.msra.mxu0 %v1575_v42  ;;  %1505 = vmatpush3.bf16.msra.mxu1 %v1575_v42 }
  0x6b   : > { %1391 = vmatprep.subr.bf16.mxu0 %v1576_v43  ;;  %1498 = vmatprep.subr.bf16.mxu1 %v1576_v43 }
  0x6e   : > { %1392 = vmatpush3.bf16.msra.mxu0 %v1577_v46  ;;  %1506 = vmatpush3.bf16.msra.mxu1 %v1577_v46 }
  0x6f   : > { %1393 = vmatprep.subr.bf16.mxu0 %v1578_v47  ;;  %1499 = vmatprep.subr.bf16.mxu1 %v1578_v47  ;;  %v456_v47 = vld [vmem:[%s1857_s7 + $0x18] sm:$0xff] }
  0x72   : > { %1394 = vmatpush3.bf16.msra.mxu0 %v1579_v48  ;;  %1507 = vmatpush3.bf16.msra.mxu1 %v1579_v48 }
  0x73   : > { %1395 = vmatprep.subr.bf16.mxu0 %v1580_v49  ;;  %1500 = vmatprep.subr.bf16.mxu1 %v1580_v49  ;;  %v472_v49 = vld [vmem:[%s1857_s7 + $0x98] sm:$0xff] }
  0x76   : > { %1396 = vmatpush3.bf16.msra.mxu0 %v1581_v50  ;;  %1508 = vmatpush3.bf16.msra.mxu1 %v1581_v50 }
  0x79   : > { %838 = vmatmul.mubr.bf16.vlgmr.msra.gmra.mrb[0].mxu0 %v1582_v51  ;;  %902 = vmatmul.mubr.bf16.vlgmr.msra.gmra.mrb[0].mxu1 %v1585_v52 }
  0x7a   : > { %845 = vmatprep.mubr.bf16.mxu0 %v1588_v53  ;;  %909 = vmatprep.mubr.bf16.mxu1 %v1590_v54 }
  0x81   : > { %846 = vmatmul.mubr.bf16.gmra.mrb[4].mxu0 %v1592_v55  ;;  %910 = vmatmul.mubr.bf16.gmra.mrb[4].mxu1 %v1593_v56 }
  0x82   : > { %853 = vmatprep.mubr.bf16.mxu0 %v1594_v57  ;;  %917 = vmatprep.mubr.bf16.mxu1 %v1596_v58 }
  0x89   : > { %854 = vmatmul.mubr.bf16.gmra.mrb[8].mxu0 %v1598_v59  ;;  %918 = vmatmul.mubr.bf16.gmra.mrb[8].mxu1 %v1599_v60  ;;  %v457_v59 = vld [vmem:[%s1857_s7 + $0x20] sm:$0xff] }
  0x8a   : > { %861 = vmatprep.mubr.bf16.mxu0 %v1600_v61  ;;  %925 = vmatprep.mubr.bf16.mxu1 %v1602_v62  ;;  %v473_v61 = vld [vmem:[%s1857_s7 + $0xa0] sm:$0xff] }
  0x91   : > { %862 = vmatmul.mubr.bf16.gmra.mrb[12].mxu0 %v1604_v63  ;;  %926 = vmatmul.mubr.bf16.gmra.mrb[12].mxu1 %v1605_v0 }
  0x92   : > { %869 = vmatprep.mubr.bf16.mxu0 %v1606_v1  ;;  %933 = vmatprep.mubr.bf16.mxu1 %v1608_v2 }
  0x99   : > { %870 = vmatmul.mubr.bf16.gmra.mrb[16].mxu0 %v1610_v3  ;;  %934 = vmatmul.mubr.bf16.gmra.mrb[16].mxu1 %v1611_v4  ;;  %v458_v3 = vld [vmem:[%s1857_s7 + $0x28] sm:$0xff] }
  0x9a   : > { %877 = vmatprep.mubr.bf16.mxu0 %v1612_v5  ;;  %941 = vmatprep.mubr.bf16.mxu1 %v1614_v6  ;;  %v474_v5 = vld [vmem:[%s1857_s7 + $0xa8] sm:$0xff] }
  0xa1   : > { %878 = vmatmul.mubr.bf16.gmra.mrb[20].mxu0 %v1616_v7  ;;  %942 = vmatmul.mubr.bf16.gmra.mrb[20].mxu1 %v1617_v8 }
  0xa2   : > { %885 = vmatprep.mubr.bf16.mxu0 %v1618_v9  ;;  %949 = vmatprep.mubr.bf16.mxu1 %v1620_v10 }
  0xa9   : > { %886 = vmatmul.mubr.bf16.gmra.mrb[24].mxu0 %v1622_v11  ;;  %950 = vmatmul.mubr.bf16.gmra.mrb[24].mxu1 %v1623_v12 }
  0xaa   : > { %893 = vmatprep.mubr.bf16.mxu0 %v1624_v13  ;;  %957 = vmatprep.mubr.bf16.mxu1 %v1626_v14 }
  0xb1   : > { %894 = vmatmul.mubr.bf16.gmra.mrb[28].mxu0 %v1628_v15  ;;  %958 = vmatmul.mubr.bf16.gmra.mrb[28].mxu1 %v1629_v16  ;;  %v459_v15 = vld [vmem:[%s1857_s7 + $0x30] sm:$0xff] }
 0x14c   : > { %v1397_v17 = vpop.f32.mrb[0].mxu0  ;;  %v1445_v18 = vpop.f32.mrb[0].mxu1 }
 0x14d   : > { %v1398_v20 = vpop.f32.mrb[1].mxu0  ;;  %v1446_v22 = vpop.f32.mrb[1].mxu1 }
 0x14e   : > { %v1399_v23 = vadd.f32 %v1398_v20, %v1397_v17  ;;  %v1447_v24 = vadd.f32 %v1446_v22, %v1445_v18  ;;  %v1400_v25 = vpop.f32.mrb[2].mxu0  ;;  %v1448_v26 = vpop.f32.mrb[2].mxu1  ;;  %v475_v17 = vld [vmem:[%s1857_s7 + $0xb0] sm:$0xff] }
 0x14f   : > { %v1401_v28 = vpop.f32.mrb[3].mxu0  ;;  %v1449_v30 = vpop.f32.mrb[3].mxu1 }
 0x150   : > { %v966_v31 = vadd.f32 %v1399_v23, %v453_v19  ;;  %v982_v32 = vadd.f32 %v1447_v24, %v469_v21  ;;  %v1402_v33 = vadd.f32 %v1401_v28, %v1400_v25  ;;  %v1450_v34 = vadd.f32 %v1449_v30, %v1448_v26  ;;  %v460_v23 = vld [vmem:[%s1857_s7 + $0x38] sm:$0xff] }
 0x151   : > { %v476_v25 = vld [vmem:[%s1857_s7 + $0xb8] sm:$0xff] }
 0x152   : > { %998 = vst [vmem:[%s1857_s7] sm:$0xff] %v966_v31  ;;  %1014 = vst [vmem:[%s1857_s7 + $0x80] sm:$0xff] %v982_v32  ;;  %v967_v35 = vadd.f32 %v1402_v33, %v454_v27  ;;  %v983_v36 = vadd.f32 %v1450_v34, %v470_v29 }
 0x154   : > { %999 = vst [vmem:[%s1857_s7 + $0x8] sm:$0xff] %v967_v35  ;;  %1015 = vst [vmem:[%s1857_s7 + $0x88] sm:$0xff] %v983_v36  ;;  %v1403_v37 = vpop.f32.mrb[4].mxu0  ;;  %v1451_v38 = vpop.f32.mrb[4].mxu1  ;;  %v461_v35 = vld [vmem:[%s1857_s7 + $0x40] sm:$0xff] }
 0x155   : > { %v1404_v40 = vpop.f32.mrb[5].mxu0  ;;  %v1452_v42 = vpop.f32.mrb[5].mxu1 }
 0x156   : > { %v1405_v43 = vadd.f32 %v1404_v40, %v1403_v37  ;;  %v1453_v44 = vadd.f32 %v1452_v42, %v1451_v38  ;;  %v1406_v45 = vpop.f32.mrb[6].mxu0  ;;  %v1454_v46 = vpop.f32.mrb[6].mxu1  ;;  %v477_v37 = vld [vmem:[%s1857_s7 + $0xc0] sm:$0xff] }
 0x157   : > { %v1407_v48 = vpop.f32.mrb[7].mxu0  ;;  %v1455_v50 = vpop.f32.mrb[7].mxu1 }
 0x158   : > { %v968_v51 = vadd.f32 %v1405_v43, %v455_v39  ;;  %v984_v52 = vadd.f32 %v1453_v44, %v471_v41  ;;  %v1408_v53 = vadd.f32 %v1407_v48, %v1406_v45  ;;  %v1456_v54 = vadd.f32 %v1455_v50, %v1454_v46  ;;  %v462_v43 = vld [vmem:[%s1857_s7 + $0x48] sm:$0xff] }
 0x159   : > { %v478_v45 = vld [vmem:[%s1857_s7 + $0xc8] sm:$0xff] }
 0x15a   : > { %1000 = vst [vmem:[%s1857_s7 + $0x10] sm:$0xff] %v968_v51  ;;  %1016 = vst [vmem:[%s1857_s7 + $0x90] sm:$0xff] %v984_v52  ;;  %v969_v55 = vadd.f32 %v1408_v53, %v456_v47  ;;  %v985_v56 = vadd.f32 %v1456_v54, %v472_v49 }
 0x15c   : > { %1001 = vst [vmem:[%s1857_s7 + $0x18] sm:$0xff] %v969_v55  ;;  %1017 = vst [vmem:[%s1857_s7 + $0x98] sm:$0xff] %v985_v56  ;;  %v1409_v57 = vpop.f32.mrb[8].mxu0  ;;  %v1457_v58 = vpop.f32.mrb[8].mxu1  ;;  %v463_v55 = vld [vmem:[%s1857_s7 + $0x50] sm:$0xff] }
 0x15d   : > { %v1410_v60 = vpop.f32.mrb[9].mxu0  ;;  %v1458_v62 = vpop.f32.mrb[9].mxu1 }
 0x15e   : > { %v1411_v63 = vadd.f32 %v1410_v60, %v1409_v57  ;;  %v1459_v0 = vadd.f32 %v1458_v62, %v1457_v58  ;;  %v1412_v1 = vpop.f32.mrb[10].mxu0  ;;  %v1460_v2 = vpop.f32.mrb[10].mxu1  ;;  %v479_v57 = vld [vmem:[%s1857_s7 + $0xd0] sm:$0xff] }
 0x15f   : > { %v1413_v4 = vpop.f32.mrb[11].mxu0  ;;  %v1461_v6 = vpop.f32.mrb[11].mxu1 }
 0x160   : > { %v970_v7 = vadd.f32 %v1411_v63, %v457_v59  ;;  %v986_v8 = vadd.f32 %v1459_v0, %v473_v61  ;;  %v1414_v9 = vadd.f32 %v1413_v4, %v1412_v1  ;;  %v1462_v10 = vadd.f32 %v1461_v6, %v1460_v2  ;;  %v464_v63 = vld [vmem:[%s1857_s7 + $0x58] sm:$0xff] }
 0x161   : > { %v480_v1 = vld [vmem:[%s1857_s7 + $0xd8] sm:$0xff] }
 0x162   : > { %1002 = vst [vmem:[%s1857_s7 + $0x20] sm:$0xff] %v970_v7  ;;  %1018 = vst [vmem:[%s1857_s7 + $0xa0] sm:$0xff] %v986_v8  ;;  %v971_v11 = vadd.f32 %v1414_v9, %v458_v3  ;;  %v987_v12 = vadd.f32 %v1462_v10, %v474_v5 }
 0x164   : > { %1003 = vst [vmem:[%s1857_s7 + $0x28] sm:$0xff] %v971_v11  ;;  %1019 = vst [vmem:[%s1857_s7 + $0xa8] sm:$0xff] %v987_v12  ;;  %v1415_v13 = vpop.f32.mrb[12].mxu0  ;;  %v1463_v14 = vpop.f32.mrb[12].mxu1  ;;  %v465_v11 = vld [vmem:[%s1857_s7 + $0x60] sm:$0xff] }
 0x165   : > { %v1416_v16 = vpop.f32.mrb[13].mxu0  ;;  %v1464_v18 = vpop.f32.mrb[13].mxu1 }
 0x166   : > { %v1417_v19 = vadd.f32 %v1416_v16, %v1415_v13  ;;  %v1465_v20 = vadd.f32 %v1464_v18, %v1463_v14  ;;  %v1418_v21 = vpop.f32.mrb[14].mxu0  ;;  %v1466_v22 = vpop.f32.mrb[14].mxu1  ;;  %v481_v13 = vld [vmem:[%s1857_s7 + $0xe0] sm:$0xff] }
 0x167   : > { %v1419_v24 = vpop.f32.mrb[15].mxu0  ;;  %v1467_v26 = vpop.f32.mrb[15].mxu1 }
 0x168   : > { %v972_v27 = vadd.f32 %v1417_v19, %v459_v15  ;;  %v988_v28 = vadd.f32 %v1465_v20, %v475_v17  ;;  %v1420_v29 = vadd.f32 %v1419_v24, %v1418_v21  ;;  %v1468_v30 = vadd.f32 %v1467_v26, %v1466_v22  ;;  %v466_v19 = vld [vmem:[%s1857_s7 + $0x68] sm:$0xff] }
 0x169   : > { %v482_v21 = vld [vmem:[%s1857_s7 + $0xe8] sm:$0xff] }
 0x16a   : > { %1004 = vst [vmem:[%s1857_s7 + $0x30] sm:$0xff] %v972_v27  ;;  %1020 = vst [vmem:[%s1857_s7 + $0xb0] sm:$0xff] %v988_v28  ;;  %v973_v31 = vadd.f32 %v1420_v29, %v460_v23  ;;  %v989_v32 = vadd.f32 %v1468_v30, %v476_v25 }
 0x16c   : > { %1005 = vst [vmem:[%s1857_s7 + $0x38] sm:$0xff] %v973_v31  ;;  %1021 = vst [vmem:[%s1857_s7 + $0xb8] sm:$0xff] %v989_v32  ;;  %v1421_v33 = vpop.f32.mrb[16].mxu0  ;;  %v1469_v34 = vpop.f32.mrb[16].mxu1  ;;  %v467_v31 = vld [vmem:[%s1857_s7 + $0x70] sm:$0xff] }
 0x16d   : > { %v1422_v36 = vpop.f32.mrb[17].mxu0  ;;  %v1470_v38 = vpop.f32.mrb[17].mxu1 }
 0x16e   : > { %v1423_v39 = vadd.f32 %v1422_v36, %v1421_v33  ;;  %v1471_v40 = vadd.f32 %v1470_v38, %v1469_v34  ;;  %v1424_v41 = vpop.f32.mrb[18].mxu0  ;;  %v1472_v42 = vpop.f32.mrb[18].mxu1  ;;  %v483_v33 = vld [vmem:[%s1857_s7 + $0xf0] sm:$0xff] }
 0x16f   : > { %v1425_v44 = vpop.f32.mrb[19].mxu0  ;;  %v1473_v46 = vpop.f32.mrb[19].mxu1 }
 0x170   : > { %v974_v47 = vadd.f32 %v1423_v39, %v461_v35  ;;  %v990_v48 = vadd.f32 %v1471_v40, %v477_v37  ;;  %v1426_v49 = vadd.f32 %v1425_v44, %v1424_v41  ;;  %v1474_v50 = vadd.f32 %v1473_v46, %v1472_v42  ;;  %v468_v39 = vld [vmem:[%s1857_s7 + $0x78] sm:$0xff] }
 0x171   : > { %v484_v41 = vld [vmem:[%s1857_s7 + $0xf8] sm:$0xff] }
 0x172   : > { %1006 = vst [vmem:[%s1857_s7 + $0x40] sm:$0xff] %v974_v47  ;;  %1022 = vst [vmem:[%s1857_s7 + $0xc0] sm:$0xff] %v990_v48  ;;  %v975_v51 = vadd.f32 %v1426_v49, %v462_v43  ;;  %v991_v52 = vadd.f32 %v1474_v50, %v478_v45  ;;  %v1034_v49 = vld [vmem:[%s1857_s7] sm:$0xff] (!%p1377_p0)  ;;  %v1035_v50 = vld [vmem:[%s1857_s7 + $0x8] sm:$0xff] (!%p1377_p0) }
 0x174   : > { %1007 = vst [vmem:[%s1857_s7 + $0x48] sm:$0xff] %v975_v51  ;;  %1023 = vst [vmem:[%s1857_s7 + $0xc8] sm:$0xff] %v991_v52  ;;  %v1427_v53 = vpop.f32.mrb[20].mxu0  ;;  %v1475_v54 = vpop.f32.mrb[20].mxu1  ;;  %v1036_v51 = vld [vmem:[%s1857_s7 + $0x10] sm:$0xff] (!%p1377_p0)  ;;  %v1037_v52 = vld [vmem:[%s1857_s7 + $0x18] sm:$0xff] (!%p1377_p0) }
 0x175   : > { %v1428_v56 = vpop.f32.mrb[21].mxu0  ;;  %v1476_v58 = vpop.f32.mrb[21].mxu1 }
 0x176   : > { %v1429_v59 = vadd.f32 %v1428_v56, %v1427_v53  ;;  %v1477_v60 = vadd.f32 %v1476_v58, %v1475_v54  ;;  %v1430_v61 = vpop.f32.mrb[22].mxu0  ;;  %v1478_v62 = vpop.f32.mrb[22].mxu1  ;;  %v1066_v53 = vadd.f32 (!%p1377_p0), %v1035_v50, %v1034_v49  ;;  %v1104_v54 = vmul.f32 (!%p1377_p0), %v1034_v49, %v1034_v49  ;;  %v1052_v49 = vld [vmem:[%s1857_s7 + $0x90] sm:$0xff] (!%p1377_p0) }
 0x177   : > { %v1431_v0 = vpop.f32.mrb[23].mxu0  ;;  %v1479_v2 = vpop.f32.mrb[23].mxu1  ;;  %v1106_v56 = vmul.f32 (!%p1377_p0), %v1036_v51, %v1036_v51 }
 0x178   : > { %v976_v3 = vadd.f32 %v1429_v59, %v463_v55  ;;  %v992_v4 = vadd.f32 %v1477_v60, %v479_v57  ;;  %v1432_v5 = vadd.f32 %v1431_v0, %v1430_v61  ;;  %v1480_v6 = vadd.f32 %v1479_v2, %v1478_v62  ;;  %v1038_v57 = vld [vmem:[%s1857_s7 + $0x20] sm:$0xff] (!%p1377_p0)  ;;  %v1039_v61 = vld [vmem:[%s1857_s7 + $0x28] sm:$0xff] (!%p1377_p0) }
 0x179   : > { %v1105_v55 = vmul.f32 (!%p1377_p0), %v1035_v50, %v1035_v50  ;;  %v1067_v58 = vadd.f32 (!%p1377_p0), %v1066_v53, %v1036_v51  ;;  %v1107_v59 = vmul.f32 (!%p1377_p0), %v1037_v52, %v1037_v52  ;;  %v1053_v53 = vld [vmem:[%s1857_s7 + $0x98] sm:$0xff] (!%p1377_p0) }
 0x17a   : > { %1008 = vst [vmem:[%s1857_s7 + $0x50] sm:$0xff] %v976_v3  ;;  %1024 = vst [vmem:[%s1857_s7 + $0xd0] sm:$0xff] %v992_v4  ;;  %v977_v7 = vadd.f32 %v1432_v5, %v464_v63  ;;  %v993_v8 = vadd.f32 %v1480_v6, %v480_v1  ;;  %v1108_v63 = vmul.f32 (!%p1377_p0), %v1038_v57, %v1038_v57  ;;  %v1040_v1 = vld [vmem:[%s1857_s7 + $0x30] sm:$0xff] (!%p1377_p0)  ;;  %v1041_v5 = vld [vmem:[%s1857_s7 + $0x38] sm:$0xff] (!%p1377_p0) }
 0x17b   : > { %v1136_v60 = vadd.f32 (!%p1377_p0), %v1105_v55, %v1104_v54  ;;  %v1068_v62 = vadd.f32 (!%p1377_p0), %v1067_v58, %v1037_v52  ;;  %v1109_v3 = vmul.f32 (!%p1377_p0), %v1039_v61, %v1039_v61  ;;  %v1122_v55 = vmul.f32 (!%p1377_p0), %v1052_v49, %v1052_v49 }
 0x17c   : > { %1009 = vst [vmem:[%s1857_s7 + $0x58] sm:$0xff] %v977_v7  ;;  %1025 = vst [vmem:[%s1857_s7 + $0xd8] sm:$0xff] %v993_v8  ;;  %v1433_v9 = vpop.f32.mrb[24].mxu0  ;;  %v1481_v10 = vpop.f32.mrb[24].mxu1  ;;  %v1110_v7 = vmul.f32 (!%p1377_p0), %v1040_v1, %v1040_v1 }
 0x17d   : > { %v1434_v12 = vpop.f32.mrb[25].mxu0  ;;  %v1482_v14 = vpop.f32.mrb[25].mxu1  ;;  %v1137_v0 = vadd.f32 (!%p1377_p0), %v1136_v60, %v1106_v56  ;;  %v1069_v2 = vadd.f32 (!%p1377_p0), %v1068_v62, %v1038_v57  ;;  %v1054_v57 = vld [vmem:[%s1857_s7 + $0xa0] sm:$0xff] (!%p1377_p0) }
 0x17e   : > { %v1435_v15 = vadd.f32 %v1434_v12, %v1433_v9  ;;  %v1483_v16 = vadd.f32 %v1482_v14, %v1481_v10  ;;  %v1436_v17 = vpop.f32.mrb[26].mxu0  ;;  %v1484_v18 = vpop.f32.mrb[26].mxu1  ;;  %v1042_v9 = vld [vmem:[%s1857_s7 + $0x40] sm:$0xff] (!%p1377_p0) }
 0x17f   : > { %v1437_v20 = vpop.f32.mrb[27].mxu0  ;;  %v1485_v22 = vpop.f32.mrb[27].mxu1  ;;  %v1138_v4 = vadd.f32 (!%p1377_p0), %v1137_v0, %v1107_v59  ;;  %v1070_v6 = vadd.f32 (!%p1377_p0), %v1069_v2, %v1039_v61  ;;  %v1123_v59 = vmul.f32 (!%p1377_p0), %v1053_v53, %v1053_v53  ;;  %v1055_v61 = vld [vmem:[%s1857_s7 + $0xa8] sm:$0xff] (!%p1377_p0) }
 0x180   : > { %v978_v23 = vadd.f32 %v1435_v15, %v465_v11  ;;  %v994_v24 = vadd.f32 %v1483_v16, %v481_v13  ;;  %v1438_v25 = vadd.f32 %v1437_v20, %v1436_v17  ;;  %v1486_v26 = vadd.f32 %v1485_v22, %v1484_v18  ;;  %v1043_v13 = vld [vmem:[%s1857_s7 + $0x48] sm:$0xff] (!%p1377_p0) }
 0x181   : > { %v1139_v8 = vadd.f32 (!%p1377_p0), %v1138_v4, %v1108_v63  ;;  %v1071_v10 = vadd.f32 (!%p1377_p0), %v1070_v6, %v1040_v1  ;;  %v1111_v11 = vmul.f32 (!%p1377_p0), %v1041_v5, %v1041_v5  ;;  %v1112_v15 = vmul.f32 (!%p1377_p0), %v1042_v9, %v1042_v9  ;;  %v1044_v17 = vld [vmem:[%s1857_s7 + $0x50] sm:$0xff] (!%p1377_p0) }
 0x182   : > { %1010 = vst [vmem:[%s1857_s7 + $0x60] sm:$0xff] %v978_v23  ;;  %1026 = vst [vmem:[%s1857_s7 + $0xe0] sm:$0xff] %v994_v24  ;;  %v979_v27 = vadd.f32 %v1438_v25, %v466_v19  ;;  %v995_v28 = vadd.f32 %v1486_v26, %v482_v21  ;;  %v1113_v19 = vmul.f32 (!%p1377_p0), %v1043_v13, %v1043_v13  ;;  %v1056_v1 = vld [vmem:[%s1857_s7 + $0xb0] sm:$0xff] (!%p1377_p0) }
 0x183   : > { %v1140_v12 = vadd.f32 (!%p1377_p0), %v1139_v8, %v1109_v3  ;;  %v1072_v14 = vadd.f32 (!%p1377_p0), %v1071_v10, %v1041_v5  ;;  %v1045_v21 = vld [vmem:[%s1857_s7 + $0x58] sm:$0xff] (!%p1377_p0)  ;;  %v1114_v23 = vmul.f32 (!%p1377_p0), %v1044_v17, %v1044_v17  ;;  %v1124_v63 = vmul.f32 (!%p1377_p0), %v1054_v57, %v1054_v57 }
 0x184   : > { %1011 = vst [vmem:[%s1857_s7 + $0x68] sm:$0xff] %v979_v27  ;;  %1027 = vst [vmem:[%s1857_s7 + $0xe8] sm:$0xff] %v995_v28  ;;  %v1439_v29 = vpop.f32.mrb[28].mxu0  ;;  %v1487_v30 = vpop.f32.mrb[28].mxu1  ;;  %v1115_v27 = vmul.f32 (!%p1377_p0), %v1045_v21, %v1045_v21  ;;  %v1125_v3 = vmul.f32 (!%p1377_p0), %v1055_v61, %v1055_v61  ;;  %v1057_v5 = vld [vmem:[%s1857_s7 + $0xb8] sm:$0xff] (!%p1377_p0) }
 0x185   : > { %v1440_v32 = vpop.f32.mrb[29].mxu0  ;;  %v1488_v34 = vpop.f32.mrb[29].mxu1  ;;  %v1141_v16 = vadd.f32 (!%p1377_p0), %v1140_v12, %v1110_v7  ;;  %v1073_v18 = vadd.f32 (!%p1377_p0), %v1072_v14, %v1042_v9  ;;  %v1126_v7 = vmul.f32 (!%p1377_p0), %v1056_v1, %v1056_v1  ;;  %v1058_v9 = vld [vmem:[%s1857_s7 + $0xc0] sm:$0xff] (!%p1377_p0) }
 0x186   : > { %v1441_v35 = vadd.f32 %v1440_v32, %v1439_v29  ;;  %v1489_v36 = vadd.f32 %v1488_v34, %v1487_v30  ;;  %v1442_v37 = vpop.f32.mrb[30].mxu0  ;;  %v1490_v38 = vpop.f32.mrb[30].mxu1  ;;  %1033 = sbr.rel (%p1377_p0) target bundleno = 454 (0x1c6), region = 74 }
 0x187   : > { %v1443_v40 = vpop.f32.mrb[31].mxu0  ;;  %v1491_v42 = vpop.f32.mrb[31].mxu1  ;;  %v1142_v20 = vadd.f32 (!%p1377_p0), %v1141_v16, %v1111_v11  ;;  %v1074_v22 = vadd.f32 (!%p1377_p0), %v1073_v18, %v1043_v13  ;;  %v1127_v11 = vmul.f32 (!%p1377_p0), %v1057_v5, %v1057_v5  ;;  %v1059_v13 = vld [vmem:[%s1857_s7 + $0xc8] sm:$0xff] (!%p1377_p0) }
 0x188   : > { %v980_v43 = vadd.f32 %v1441_v35, %v467_v31  ;;  %v996_v44 = vadd.f32 %v1489_v36, %v483_v33  ;;  %v1444_v45 = vadd.f32 %v1443_v40, %v1442_v37  ;;  %v1492_v46 = vadd.f32 %v1491_v42, %v1490_v38 }
 0x189   : > { %v1143_v24 = vadd.f32 (!%p1377_p0), %v1142_v20, %v1112_v15  ;;  %v1046_v25 = vld [vmem:[%s1857_s7 + $0x60] sm:$0xff] (!%p1377_p0)  ;;  %v1075_v26 = vadd.f32 (!%p1377_p0), %v1074_v22, %v1044_v17  ;;  %v1128_v15 = vmul.f32 (!%p1377_p0), %v1058_v9, %v1058_v9  ;;  %v1060_v17 = vld [vmem:[%s1857_s7 + $0xd0] sm:$0xff] (!%p1377_p0) }
 0x18a   : > { %1012 = vst [vmem:[%s1857_s7 + $0x70] sm:$0xff] %v980_v43  ;;  %1028 = vst [vmem:[%s1857_s7 + $0xf0] sm:$0xff] %v996_v44  ;;  %v981_v47 = vadd.f32 %v1444_v45, %v468_v39  ;;  %v997_v48 = vadd.f32 %v1492_v46, %v484_v41  ;;  %v1116_v31 = vmul.f32 (!%p1377_p0), %v1046_v25, %v1046_v25  ;;  %v1050_v41 = vld [vmem:[%s1857_s7 + $0x80] sm:$0xff] (!%p1377_p0)  ;;  %v1051_v45 = vld [vmem:[%s1857_s7 + $0x88] sm:$0xff] (!%p1377_p0) }
 0x18b   : > { %v1144_v28 = vadd.f32 (!%p1377_p0), %v1143_v24, %v1113_v19  ;;  %v1047_v29 = vld [vmem:[%s1857_s7 + $0x68] sm:$0xff] (!%p1377_p0)  ;;  %v1076_v30 = vadd.f32 (!%p1377_p0), %v1075_v26, %v1045_v21  ;;  %v1121_v51 = vmul.f32 (!%p1377_p0), %v1051_v45, %v1051_v45  ;;  %v1129_v19 = vmul.f32 (!%p1377_p0), %v1059_v13, %v1059_v13  ;;  %v1061_v21 = vld [vmem:[%s1857_s7 + $0xd8] sm:$0xff] (!%p1377_p0) }
 0x18c   : > { %1013 = vst [vmem:[%s1857_s7 + $0x78] sm:$0xff] %v981_v47  ;;  %1029 = vst [vmem:[%s1857_s7 + $0xf8] sm:$0xff] %v997_v48  ;;  %v1117_v35 = vmul.f32 (!%p1377_p0), %v1047_v29, %v1047_v29  ;;  %v1120_v47 = vmul.f32 (!%p1377_p0), %v1050_v41, %v1050_v41 }
 0x18d   : > { %v1145_v32 = vadd.f32 %v1144_v28, %v1114_v23  ;;  %v1077_v34 = vadd.f32 %v1076_v30, %v1046_v25  ;;  %v1130_v23 = vmul.f32 %v1060_v17, %v1060_v17  ;;  %v1062_v25 = vld [vmem:[%s1857_s7 + $0xe0] sm:$0xff] }
 0x18f   : > { %v1146_v36 = vadd.f32 %v1145_v32, %v1115_v27  ;;  %v1078_v38 = vadd.f32 %v1077_v34, %v1047_v29  ;;  %v1131_v27 = vmul.f32 %v1061_v21, %v1061_v21  ;;  %v1063_v29 = vld [vmem:[%s1857_s7 + $0xe8] sm:$0xff] }
 0x191   : > { %v1048_v33 = vld [vmem:[%s1857_s7 + $0x70] sm:$0xff]  ;;  %v1147_v40 = vadd.f32 %v1146_v36, %v1116_v31  ;;  %v1132_v31 = vmul.f32 %v1062_v25, %v1062_v25 }
 0x192   : > { %v1118_v39 = vmul.f32 %v1048_v33, %v1048_v33  ;;  %v1079_v42 = vadd.f32 %v1078_v38, %v1048_v33  ;;  %v1064_v33 = vld [vmem:[%s1857_s7 + $0xf0] sm:$0xff] }
 0x193   : > { %v1049_v37 = vld [vmem:[%s1857_s7 + $0x78] sm:$0xff]  ;;  %v1148_v44 = vadd.f32 %v1147_v40, %v1117_v35  ;;  %v1133_v35 = vmul.f32 %v1063_v29, %v1063_v29 }
 0x194   : > { %v1119_v43 = vmul.f32 %v1049_v37, %v1049_v37  ;;  %v1080_v46 = vadd.f32 %v1079_v42, %v1049_v37  ;;  %v1065_v37 = vld [vmem:[%s1857_s7 + $0xf8] sm:$0xff] }
 0x195   : > { %v1149_v48 = vadd.f32 %v1148_v44, %v1118_v39  ;;  %v1134_v39 = vmul.f32 %v1064_v33, %v1064_v33  ;;  %v1135_v42 = vmul.f32 %v1065_v37, %v1065_v37 }
 0x196   : > { %v1081_v50 = vadd.f32 %v1080_v46, %v1050_v41 }
 0x197   : > { %v1150_v52 = vadd.f32 %v1149_v48, %v1119_v43 }
 0x198   : > { %v1082_v54 = vadd.f32 %v1081_v50, %v1051_v45 }
 0x199   : > { %v1151_v56 = vadd.f32 %v1150_v52, %v1120_v47 }
 0x19a   : > { %v1083_v58 = vadd.f32 %v1082_v54, %v1052_v49 }
 0x19b   : > { %v1152_v60 = vadd.f32 %v1151_v56, %v1121_v51 }
 0x19c   : > { %v1084_v62 = vadd.f32 %v1083_v58, %v1053_v53 }
 0x19d   : > { %v1153_v0 = vadd.f32 %v1152_v60, %v1122_v55 }
 0x19e   : > { %v1085_v2 = vadd.f32 %v1084_v62, %v1054_v57 }
 0x19f   : > { %v1154_v4 = vadd.f32 %v1153_v0, %v1123_v59 }
 0x1a0   : > { %v1086_v6 = vadd.f32 %v1085_v2, %v1055_v61 }
 0x1a1   : > { %v1155_v8 = vadd.f32 %v1154_v4, %v1124_v63 }
 0x1a2   : > { %v1087_v10 = vadd.f32 %v1086_v6, %v1056_v1 }
 0x1a3   : > { %v1156_v12 = vadd.f32 %v1155_v8, %v1125_v3 }
 0x1a4   : > { %v1088_v14 = vadd.f32 %v1087_v10, %v1057_v5 }
 0x1a5   : > { %v1157_v16 = vadd.f32 %v1156_v12, %v1126_v7 }
 0x1a6   : > { %v1089_v18 = vadd.f32 %v1088_v14, %v1058_v9 }
 0x1a7   : > { %v1158_v20 = vadd.f32 %v1157_v16, %v1127_v11 }
 0x1a8   : > { %v1090_v22 = vadd.f32 %v1089_v18, %v1059_v13 }
 0x1a9   : > { %v1159_v24 = vadd.f32 %v1158_v20, %v1128_v15 }
 0x1aa   : > { %v1091_v26 = vadd.f32 %v1090_v22, %v1060_v17 }
 0x1ab   : > { %v1160_v28 = vadd.f32 %v1159_v24, %v1129_v19 }
 0x1ac   : > { %v1092_v30 = vadd.f32 %v1091_v26, %v1061_v21 }
 0x1ad   : > { %v1161_v32 = vadd.f32 %v1160_v28, %v1130_v23 }
 0x1ae   : > { %v1093_v34 = vadd.f32 %v1092_v30, %v1062_v25 }
 0x1af   : > { %v1162_v36 = vadd.f32 %v1161_v32, %v1131_v27 }
 0x1b0   : > { %v1094_v38 = vadd.f32 %v1093_v34, %v1063_v29 }
 0x1b1   : > { %v1163_v40 = vadd.f32 %v1162_v36, %v1132_v31 }
 0x1b2   : > { %v1095_v41 = vadd.f32 %v1094_v38, %v1064_v33 }
 0x1b3   : > { %v1164_v43 = vadd.f32 %v1163_v40, %v1133_v35 }
 0x1b4   : > { %v1096_v44 = vadd.f32 %v1095_v41, %v1065_v37 }
 0x1b5   : > { %v1165_v45 = vadd.f32 %v1164_v43, %v1134_v39 }
 0x1b6   : > { %v1097_v46 = vrot.slane %v1096_v44, 4 }
 0x1b7   : > { %v1166_v47 = vadd.f32 %v1165_v45, %v1135_v42 }
 0x1b8   : > { %v1098_v48 = vadd.f32 %v1097_v46, %v1096_v44 }
 0x1b9   : > { %v1167_v49 = vrot.slane %v1166_v47, 4 }
 0x1ba   : > { %v1099_v50 = vrot.slane %v1098_v48, 2 }
 0x1bb   : > { %v1168_v51 = vadd.f32 %v1167_v49, %v1166_v47 }
 0x1bc   : > { %v1100_v52 = vadd.f32 %v1099_v50, %v1098_v48 }
 0x1bd   : > { %v1169_v53 = vrot.slane %v1168_v51, 2 }
 0x1be   : > { %v1101_v54 = vrot.slane %v1100_v52, 1 }
 0x1bf   : > { %v1170_v55 = vadd.f32 %v1169_v53, %v1168_v51 }
 0x1c0   : > { %v1102_v56 = vadd.f32 %v1101_v54, %v1100_v52 }
 0x1c1   : > { %v1171_v57 = vrot.slane %v1170_v55, 1 }
 0x1c2   : > { %1103 = vst [vmem:[%s412_s10] sm:$0x1] %v1102_v56 }
 0x1c3   : > { %v1172_v58 = vadd.f32 %v1171_v57, %v1170_v55 }
 0x1c5   : > { %1173 = vst [vmem:[%s415_s13] sm:$0x1] %v1172_v58 }
 0x1c6 PF: > { %s15_s21 = sadd.s32 1, %s1684_s21   ;;  %s2083_s15 = smov %s1664_s16 }
 0x1c7   : > { %p12_p1 = scmp.ge.s32.totalorder %s15_s21, 10   ;;  %s2084_s16 = smov %s1763_s28 }
 0x1c8   : > { %s2085_s17 = smov %s1676_s19  ;;  %s2086_s18 = smov %s1680_s20 }
 0x1c9   : > { %s2087_s19 = smov %s2090_s22  ;;  %s2088_s20 = smov %s2094_s23 }
 0x1ca   :  { %14 = sbr.rel (!%p12_p1) target bundleno = 4 (0x4), region = 136 }

// kernel: image_encoder_forward.11
= control target key start
LH: loop header
LB: loop body
LE: loop exit
PB: predicated region body
PF: predicated region fallthrough
CT: control target
= control target key end

     0   :  { %s2019_s15 = smov 0   ;;  %s2021_s16 = smov 0   ;;  %s2644_s0 = inlined_call_operand.vmem [shape: bf16[128,2048], index: 0, kind: input, shape index: {}]   ;;  %s2645_s1 = inlined_call_operand.vmem [shape: bf16[2048,256], index: 1, kind: input, shape index: {}]   ;;  %s2646_s2 = inlined_call_operand.vmem [shape: f32[128,256], index: 2, kind: output, shape index: {0}]   ;;  %s2647_s3 = inlined_call_operand.vmem [shape: f32[1,1,256], index: 3, kind: output, shape index: {1}]   ;;  %s2648_s4 = inlined_call_operand.vmem [shape: f32[1,1,256], index: 4, kind: output, shape index: {2}]  }
   0x1   :  { %s2023_s17 = smov 0   ;;  %s2025_s18 = smov 0  }
   0x2   :  { %s2027_s19 = smov 0  }
   0x3 LB: > { %s24_s20 = sadd.s32 1, %s1986_s18  ;;  %p43_p1 = scmp.ne.s32.totalorder %s1978_s16, %s1974_s15  ;;  %s1990_s19 = sphi %s2027_s19, %s15_s19   ;;  %s1986_s18 = sphi %s2025_s18, %s2652_s18   ;;  %s1982_s17 = sphi %s2023_s17, %s2651_s17   ;;  %s1978_s16 = sphi %s2021_s16, %s2650_s16   ;;  %s1974_s15 = sphi %s2019_s15, %s2649_s15  }
   0x4   : > { %p25_p0 = scmp.ge.s32.totalorder %s24_s20, 4  ;;  %p44_p2 = scmp.eq.s32.totalorder %s1990_s19, 0 }
   0x5   : > { %s36_s22 = sadd.s32 1, %s1978_s16  ;;  %p1619_p5 = scmp.ge.s32.totalorder %s1990_s19, 4 }
   0x6   : > { %s2654_s20 = smov (%p25_p0, %s24_s20), 0  ;;  %p45_p3 = por %p44_p2, %p43_p1 }
   0x7   : > { %s32_s21 = ssub.s32 %s1986_s18, %s2654_s20  ;;  %173 = sbr.rel (%p1619_p5) target bundleno = 34 (0x22), region = 16 }
   0x8   : > { %p34_p4 = scmp.eq.s32.totalorder %s32_s21, 0 }
   0xa   : > { %s2054_s23 = scalar_select %p34_p4, %s1978_s16, %s36_s22  }
   0xe   : > { %176 = sbr.rel (!%p45_p3) target bundleno = 34 (0x22), region = 20  ;;  %s178_s24 = sand.u32 (%p45_p3), 1, %s1978_s16  }
   0xf   : > { %s1732_s25 = sshll.u32 (%p45_p3), %s1986_s18, 4  ;;  %s1620_s26 = sshll.u32 (%p45_p3), %s178_s24, 8 }
  0x10   : > { %s2062_s29 = scalar_lea.vmem (%p45_p3), %s2644_s0, %s1732_s25  ;;  %s2067_s30 = scalar_lea.vmem (%p45_p3), [#allocation2], %s1620_s26 }
  0x11   : > { %v199_v0 = vld [vmem:[%s2062_s29] sm:$0xff] (%p45_p3)  ;;  %v201_v1 = vld [vmem:[%s2062_s29 + $0x8] sm:$0xff] (%p45_p3) }
  0x12   : > { %v203_v2 = vld [vmem:[%s2062_s29 + $0x40] sm:$0xff] (%p45_p3)  ;;  %200 = vst [vmem:[%s2067_s30] sm:$0xff] (%p45_p3), %v199_v0  ;;  %202 = vst [vmem:[%s2067_s30 + $0x8] sm:$0xff] (%p45_p3), %v201_v1  ;;  %v205_v3 = vld [vmem:[%s2062_s29 + $0x48] sm:$0xff] (%p45_p3) }
  0x13   : > { %204 = vst [vmem:[%s2067_s30 + $0x10] sm:$0xff] (%p45_p3), %v203_v2  ;;  %v207_v4 = vld [vmem:[%s2062_s29 + $0x80] sm:$0xff] (%p45_p3)  ;;  %v209_v5 = vld [vmem:[%s2062_s29 + $0x88] sm:$0xff] (%p45_p3)  ;;  %206 = vst [vmem:[%s2067_s30 + $0x18] sm:$0xff] (%p45_p3), %v205_v3 }
  0x14   : > { %208 = vst [vmem:[%s2067_s30 + $0x20] sm:$0xff] (%p45_p3), %v207_v4  ;;  %210 = vst [vmem:[%s2067_s30 + $0x28] sm:$0xff] (%p45_p3), %v209_v5  ;;  %v211_v6 = vld [vmem:[%s2062_s29 + $0xc0] sm:$0xff] (%p45_p3)  ;;  %v213_v7 = vld [vmem:[%s2062_s29 + $0xc8] sm:$0xff] (%p45_p3) }
  0x15   : > { %v215_v8 = vld [vmem:[%s2062_s29 + $0x100] sm:$0xff]  ;;  %212 = vst [vmem:[%s2067_s30 + $0x30] sm:$0xff] %v211_v6  ;;  %214 = vst [vmem:[%s2067_s30 + $0x38] sm:$0xff] %v213_v7  ;;  %v217_v9 = vld [vmem:[%s2062_s29 + $0x108] sm:$0xff] }
  0x16   : > { %216 = vst [vmem:[%s2067_s30 + $0x40] sm:$0xff] %v215_v8  ;;  %v219_v10 = vld [vmem:[%s2062_s29 + $0x140] sm:$0xff]  ;;  %v221_v11 = vld [vmem:[%s2062_s29 + $0x148] sm:$0xff]  ;;  %218 = vst [vmem:[%s2067_s30 + $0x48] sm:$0xff] %v217_v9 }
  0x17   : > { %220 = vst [vmem:[%s2067_s30 + $0x50] sm:$0xff] %v219_v10  ;;  %222 = vst [vmem:[%s2067_s30 + $0x58] sm:$0xff] %v221_v11  ;;  %v223_v12 = vld [vmem:[%s2062_s29 + $0x180] sm:$0xff]  ;;  %v225_v13 = vld [vmem:[%s2062_s29 + $0x188] sm:$0xff] }
  0x18   : > { %v227_v14 = vld [vmem:[%s2062_s29 + $0x1c0] sm:$0xff]  ;;  %224 = vst [vmem:[%s2067_s30 + $0x60] sm:$0xff] %v223_v12  ;;  %226 = vst [vmem:[%s2067_s30 + $0x68] sm:$0xff] %v225_v13  ;;  %v229_v15 = vld [vmem:[%s2062_s29 + $0x1c8] sm:$0xff] }
  0x19   : > { %228 = vst [vmem:[%s2067_s30 + $0x70] sm:$0xff] %v227_v14  ;;  %v231_v16 = vld [vmem:[%s2062_s29 + $0x200] sm:$0xff]  ;;  %v233_v17 = vld [vmem:[%s2062_s29 + $0x208] sm:$0xff]  ;;  %230 = vst [vmem:[%s2067_s30 + $0x78] sm:$0xff] %v229_v15 }
  0x1a   : > { %232 = vst [vmem:[%s2067_s30 + $0x80] sm:$0xff] %v231_v16  ;;  %234 = vst [vmem:[%s2067_s30 + $0x88] sm:$0xff] %v233_v17  ;;  %v235_v18 = vld [vmem:[%s2062_s29 + $0x240] sm:$0xff]  ;;  %v237_v19 = vld [vmem:[%s2062_s29 + $0x248] sm:$0xff] }
  0x1b   : > { %v239_v20 = vld [vmem:[%s2062_s29 + $0x280] sm:$0xff]  ;;  %236 = vst [vmem:[%s2067_s30 + $0x90] sm:$0xff] %v235_v18  ;;  %238 = vst [vmem:[%s2067_s30 + $0x98] sm:$0xff] %v237_v19  ;;  %v241_v21 = vld [vmem:[%s2062_s29 + $0x288] sm:$0xff] }
  0x1c   : > { %240 = vst [vmem:[%s2067_s30 + $0xa0] sm:$0xff] %v239_v20  ;;  %v243_v22 = vld [vmem:[%s2062_s29 + $0x2c0] sm:$0xff]  ;;  %v245_v23 = vld [vmem:[%s2062_s29 + $0x2c8] sm:$0xff]  ;;  %242 = vst [vmem:[%s2067_s30 + $0xa8] sm:$0xff] %v241_v21 }
  0x1d   : > { %244 = vst [vmem:[%s2067_s30 + $0xb0] sm:$0xff] %v243_v22  ;;  %246 = vst [vmem:[%s2067_s30 + $0xb8] sm:$0xff] %v245_v23  ;;  %v247_v24 = vld [vmem:[%s2062_s29 + $0x300] sm:$0xff]  ;;  %v249_v25 = vld [vmem:[%s2062_s29 + $0x308] sm:$0xff] }
  0x1e   : > { %v251_v26 = vld [vmem:[%s2062_s29 + $0x340] sm:$0xff]  ;;  %248 = vst [vmem:[%s2067_s30 + $0xc0] sm:$0xff] %v247_v24  ;;  %250 = vst [vmem:[%s2067_s30 + $0xc8] sm:$0xff] %v249_v25  ;;  %v253_v27 = vld [vmem:[%s2062_s29 + $0x348] sm:$0xff] }
  0x1f   : > { %252 = vst [vmem:[%s2067_s30 + $0xd0] sm:$0xff] %v251_v26  ;;  %v255_v28 = vld [vmem:[%s2062_s29 + $0x380] sm:$0xff]  ;;  %v257_v29 = vld [vmem:[%s2062_s29 + $0x388] sm:$0xff]  ;;  %254 = vst [vmem:[%s2067_s30 + $0xd8] sm:$0xff] %v253_v27 }
  0x20   : > { %256 = vst [vmem:[%s2067_s30 + $0xe0] sm:$0xff] %v255_v28  ;;  %258 = vst [vmem:[%s2067_s30 + $0xe8] sm:$0xff] %v257_v29  ;;  %v259_v30 = vld [vmem:[%s2062_s29 + $0x3c0] sm:$0xff]  ;;  %v261_v31 = vld [vmem:[%s2062_s29 + $0x3c8] sm:$0xff] }
  0x21   : > { %260 = vst [vmem:[%s2067_s30 + $0xf0] sm:$0xff] %v259_v30  ;;  %262 = vst [vmem:[%s2067_s30 + $0xf8] sm:$0xff] %v261_v31 }
  0x22 PF: > { %p1623_p6 = scmp.ge.s32.totalorder %s1990_s19, 1  ;;  %p277_p7 = scmp.lt.s32.totalorder %s1990_s19, 5 }
  0x24   : > { %p278_p8 = pnand %p1623_p6, %p277_p7 }
  0x25   : > { %s284_s5 = sand.u32 (!%p278_p8), 1, %s1974_s15   ;;  %s1625_s6 = sshll.u32 (!%p278_p8), %s1982_s17, 6 }
  0x26   : > { %281 = sbr.rel (%p278_p8) target bundleno = 446 (0x1be), region = 47  ;;  %s1624_s7 = sshll.u32 (!%p278_p8), %s284_s5, 8 }
  0x27   : > { %p327_p9 = scmp.lt.s32.totalorder (!%p278_p8), %s1625_s6, 255  ;;  %s2139_s12 = scalar_lea.vmem (!%p278_p8), [#allocation2], %s1624_s7 }
  0x28   : > { %p1628_p10 = scmp.ne.s32.totalorder (!%p278_p8), %s1982_s17, 0 }
  0x2d   : > { %s2656_s6 = smov (!%p327_p9, %s1625_s6), 255  ;;  %351 = sbr.rel (%p1628_p10) target bundleno = 63 (0x3f), region = 55 }
  0x2e   : > { %s1733_s8 = sshll.u32 %s2656_s6, 3  ;;  %v1992_v32 = vmov (!%p1628_p10), 0.0  }
  0x2f   : > { %s2137_s11 = scalar_lea.vmem %s2645_s1, %s1733_s8  ;;  %352 = vst [vmem:[%s2646_s2] sm:$0xff] (!%p1628_p10), %v1992_v32  ;;  %353 = vst [vmem:[%s2646_s2 + $0x8] sm:$0xff] (!%p1628_p10), %v1992_v32 }
  0x30   : > { %354 = vst [vmem:[%s2646_s2 + $0x10] sm:$0xff] (!%p1628_p10), %v1992_v32  ;;  %355 = vst [vmem:[%s2646_s2 + $0x18] sm:$0xff] (!%p1628_p10), %v1992_v32 }
  0x31   : > { %356 = vst [vmem:[%s2646_s2 + $0x20] sm:$0xff] (!%p1628_p10), %v1992_v32  ;;  %357 = vst [vmem:[%s2646_s2 + $0x28] sm:$0xff] (!%p1628_p10), %v1992_v32 }
  0x32   : > { %358 = vst [vmem:[%s2646_s2 + $0x30] sm:$0xff] (!%p1628_p10), %v1992_v32  ;;  %359 = vst [vmem:[%s2646_s2 + $0x38] sm:$0xff] (!%p1628_p10), %v1992_v32 }
  0x33   : > { %360 = vst [vmem:[%s2646_s2 + $0x40] sm:$0xff] (!%p1628_p10), %v1992_v32  ;;  %361 = vst [vmem:[%s2646_s2 + $0x48] sm:$0xff] (!%p1628_p10), %v1992_v32 }
  0x34   : > { %362 = vst [vmem:[%s2646_s2 + $0x50] sm:$0xff] %v1992_v32  ;;  %363 = vst [vmem:[%s2646_s2 + $0x58] sm:$0xff] %v1992_v32 }
  0x35   : > { %364 = vst [vmem:[%s2646_s2 + $0x60] sm:$0xff] %v1992_v32  ;;  %365 = vst [vmem:[%s2646_s2 + $0x68] sm:$0xff] %v1992_v32 }
  0x36   : > { %366 = vst [vmem:[%s2646_s2 + $0x70] sm:$0xff] %v1992_v32  ;;  %367 = vst [vmem:[%s2646_s2 + $0x78] sm:$0xff] %v1992_v32 }
  0x37   : > { %368 = vst [vmem:[%s2646_s2 + $0x80] sm:$0xff] %v1992_v32  ;;  %369 = vst [vmem:[%s2646_s2 + $0x88] sm:$0xff] %v1992_v32 }
  0x38   : > { %370 = vst [vmem:[%s2646_s2 + $0x90] sm:$0xff] %v1992_v32  ;;  %371 = vst [vmem:[%s2646_s2 + $0x98] sm:$0xff] %v1992_v32 }
  0x39   : > { %372 = vst [vmem:[%s2646_s2 + $0xa0] sm:$0xff] %v1992_v32  ;;  %373 = vst [vmem:[%s2646_s2 + $0xa8] sm:$0xff] %v1992_v32 }
  0x3a   : > { %374 = vst [vmem:[%s2646_s2 + $0xb0] sm:$0xff] %v1992_v32  ;;  %375 = vst [vmem:[%s2646_s2 + $0xb8] sm:$0xff] %v1992_v32 }
  0x3b   : > { %376 = vst [vmem:[%s2646_s2 + $0xc0] sm:$0xff] %v1992_v32  ;;  %377 = vst [vmem:[%s2646_s2 + $0xc8] sm:$0xff] %v1992_v32 }
  0x3c   : > { %378 = vst [vmem:[%s2646_s2 + $0xd0] sm:$0xff] %v1992_v32  ;;  %379 = vst [vmem:[%s2646_s2 + $0xd8] sm:$0xff] %v1992_v32 }
  0x3d   : > { %380 = vst [vmem:[%s2646_s2 + $0xe0] sm:$0xff] %v1992_v32  ;;  %381 = vst [vmem:[%s2646_s2 + $0xe8] sm:$0xff] %v1992_v32 }
  0x3e   : > { %382 = vst [vmem:[%s2646_s2 + $0xf0] sm:$0xff] %v1992_v32  ;;  %383 = vst [vmem:[%s2646_s2 + $0xf8] sm:$0xff] %v1992_v32 }
  0x3f PF: > { %v1808_v33 = vld [vmem:[%s2137_s11 + $0x4] ss:$8 sps:$4 sm:$0xff]   ;;  %v1812_v35 = vld [vmem:[%s2137_s11] ss:$8 sps:$4 sm:$0xff]   ;;  %v1814_v37 = vld [vmem:[%s2137_s11 + $0x14] ss:$8 sps:$4 sm:$0xff]  }
  0x40   : > { %v1810_v34 = vld [vmem:[%s2137_s11 + $0x104] ss:$8 sps:$4 sm:$0xff]   ;;  %992 = vmatprep.subr.bf16.mxu1 %v1808_v33  ;;  %v1813_v36 = vld [vmem:[%s2137_s11 + $0x100] ss:$8 sps:$4 sm:$0xff]   ;;  %v1816_v38 = vld [vmem:[%s2137_s11 + $0x114] ss:$8 sps:$4 sm:$0xff]  }
  0x41   : > { %1105 = vmatprep.subr.bf16.mxu0 %v1810_v34  ;;  %993 = vmatpush1.bf16.msra.mxu1 %v1812_v35  ;;  %v1818_v39 = vld [vmem:[%s2137_s11 + $0x10] ss:$8 sps:$4 sm:$0xff]   ;;  %v1820_v41 = vld [vmem:[%s2137_s11 + $0x24] ss:$8 sps:$4 sm:$0xff]   ;;  %v1824_v43 = vld [vmem:[%s2137_s11 + $0x20] ss:$8 sps:$4 sm:$0xff]  }
  0x42   : > { %1106 = vmatpush1.bf16.msra.mxu0 %v1813_v36  ;;  %994 = vmatprep.subr.bf16.mxu1 %v1814_v37  ;;  %v1819_v40 = vld [vmem:[%s2137_s11 + $0x110] ss:$8 sps:$4 sm:$0xff]   ;;  %v1822_v42 = vld [vmem:[%s2137_s11 + $0x124] ss:$8 sps:$4 sm:$0xff]   ;;  %v1825_v44 = vld [vmem:[%s2137_s11 + $0x120] ss:$8 sps:$4 sm:$0xff]  }
  0x43   : > { %1107 = vmatprep.subr.bf16.mxu0 %v1816_v38  ;;  %v1826_v45 = vld [vmem:[%s2137_s11 + $0x34] ss:$8 sps:$4 sm:$0xff]   ;;  %v1830_v47 = vld [vmem:[%s2137_s11 + $0x30] ss:$8 sps:$4 sm:$0xff]   ;;  %v1832_v49 = vld [vmem:[%s2137_s11 + $0x44] ss:$8 sps:$4 sm:$0xff]  }
  0x44   : > { %v1828_v46 = vld [vmem:[%s2137_s11 + $0x134] ss:$8 sps:$4 sm:$0xff]   ;;  %v1831_v48 = vld [vmem:[%s2137_s11 + $0x130] ss:$8 sps:$4 sm:$0xff]   ;;  %v1834_v50 = vld [vmem:[%s2137_s11 + $0x144] ss:$8 sps:$4 sm:$0xff]  }
  0x45   : > { %995 = vmatpush1.bf16.msra.mxu1 %v1818_v39  ;;  %v1836_v51 = vld [vmem:[%s2137_s11 + $0x40] ss:$8 sps:$4 sm:$0xff]   ;;  %v1838_v53 = vld [vmem:[%s2137_s11 + $0x54] ss:$8 sps:$4 sm:$0xff]   ;;  %v1842_v55 = vld [vmem:[%s2137_s11 + $0x50] ss:$8 sps:$4 sm:$0xff]  }
  0x46   : > { %1108 = vmatpush1.bf16.msra.mxu0 %v1819_v40  ;;  %996 = vmatprep.subr.bf16.mxu1 %v1820_v41  ;;  %v1837_v52 = vld [vmem:[%s2137_s11 + $0x140] ss:$8 sps:$4 sm:$0xff]   ;;  %v1840_v54 = vld [vmem:[%s2137_s11 + $0x154] ss:$8 sps:$4 sm:$0xff]   ;;  %v1843_v56 = vld [vmem:[%s2137_s11 + $0x150] ss:$8 sps:$4 sm:$0xff]  }
  0x47   : > { %1109 = vmatprep.subr.bf16.mxu0 %v1822_v42  ;;  %v1844_v57 = vld [vmem:[%s2137_s11 + $0x64] ss:$8 sps:$4 sm:$0xff]   ;;  %v1848_v59 = vld [vmem:[%s2137_s11 + $0x60] ss:$8 sps:$4 sm:$0xff]   ;;  %v1850_v61 = vld [vmem:[%s2137_s11 + $0x74] ss:$8 sps:$4 sm:$0xff]  }
  0x48   : > { %v1846_v58 = vld [vmem:[%s2137_s11 + $0x164] ss:$8 sps:$4 sm:$0xff]   ;;  %v1849_v60 = vld [vmem:[%s2137_s11 + $0x160] ss:$8 sps:$4 sm:$0xff]   ;;  %v1852_v62 = vld [vmem:[%s2137_s11 + $0x174] ss:$8 sps:$4 sm:$0xff]  }
  0x49   : > { %997 = vmatpush1.bf16.msra.mxu1 %v1824_v43  ;;  %v1854_v63 = vld [vmem:[%s2137_s11 + $0x70] ss:$8 sps:$4 sm:$0xff]   ;;  %v1856_v1 = vld [vmem:[%s2137_s11 + $0x84] ss:$8 sps:$4 sm:$0xff]   ;;  %v1860_v3 = vld [vmem:[%s2137_s11 + $0x80] ss:$8 sps:$4 sm:$0xff]  }
  0x4a   : > { %1110 = vmatpush1.bf16.msra.mxu0 %v1825_v44  ;;  %998 = vmatprep.subr.bf16.mxu1 %v1826_v45  ;;  %v1855_v0 = vld [vmem:[%s2137_s11 + $0x170] ss:$8 sps:$4 sm:$0xff]   ;;  %v1858_v2 = vld [vmem:[%s2137_s11 + $0x184] ss:$8 sps:$4 sm:$0xff]   ;;  %v1861_v4 = vld [vmem:[%s2137_s11 + $0x180] ss:$8 sps:$4 sm:$0xff]  }
  0x4b   : > { %1111 = vmatprep.subr.bf16.mxu0 %v1828_v46  ;;  %v1862_v5 = vld [vmem:[%s2137_s11 + $0x94] ss:$8 sps:$4 sm:$0xff]   ;;  %v1866_v7 = vld [vmem:[%s2137_s11 + $0x90] ss:$8 sps:$4 sm:$0xff]   ;;  %v1868_v9 = vld [vmem:[%s2137_s11 + $0xa4] ss:$8 sps:$4 sm:$0xff]  }
  0x4c   : > { %v1864_v6 = vld [vmem:[%s2137_s11 + $0x194] ss:$8 sps:$4 sm:$0xff]   ;;  %v1867_v8 = vld [vmem:[%s2137_s11 + $0x190] ss:$8 sps:$4 sm:$0xff]   ;;  %v1870_v10 = vld [vmem:[%s2137_s11 + $0x1a4] ss:$8 sps:$4 sm:$0xff]  }
  0x4d   : > { %999 = vmatpush1.bf16.msra.mxu1 %v1830_v47  ;;  %v1872_v11 = vld [vmem:[%s2137_s11 + $0xa0] ss:$8 sps:$4 sm:$0xff]   ;;  %v1874_v13 = vld [vmem:[%s2137_s11 + $0xb4] ss:$8 sps:$4 sm:$0xff]   ;;  %v1878_v15 = vld [vmem:[%s2137_s11 + $0xb0] ss:$8 sps:$4 sm:$0xff]  }
  0x4e   : > { %1112 = vmatpush1.bf16.msra.mxu0 %v1831_v48  ;;  %1000 = vmatprep.subr.bf16.mxu1 %v1832_v49  ;;  %v1873_v12 = vld [vmem:[%s2137_s11 + $0x1a0] ss:$8 sps:$4 sm:$0xff]   ;;  %v1876_v14 = vld [vmem:[%s2137_s11 + $0x1b4] ss:$8 sps:$4 sm:$0xff]   ;;  %v1879_v16 = vld [vmem:[%s2137_s11 + $0x1b0] ss:$8 sps:$4 sm:$0xff]  }
  0x4f   : > { %1113 = vmatprep.subr.bf16.mxu0 %v1834_v50  ;;  %v1880_v17 = vld [vmem:[%s2137_s11 + $0xc4] ss:$8 sps:$4 sm:$0xff]   ;;  %v1884_v21 = vld [vmem:[%s2137_s11 + $0xc0] ss:$8 sps:$4 sm:$0xff]   ;;  %v1886_v23 = vld [vmem:[%s2137_s11 + $0xd4] ss:$8 sps:$4 sm:$0xff]  }
  0x50   : > { %v1906_v18 = vld [vmem:[%s2139_s12 + $0x4] ss:$16 sps:$4 sm:$0xff]   ;;  %v1909_v20 = vld [vmem:[%s2139_s12 + $0xc] ss:$16 sps:$4 sm:$0xff]   ;;  %v1885_v22 = vld [vmem:[%s2137_s11 + $0x1c0] ss:$8 sps:$4 sm:$0xff]  }
  0x51   : > { %1001 = vmatpush1.bf16.msra.mxu1 %v1836_v51  ;;  %v1882_v19 = vld [vmem:[%s2137_s11 + $0x1c4] ss:$8 sps:$4 sm:$0xff]   ;;  %1024 = vmatprep.mubr.bf16.mxu1 %v1906_v18  ;;  %v1888_v24 = vld [vmem:[%s2137_s11 + $0x1d4] ss:$8 sps:$4 sm:$0xff]   ;;  %v1890_v25 = vld [vmem:[%s2137_s11 + $0xd0] ss:$8 sps:$4 sm:$0xff]  }
  0x52   : > { %1114 = vmatpush1.bf16.msra.mxu0 %v1837_v52  ;;  %1002 = vmatprep.subr.bf16.mxu1 %v1838_v53  ;;  %v1891_v26 = vld [vmem:[%s2137_s11 + $0x1d0] ss:$8 sps:$4 sm:$0xff]   ;;  %v1892_v27 = vld [vmem:[%s2137_s11 + $0xe4] ss:$8 sps:$4 sm:$0xff]   ;;  %v1896_v29 = vld [vmem:[%s2137_s11 + $0xe0] ss:$8 sps:$4 sm:$0xff]  }
  0x53   : > { %1115 = vmatprep.subr.bf16.mxu0 %v1840_v54  ;;  %1137 = vmatprep.mubr.bf16.mxu0 %v1909_v20  ;;  %v1894_v28 = vld [vmem:[%s2137_s11 + $0x1e4] ss:$8 sps:$4 sm:$0xff]   ;;  %v1897_v30 = vld [vmem:[%s2137_s11 + $0x1e0] ss:$8 sps:$4 sm:$0xff]   ;;  %v1898_v31 = vld [vmem:[%s2137_s11 + $0xf4] ss:$8 sps:$4 sm:$0xff]  }
  0x54   : > { %v1900_v32 = vld [vmem:[%s2137_s11 + $0x1f4] ss:$8 sps:$4 sm:$0xff]   ;;  %v1902_v33 = vld [vmem:[%s2137_s11 + $0xf0] ss:$8 sps:$4 sm:$0xff]   ;;  %p1725_p11 = scmp.ne.s32.totalorder %s1982_s17, 3 }
  0x55   : > { %1003 = vmatpush1.bf16.msra.mxu1 %v1842_v55  ;;  %v1903_v34 = vld [vmem:[%s2137_s11 + $0x1f0] ss:$8 sps:$4 sm:$0xff]   ;;  %v1910_v37 = vld [vmem:[%s2139_s12 + $0x24] ss:$16 sps:$4 sm:$0xff]   ;;  %v1912_v38 = vld [vmem:[%s2139_s12 + $0x2c] ss:$16 sps:$4 sm:$0xff]  }
  0x56   : > { %1116 = vmatpush1.bf16.msra.mxu0 %v1843_v56  ;;  %1004 = vmatprep.subr.bf16.mxu1 %v1844_v57  ;;  %v1904_v35 = vld [vmem:[%s2139_s12] ss:$16 sps:$4 sm:$0xff]   ;;  %v1907_v36 = vld [vmem:[%s2139_s12 + $0x8] ss:$16 sps:$4 sm:$0xff]   ;;  %v1916_v41 = vld [vmem:[%s2139_s12 + $0x44] ss:$16 sps:$4 sm:$0xff]  }
  0x57   : > { %1117 = vmatprep.subr.bf16.mxu0 %v1846_v58  ;;  %v1914_v39 = vld [vmem:[%s2139_s12 + $0x20] ss:$16 sps:$4 sm:$0xff]   ;;  %v1915_v40 = vld [vmem:[%s2139_s12 + $0x28] ss:$16 sps:$4 sm:$0xff]   ;;  %v1918_v42 = vld [vmem:[%s2139_s12 + $0x4c] ss:$16 sps:$4 sm:$0xff]  }
  0x58   : > { %v1920_v43 = vld [vmem:[%s2139_s12 + $0x40] ss:$16 sps:$4 sm:$0xff]   ;;  %v1921_v44 = vld [vmem:[%s2139_s12 + $0x48] ss:$16 sps:$4 sm:$0xff]   ;;  %v1922_v45 = vld [vmem:[%s2139_s12 + $0x64] ss:$16 sps:$4 sm:$0xff]  }
  0x59   : > { %1005 = vmatpush1.bf16.msra.mxu1 %v1848_v59  ;;  %v1924_v46 = vld [vmem:[%s2139_s12 + $0x6c] ss:$16 sps:$4 sm:$0xff]   ;;  %v1926_v47 = vld [vmem:[%s2139_s12 + $0x60] ss:$16 sps:$4 sm:$0xff]   ;;  %v1927_v48 = vld [vmem:[%s2139_s12 + $0x68] ss:$16 sps:$4 sm:$0xff]  }
  0x5a   : > { %1118 = vmatpush1.bf16.msra.mxu0 %v1849_v60  ;;  %1006 = vmatprep.subr.bf16.mxu1 %v1850_v61  ;;  %v1928_v49 = vld [vmem:[%s2139_s12 + $0x84] ss:$16 sps:$4 sm:$0xff]   ;;  %v1930_v50 = vld [vmem:[%s2139_s12 + $0x8c] ss:$16 sps:$4 sm:$0xff]   ;;  %v1932_v51 = vld [vmem:[%s2139_s12 + $0x80] ss:$16 sps:$4 sm:$0xff]  }
  0x5b   : > { %1119 = vmatprep.subr.bf16.mxu0 %v1852_v62  ;;  %v1933_v52 = vld [vmem:[%s2139_s12 + $0x88] ss:$16 sps:$4 sm:$0xff]   ;;  %v1934_v53 = vld [vmem:[%s2139_s12 + $0xa4] ss:$16 sps:$4 sm:$0xff]   ;;  %v1936_v54 = vld [vmem:[%s2139_s12 + $0xac] ss:$16 sps:$4 sm:$0xff]  }
  0x5c   : > { %v1938_v55 = vld [vmem:[%s2139_s12 + $0xa0] ss:$16 sps:$4 sm:$0xff]   ;;  %v1939_v56 = vld [vmem:[%s2139_s12 + $0xa8] ss:$16 sps:$4 sm:$0xff]   ;;  %v1940_v57 = vld [vmem:[%s2139_s12 + $0xc4] ss:$16 sps:$4 sm:$0xff]  }
  0x5d   : > { %1007 = vmatpush1.bf16.msra.mxu1 %v1854_v63  ;;  %v1942_v58 = vld [vmem:[%s2139_s12 + $0xcc] ss:$16 sps:$4 sm:$0xff]   ;;  %v1944_v59 = vld [vmem:[%s2139_s12 + $0xc0] ss:$16 sps:$4 sm:$0xff]   ;;  %v1945_v60 = vld [vmem:[%s2139_s12 + $0xc8] ss:$16 sps:$4 sm:$0xff]  }
  0x5e   : > { %1120 = vmatpush1.bf16.msra.mxu0 %v1855_v0  ;;  %1008 = vmatprep.subr.bf16.mxu1 %v1856_v1  ;;  %v1946_v61 = vld [vmem:[%s2139_s12 + $0xe4] ss:$16 sps:$4 sm:$0xff]   ;;  %v1948_v62 = vld [vmem:[%s2139_s12 + $0xec] ss:$16 sps:$4 sm:$0xff]   ;;  %v1950_v63 = vld [vmem:[%s2139_s12 + $0xe0] ss:$16 sps:$4 sm:$0xff]  }
  0x5f   : > { %1121 = vmatprep.subr.bf16.mxu0 %v1858_v2  ;;  %v1951_v0 = vld [vmem:[%s2139_s12 + $0xe8] ss:$16 sps:$4 sm:$0xff]   ;;  %v384_v2 = vld [vmem:[%s2646_s2] sm:$0xff] }
  0x61   : > { %1009 = vmatpush1.bf16.msra.mxu1 %v1860_v3 }
  0x62   : > { %1122 = vmatpush1.bf16.msra.mxu0 %v1861_v4  ;;  %1010 = vmatprep.subr.bf16.mxu1 %v1862_v5 }
  0x63   : > { %1123 = vmatprep.subr.bf16.mxu0 %v1864_v6  ;;  %v385_v6 = vld [vmem:[%s2646_s2 + $0x8] sm:$0xff] }
  0x65   : > { %1011 = vmatpush1.bf16.msra.mxu1 %v1866_v7 }
  0x66   : > { %1124 = vmatpush1.bf16.msra.mxu0 %v1867_v8  ;;  %1012 = vmatprep.subr.bf16.mxu1 %v1868_v9 }
  0x67   : > { %1125 = vmatprep.subr.bf16.mxu0 %v1870_v10  ;;  %v386_v10 = vld [vmem:[%s2646_s2 + $0x10] sm:$0xff] }
  0x69   : > { %1013 = vmatpush1.bf16.msra.mxu1 %v1872_v11 }
  0x6a   : > { %1126 = vmatpush1.bf16.msra.mxu0 %v1873_v12  ;;  %1014 = vmatprep.subr.bf16.mxu1 %v1874_v13 }
  0x6b   : > { %1127 = vmatprep.subr.bf16.mxu0 %v1876_v14 }
  0x6d   : > { %1015 = vmatpush1.bf16.msra.mxu1 %v1878_v15  ;;  %v387_v15 = vld [vmem:[%s2646_s2 + $0x18] sm:$0xff] }
  0x6e   : > { %1128 = vmatpush1.bf16.msra.mxu0 %v1879_v16  ;;  %1016 = vmatprep.subr.bf16.mxu1 %v1880_v17 }
  0x6f   : > { %1129 = vmatprep.subr.bf16.mxu0 %v1882_v19 }
  0x71   : > { %1017 = vmatpush1.bf16.msra.mxu1 %v1884_v21 }
  0x72   : > { %1130 = vmatpush1.bf16.msra.mxu0 %v1885_v22  ;;  %1018 = vmatprep.subr.bf16.mxu1 %v1886_v23  ;;  %v388_v22 = vld [vmem:[%s2646_s2 + $0x20] sm:$0xff] }
  0x73   : > { %1131 = vmatprep.subr.bf16.mxu0 %v1888_v24 }
  0x75   : > { %1019 = vmatpush1.bf16.msra.mxu1 %v1890_v25 }
  0x76   : > { %1132 = vmatpush1.bf16.msra.mxu0 %v1891_v26  ;;  %1020 = vmatprep.subr.bf16.mxu1 %v1892_v27  ;;  %v389_v26 = vld [vmem:[%s2646_s2 + $0x28] sm:$0xff] }
  0x77   : > { %1133 = vmatprep.subr.bf16.mxu0 %v1894_v28 }
  0x79   : > { %1021 = vmatpush1.bf16.msra.mxu1 %v1896_v29 }
  0x7a   : > { %1134 = vmatpush1.bf16.msra.mxu0 %v1897_v30  ;;  %1022 = vmatprep.subr.bf16.mxu1 %v1898_v31  ;;  %v390_v30 = vld [vmem:[%s2646_s2 + $0x30] sm:$0xff] }
  0x7b   : > { %1135 = vmatprep.subr.bf16.mxu0 %v1900_v32 }
  0x7d   : > { %1023 = vmatpush1.bf16.msra.mxu1 %v1902_v33 }
  0x7e   : > { %1136 = vmatpush1.bf16.msra.mxu0 %v1903_v34 }
  0x80   : > { %1025 = vmatmul.mubr.bf16.vlgmr.msra.gmra.mrb[0].mxu1 %v1904_v35  ;;  %v391_v35 = vld [vmem:[%s2646_s2 + $0x38] sm:$0xff] }
  0x81   : > { %1138 = vmatmul.mubr.bf16.vlgmr.msra.gmra.mrb[0].mxu0 %v1907_v36  ;;  %1034 = vmatprep.mubr.bf16.mxu1 %v1910_v37 }
  0x82   : > { %1147 = vmatprep.mubr.bf16.mxu0 %v1912_v38 }
  0x88   : > { %1035 = vmatmul.mubr.bf16.gmra.mrb[4].mxu1 %v1914_v39 }
  0x89   : > { %1148 = vmatmul.mubr.bf16.gmra.mrb[4].mxu0 %v1915_v40  ;;  %1044 = vmatprep.mubr.bf16.mxu1 %v1916_v41 }
  0x8a   : > { %1157 = vmatprep.mubr.bf16.mxu0 %v1918_v42  ;;  %v392_v42 = vld [vmem:[%s2646_s2 + $0x40] sm:$0xff] }
  0x90   : > { %1045 = vmatmul.mubr.bf16.gmra.mrb[8].mxu1 %v1920_v43 }
  0x91   : > { %1158 = vmatmul.mubr.bf16.gmra.mrb[8].mxu0 %v1921_v44  ;;  %1054 = vmatprep.mubr.bf16.mxu1 %v1922_v45 }
  0x92   : > { %1167 = vmatprep.mubr.bf16.mxu0 %v1924_v46  ;;  %v393_v46 = vld [vmem:[%s2646_s2 + $0x48] sm:$0xff] }
  0x98   : > { %1055 = vmatmul.mubr.bf16.gmra.mrb[12].mxu1 %v1926_v47 }
  0x99   : > { %1168 = vmatmul.mubr.bf16.gmra.mrb[12].mxu0 %v1927_v48  ;;  %1064 = vmatprep.mubr.bf16.mxu1 %v1928_v49 }
  0x9a   : > { %1177 = vmatprep.mubr.bf16.mxu0 %v1930_v50  ;;  %v394_v50 = vld [vmem:[%s2646_s2 + $0x50] sm:$0xff] }
  0xa0   : > { %1065 = vmatmul.mubr.bf16.gmra.mrb[16].mxu1 %v1932_v51 }
  0xa1   : > { %1178 = vmatmul.mubr.bf16.gmra.mrb[16].mxu0 %v1933_v52  ;;  %1074 = vmatprep.mubr.bf16.mxu1 %v1934_v53 }
  0xa2   : > { %1187 = vmatprep.mubr.bf16.mxu0 %v1936_v54 }
  0xa8   : > { %1075 = vmatmul.mubr.bf16.gmra.mrb[20].mxu1 %v1938_v55  ;;  %v395_v55 = vld [vmem:[%s2646_s2 + $0x58] sm:$0xff] }
  0xa9   : > { %1188 = vmatmul.mubr.bf16.gmra.mrb[20].mxu0 %v1939_v56  ;;  %1084 = vmatprep.mubr.bf16.mxu1 %v1940_v57 }
  0xaa   : > { %1197 = vmatprep.mubr.bf16.mxu0 %v1942_v58 }
  0xb0   : > { %1085 = vmatmul.mubr.bf16.gmra.mrb[24].mxu1 %v1944_v59 }
  0xb1   : > { %1198 = vmatmul.mubr.bf16.gmra.mrb[24].mxu0 %v1945_v60  ;;  %1094 = vmatprep.mubr.bf16.mxu1 %v1946_v61 }
  0xb2   : > { %1207 = vmatprep.mubr.bf16.mxu0 %v1948_v62  ;;  %v396_v62 = vld [vmem:[%s2646_s2 + $0x60] sm:$0xff] }
  0xb8   : > { %1095 = vmatmul.mubr.bf16.gmra.mrb[28].mxu1 %v1950_v63 }
  0xb9   : > { %1208 = vmatmul.mubr.bf16.gmra.mrb[28].mxu0 %v1951_v0 }
 0x153   : > { %v1026_v1 = vpop.f32.mrb[0].mxu1 }
 0x154   : > { %v1139_v3 = vpop.f32.mrb[0].mxu0  ;;  %v1028_v5 = vpop.f32.mrb[1].mxu1 }
 0x155   : > { %v1140_v4 = vadd.f32 %v1139_v3, %v1026_v1  ;;  %v1141_v7 = vpop.f32.mrb[1].mxu0  ;;  %v1030_v9 = vpop.f32.mrb[2].mxu1 }
 0x156   : > { %v1142_v8 = vadd.f32 %v1141_v7, %v1028_v5  ;;  %v1143_v11 = vpop.f32.mrb[2].mxu0  ;;  %v1032_v14 = vpop.f32.mrb[3].mxu1 }
 0x157   : > { %v1218_v12 = vadd.f32 %v1140_v4, %v384_v2  ;;  %v1144_v13 = vadd.f32 %v1143_v11, %v1030_v9  ;;  %v1145_v16 = vpop.f32.mrb[3].mxu0  ;;  %v397_v2 = vld [vmem:[%s2646_s2 + $0x68] sm:$0xff]  ;;  %v399_v11 = vld [vmem:[%s2646_s2 + $0x78] sm:$0xff] }
 0x158   : > { %v1219_v17 = vadd.f32 %v1142_v8, %v385_v6  ;;  %v1146_v18 = vadd.f32 %v1145_v16, %v1032_v14  ;;  %v398_v6 = vld [vmem:[%s2646_s2 + $0x70] sm:$0xff] }
 0x159   : > { %1250 = vst [vmem:[%s2646_s2] sm:$0xff] %v1218_v12  ;;  %v1220_v19 = vadd.f32 %v1144_v13, %v386_v10 }
 0x15a   : > { %1251 = vst [vmem:[%s2646_s2 + $0x8] sm:$0xff] %v1219_v17  ;;  %v1221_v20 = vadd.f32 %v1146_v18, %v387_v15  ;;  %v400_v18 = vld [vmem:[%s2646_s2 + $0x80] sm:$0xff] }
 0x15b   : > { %1252 = vst [vmem:[%s2646_s2 + $0x10] sm:$0xff] %v1220_v19  ;;  %v1036_v21 = vpop.f32.mrb[4].mxu1 }
 0x15c   : > { %1253 = vst [vmem:[%s2646_s2 + $0x18] sm:$0xff] %v1221_v20  ;;  %v1149_v23 = vpop.f32.mrb[4].mxu0  ;;  %v1038_v25 = vpop.f32.mrb[5].mxu1 }
 0x15d   : > { %v1150_v24 = vadd.f32 %v1149_v23, %v1036_v21  ;;  %v1151_v27 = vpop.f32.mrb[5].mxu0  ;;  %v1040_v29 = vpop.f32.mrb[6].mxu1 }
 0x15e   : > { %v1152_v28 = vadd.f32 %v1151_v27, %v1038_v25  ;;  %v1153_v31 = vpop.f32.mrb[6].mxu0  ;;  %v1042_v34 = vpop.f32.mrb[7].mxu1 }
 0x15f   : > { %v1222_v32 = vadd.f32 %v1150_v24, %v388_v22  ;;  %v1154_v33 = vadd.f32 %v1153_v31, %v1040_v29  ;;  %v1155_v36 = vpop.f32.mrb[7].mxu0  ;;  %v401_v22 = vld [vmem:[%s2646_s2 + $0x88] sm:$0xff]  ;;  %v403_v31 = vld [vmem:[%s2646_s2 + $0x98] sm:$0xff] }
 0x160   : > { %v1223_v37 = vadd.f32 %v1152_v28, %v389_v26  ;;  %v1156_v38 = vadd.f32 %v1155_v36, %v1042_v34  ;;  %v402_v26 = vld [vmem:[%s2646_s2 + $0x90] sm:$0xff] }
 0x161   : > { %1254 = vst [vmem:[%s2646_s2 + $0x20] sm:$0xff] %v1222_v32  ;;  %v1224_v39 = vadd.f32 %v1154_v33, %v390_v30 }
 0x162   : > { %1255 = vst [vmem:[%s2646_s2 + $0x28] sm:$0xff] %v1223_v37  ;;  %v1225_v40 = vadd.f32 %v1156_v38, %v391_v35  ;;  %v404_v38 = vld [vmem:[%s2646_s2 + $0xa0] sm:$0xff] }
 0x163   : > { %1256 = vst [vmem:[%s2646_s2 + $0x30] sm:$0xff] %v1224_v39  ;;  %v1046_v41 = vpop.f32.mrb[8].mxu1 }
 0x164   : > { %1257 = vst [vmem:[%s2646_s2 + $0x38] sm:$0xff] %v1225_v40  ;;  %v1159_v43 = vpop.f32.mrb[8].mxu0  ;;  %v1048_v45 = vpop.f32.mrb[9].mxu1 }
 0x165   : > { %v1160_v44 = vadd.f32 %v1159_v43, %v1046_v41  ;;  %v1161_v47 = vpop.f32.mrb[9].mxu0  ;;  %v1050_v49 = vpop.f32.mrb[10].mxu1 }
 0x166   : > { %v1162_v48 = vadd.f32 %v1161_v47, %v1048_v45  ;;  %v1163_v51 = vpop.f32.mrb[10].mxu0  ;;  %v1052_v54 = vpop.f32.mrb[11].mxu1 }
 0x167   : > { %v1226_v52 = vadd.f32 %v1160_v44, %v392_v42  ;;  %v1164_v53 = vadd.f32 %v1163_v51, %v1050_v49  ;;  %v1165_v56 = vpop.f32.mrb[11].mxu0  ;;  %v405_v42 = vld [vmem:[%s2646_s2 + $0xa8] sm:$0xff]  ;;  %v407_v51 = vld [vmem:[%s2646_s2 + $0xb8] sm:$0xff] }
 0x168   : > { %v1227_v57 = vadd.f32 %v1162_v48, %v393_v46  ;;  %v1166_v58 = vadd.f32 %v1165_v56, %v1052_v54  ;;  %v406_v46 = vld [vmem:[%s2646_s2 + $0xb0] sm:$0xff] }
 0x169   : > { %1258 = vst [vmem:[%s2646_s2 + $0x40] sm:$0xff] %v1226_v52  ;;  %v1228_v59 = vadd.f32 %v1164_v53, %v394_v50 }
 0x16a   : > { %1259 = vst [vmem:[%s2646_s2 + $0x48] sm:$0xff] %v1227_v57  ;;  %v1229_v60 = vadd.f32 %v1166_v58, %v395_v55  ;;  %v408_v58 = vld [vmem:[%s2646_s2 + $0xc0] sm:$0xff] }
 0x16b   : > { %1260 = vst [vmem:[%s2646_s2 + $0x50] sm:$0xff] %v1228_v59  ;;  %v1056_v61 = vpop.f32.mrb[12].mxu1 }
 0x16c   : > { %1261 = vst [vmem:[%s2646_s2 + $0x58] sm:$0xff] %v1229_v60  ;;  %v1169_v63 = vpop.f32.mrb[12].mxu0  ;;  %v1058_v1 = vpop.f32.mrb[13].mxu1 }
 0x16d   : > { %v1170_v0 = vadd.f32 %v1169_v63, %v1056_v61  ;;  %v1171_v3 = vpop.f32.mrb[13].mxu0  ;;  %v1060_v5 = vpop.f32.mrb[14].mxu1 }
 0x16e   : > { %v1172_v4 = vadd.f32 %v1171_v3, %v1058_v1  ;;  %v1173_v7 = vpop.f32.mrb[14].mxu0  ;;  %v1062_v10 = vpop.f32.mrb[15].mxu1 }
 0x16f   : > { %v1230_v8 = vadd.f32 %v1170_v0, %v396_v62  ;;  %v1174_v9 = vadd.f32 %v1173_v7, %v1060_v5  ;;  %v1175_v12 = vpop.f32.mrb[15].mxu0  ;;  %v409_v62 = vld [vmem:[%s2646_s2 + $0xc8] sm:$0xff]  ;;  %v411_v7 = vld [vmem:[%s2646_s2 + $0xd8] sm:$0xff] }
 0x170   : > { %v1231_v13 = vadd.f32 %v1172_v4, %v397_v2  ;;  %v1176_v14 = vadd.f32 %v1175_v12, %v1062_v10  ;;  %v410_v2 = vld [vmem:[%s2646_s2 + $0xd0] sm:$0xff] }
 0x171   : > { %1262 = vst [vmem:[%s2646_s2 + $0x60] sm:$0xff] %v1230_v8  ;;  %v1232_v15 = vadd.f32 %v1174_v9, %v398_v6 }
 0x172   : > { %1263 = vst [vmem:[%s2646_s2 + $0x68] sm:$0xff] %v1231_v13  ;;  %v1233_v16 = vadd.f32 %v1176_v14, %v399_v11  ;;  %v412_v14 = vld [vmem:[%s2646_s2 + $0xe0] sm:$0xff] }
 0x173   : > { %1264 = vst [vmem:[%s2646_s2 + $0x70] sm:$0xff] %v1232_v15  ;;  %v1066_v17 = vpop.f32.mrb[16].mxu1 }
 0x174   : > { %1265 = vst [vmem:[%s2646_s2 + $0x78] sm:$0xff] %v1233_v16  ;;  %v1179_v19 = vpop.f32.mrb[16].mxu0  ;;  %v1068_v21 = vpop.f32.mrb[17].mxu1 }
 0x175   : > { %v1180_v20 = vadd.f32 %v1179_v19, %v1066_v17  ;;  %v1181_v23 = vpop.f32.mrb[17].mxu0  ;;  %v1070_v25 = vpop.f32.mrb[18].mxu1 }
 0x176   : > { %v1182_v24 = vadd.f32 %v1181_v23, %v1068_v21  ;;  %v1183_v27 = vpop.f32.mrb[18].mxu0  ;;  %v1072_v30 = vpop.f32.mrb[19].mxu1 }
 0x177   : > { %v1234_v28 = vadd.f32 %v1180_v20, %v400_v18  ;;  %v1184_v29 = vadd.f32 %v1183_v27, %v1070_v25  ;;  %v1185_v32 = vpop.f32.mrb[19].mxu0  ;;  %v413_v18 = vld [vmem:[%s2646_s2 + $0xe8] sm:$0xff]  ;;  %v415_v27 = vld [vmem:[%s2646_s2 + $0xf8] sm:$0xff] }
 0x178   : > { %v1235_v33 = vadd.f32 %v1182_v24, %v401_v22  ;;  %v1186_v34 = vadd.f32 %v1185_v32, %v1072_v30  ;;  %v414_v22 = vld [vmem:[%s2646_s2 + $0xf0] sm:$0xff] }
 0x179   : > { %1266 = vst [vmem:[%s2646_s2 + $0x80] sm:$0xff] %v1234_v28  ;;  %v1236_v35 = vadd.f32 %v1184_v29, %v402_v26 }
 0x17a   : > { %1267 = vst [vmem:[%s2646_s2 + $0x88] sm:$0xff] %v1235_v33  ;;  %v1237_v36 = vadd.f32 %v1186_v34, %v403_v31  ;;  %v1286_v33 = vld [vmem:[%s2646_s2] sm:$0xff] (!%p1725_p11)  ;;  %v1288_v34 = vld [vmem:[%s2646_s2 + $0x10] sm:$0xff] (!%p1725_p11) }
 0x17b   : > { %1268 = vst [vmem:[%s2646_s2 + $0x90] sm:$0xff] %v1236_v35  ;;  %v1076_v37 = vpop.f32.mrb[20].mxu1  ;;  %v1287_v35 = vld [vmem:[%s2646_s2 + $0x8] sm:$0xff] (!%p1725_p11) }
 0x17c   : > { %1269 = vst [vmem:[%s2646_s2 + $0x98] sm:$0xff] %v1237_v36  ;;  %v1189_v39 = vpop.f32.mrb[20].mxu0  ;;  %v1078_v41 = vpop.f32.mrb[21].mxu1  ;;  %v1289_v36 = vld [vmem:[%s2646_s2 + $0x18] sm:$0xff] (!%p1725_p11) }
 0x17d   : > { %v1190_v40 = vadd.f32 %v1189_v39, %v1076_v37  ;;  %v1191_v43 = vpop.f32.mrb[21].mxu0  ;;  %v1080_v45 = vpop.f32.mrb[22].mxu1  ;;  %v1318_v37 = vadd.f32 (!%p1725_p11), %v1288_v34, %v1286_v33  ;;  %v1339_v39 = vadd.f32 (!%p1725_p11), %v1289_v36, %v1287_v35 }
 0x17e   : > { %v1192_v44 = vadd.f32 %v1191_v43, %v1078_v41  ;;  %v1193_v47 = vpop.f32.mrb[22].mxu0  ;;  %v1082_v50 = vpop.f32.mrb[23].mxu1 }
 0x17f   : > { %v1238_v48 = vadd.f32 %v1190_v40, %v404_v38  ;;  %v1194_v49 = vadd.f32 %v1193_v47, %v1080_v45  ;;  %v1195_v52 = vpop.f32.mrb[23].mxu0  ;;  %v1290_v38 = vld [vmem:[%s2646_s2 + $0x20] sm:$0xff] (!%p1725_p11)  ;;  %v1291_v40 = vld [vmem:[%s2646_s2 + $0x28] sm:$0xff] (!%p1725_p11) }
 0x180   : > { %v1239_v53 = vadd.f32 %v1192_v44, %v405_v42  ;;  %v1196_v54 = vadd.f32 %v1195_v52, %v1082_v50  ;;  %v1319_v41 = vadd.f32 (!%p1725_p11), %v1318_v37, %v1290_v38  ;;  %v1292_v42 = vld [vmem:[%s2646_s2 + $0x30] sm:$0xff] (!%p1725_p11)  ;;  %v1340_v43 = vadd.f32 (!%p1725_p11), %v1339_v39, %v1291_v40  ;;  %v1293_v44 = vld [vmem:[%s2646_s2 + $0x38] sm:$0xff] (!%p1725_p11) }
 0x181   : > { %1270 = vst [vmem:[%s2646_s2 + $0xa0] sm:$0xff] %v1238_v48  ;;  %v1240_v55 = vadd.f32 %v1194_v49, %v406_v46  ;;  %v1294_v46 = vld [vmem:[%s2646_s2 + $0x40] sm:$0xff] (!%p1725_p11)  ;;  %v1295_v48 = vld [vmem:[%s2646_s2 + $0x48] sm:$0xff] (!%p1725_p11)  ;;  %v1296_v50 = vld [vmem:[%s2646_s2 + $0x50] sm:$0xff] (!%p1725_p11)  ;;  %v1383_v52 = vmul.f32 (!%p1725_p11), %v1286_v33, %v1286_v33 }
 0x182   : > { %1271 = vst [vmem:[%s2646_s2 + $0xa8] sm:$0xff] %v1239_v53  ;;  %v1241_v56 = vadd.f32 %v1196_v54, %v407_v51  ;;  %v1320_v45 = vadd.f32 (!%p1725_p11), %v1319_v41, %v1292_v42  ;;  %v1341_v47 = vadd.f32 (!%p1725_p11), %v1340_v43, %v1293_v44  ;;  %v1297_v53 = vld [vmem:[%s2646_s2 + $0x58] sm:$0xff] (!%p1725_p11) }
 0x183   : > { %1272 = vst [vmem:[%s2646_s2 + $0xb0] sm:$0xff] %v1240_v55  ;;  %v1086_v57 = vpop.f32.mrb[24].mxu1  ;;  %v1384_v55 = vmul.f32 (!%p1725_p11), %v1287_v35, %v1287_v35 }
 0x184   : > { %1273 = vst [vmem:[%s2646_s2 + $0xb8] sm:$0xff] %v1241_v56  ;;  %v1199_v59 = vpop.f32.mrb[24].mxu0  ;;  %v1088_v61 = vpop.f32.mrb[25].mxu1  ;;  %v1321_v49 = vadd.f32 (!%p1725_p11), %v1320_v45, %v1294_v46  ;;  %v1342_v51 = vadd.f32 (!%p1725_p11), %v1341_v47, %v1295_v48  ;;  %v1385_v56 = vmul.f32 (!%p1725_p11), %v1288_v34, %v1288_v34 }
 0x185   : > { %v1200_v60 = vadd.f32 %v1199_v59, %v1086_v57  ;;  %v1201_v63 = vpop.f32.mrb[25].mxu0  ;;  %v1090_v1 = vpop.f32.mrb[26].mxu1  ;;  %v1386_v57 = vmul.f32 (!%p1725_p11), %v1289_v36, %v1289_v36 }
 0x186   : > { %v1202_v0 = vadd.f32 %v1201_v63, %v1088_v61  ;;  %v1203_v3 = vpop.f32.mrb[26].mxu0  ;;  %v1092_v6 = vpop.f32.mrb[27].mxu1  ;;  %v1322_v54 = vadd.f32 (!%p1725_p11), %v1321_v49, %v1296_v50  ;;  %v1343_v59 = vadd.f32 (!%p1725_p11), %v1342_v51, %v1297_v53  ;;  %v1388_v63 = vmul.f32 (!%p1725_p11), %v1291_v40, %v1291_v40 }
 0x187   : > { %v1242_v4 = vadd.f32 %v1200_v60, %v408_v58  ;;  %v1204_v5 = vadd.f32 %v1203_v3, %v1090_v1  ;;  %v1205_v8 = vpop.f32.mrb[27].mxu0  ;;  %v1298_v58 = vld [vmem:[%s2646_s2 + $0x60] sm:$0xff] (!%p1725_p11)  ;;  %v1299_v60 = vld [vmem:[%s2646_s2 + $0x68] sm:$0xff] (!%p1725_p11)  ;;  %v1301_v3 = vld [vmem:[%s2646_s2 + $0x78] sm:$0xff] (!%p1725_p11) }
 0x188   : > { %v1243_v9 = vadd.f32 %v1202_v0, %v409_v62  ;;  %v1206_v10 = vadd.f32 %v1205_v8, %v1092_v6  ;;  %v1323_v61 = vadd.f32 (!%p1725_p11), %v1322_v54, %v1298_v58  ;;  %v1387_v62 = vmul.f32 (!%p1725_p11), %v1290_v38, %v1290_v38  ;;  %v1300_v0 = vld [vmem:[%s2646_s2 + $0x70] sm:$0xff] (!%p1725_p11)  ;;  %v1302_v8 = vld [vmem:[%s2646_s2 + $0x80] sm:$0xff] (!%p1725_p11) }
 0x189   : > { %1274 = vst [vmem:[%s2646_s2 + $0xc0] sm:$0xff] %v1242_v4  ;;  %v1244_v11 = vadd.f32 %v1204_v5, %v410_v2  ;;  %v1344_v1 = vadd.f32 (!%p1725_p11), %v1343_v59, %v1299_v60  ;;  %v1389_v2 = vmul.f32 (!%p1725_p11), %v1292_v42, %v1292_v42  ;;  %v1390_v5 = vmul.f32 (!%p1725_p11), %v1293_v44, %v1293_v44 }
 0x18a   : > { %1275 = vst [vmem:[%s2646_s2 + $0xc8] sm:$0xff] %v1243_v9  ;;  %v1245_v12 = vadd.f32 %v1206_v10, %v411_v7  ;;  %v1324_v4 = vadd.f32 (!%p1725_p11), %v1323_v61, %v1300_v0  ;;  %v1415_v6 = vadd.f32 (!%p1725_p11), %v1385_v56, %v1383_v52  ;;  %v1436_v7 = vadd.f32 (!%p1725_p11), %v1386_v57, %v1384_v55 }
 0x18b   : > { %1276 = vst [vmem:[%s2646_s2 + $0xd0] sm:$0xff] %v1244_v11  ;;  %v1096_v13 = vpop.f32.mrb[28].mxu1  ;;  %v1345_v9 = vadd.f32 (!%p1725_p11), %v1344_v1, %v1301_v3  ;;  %v1391_v10 = vmul.f32 (!%p1725_p11), %v1294_v46, %v1294_v46  ;;  %v1303_v11 = vld [vmem:[%s2646_s2 + $0x88] sm:$0xff] (!%p1725_p11)  ;;  %v1397_v34 = vmul.f32 (!%p1725_p11), %v1300_v0, %v1300_v0  ;;  %v1309_v35 = vld [vmem:[%s2646_s2 + $0xb8] sm:$0xff] (!%p1725_p11)  ;;  %v1398_v37 = vmul.f32 (!%p1725_p11), %v1301_v3, %v1301_v3 }
 0x18c   : > { %1277 = vst [vmem:[%s2646_s2 + $0xd8] sm:$0xff] %v1245_v12  ;;  %v1209_v15 = vpop.f32.mrb[28].mxu0  ;;  %v1098_v17 = vpop.f32.mrb[29].mxu1  ;;  %v1325_v12 = vadd.f32 (!%p1725_p11), %v1324_v4, %v1302_v8  ;;  %v1399_v42 = vmul.f32 (!%p1725_p11), %v1302_v8, %v1302_v8  ;;  %v1400_v45 = vmul.f32 (!%p1725_p11), %v1303_v11, %v1303_v11 }
 0x18d   : > { %v1210_v16 = vadd.f32 %v1209_v15, %v1096_v13  ;;  %v1211_v19 = vpop.f32.mrb[29].mxu0  ;;  %v1100_v21 = vpop.f32.mrb[30].mxu1  ;;  %v1392_v13 = vmul.f32 (!%p1725_p11), %v1295_v48, %v1295_v48  ;;  %v1437_v15 = vadd.f32 (!%p1725_p11), %v1436_v7, %v1388_v63 }
 0x18e   : > { %v1212_v20 = vadd.f32 %v1211_v19, %v1098_v17  ;;  %v1213_v23 = vpop.f32.mrb[30].mxu0  ;;  %v1102_v26 = vpop.f32.mrb[31].mxu1  ;;  %1285 = sbr.rel (%p1725_p11) target bundleno = 446 (0x1be), region = 59  ;;  %v1346_v17 = vadd.f32 (!%p1725_p11), %v1345_v9, %v1303_v11  ;;  %v1305_v19 = vld [vmem:[%s2646_s2 + $0x98] sm:$0xff] (!%p1725_p11) }
 0x18f   : > { %v1246_v24 = vadd.f32 %v1210_v16, %v412_v14  ;;  %v1214_v25 = vadd.f32 %v1213_v23, %v1100_v21  ;;  %v1215_v28 = vpop.f32.mrb[31].mxu0  ;;  %v1416_v14 = vadd.f32 (!%p1725_p11), %v1415_v6, %v1387_v62  ;;  %v1304_v16 = vld [vmem:[%s2646_s2 + $0x90] sm:$0xff] (!%p1725_p11)  ;;  %v1394_v21 = vmul.f32 (!%p1725_p11), %v1297_v53, %v1297_v53 }
 0x190   : > { %v1247_v29 = vadd.f32 %v1212_v20, %v413_v18  ;;  %v1216_v30 = vadd.f32 %v1215_v28, %v1102_v26  ;;  %v1393_v18 = vmul.f32 (!%p1725_p11), %v1296_v50, %v1296_v50  ;;  %v1326_v20 = vadd.f32 (!%p1725_p11), %v1325_v12, %v1304_v16  ;;  %v1310_v40 = vld [vmem:[%s2646_s2 + $0xc0] sm:$0xff] (!%p1725_p11) }
 0x191   : > { %1278 = vst [vmem:[%s2646_s2 + $0xe0] sm:$0xff] %v1246_v24  ;;  %v1248_v31 = vadd.f32 %v1214_v25, %v414_v22  ;;  %v1417_v22 = vadd.f32 (!%p1725_p11), %v1416_v14, %v1389_v2  ;;  %v1438_v23 = vadd.f32 (!%p1725_p11), %v1437_v15, %v1390_v5  ;;  %v1306_v24 = vld [vmem:[%s2646_s2 + $0xa0] sm:$0xff] (!%p1725_p11)  ;;  %v1347_v25 = vadd.f32 (!%p1725_p11), %v1346_v17, %v1305_v19  ;;  %v1311_v43 = vld [vmem:[%s2646_s2 + $0xc8] sm:$0xff] (!%p1725_p11) }
 0x192   : > { %1279 = vst [vmem:[%s2646_s2 + $0xe8] sm:$0xff] %v1247_v29  ;;  %v1249_v32 = vadd.f32 %v1216_v30, %v415_v27  ;;  %v1395_v26 = vmul.f32 (!%p1725_p11), %v1298_v58, %v1298_v58  ;;  %v1307_v27 = vld [vmem:[%s2646_s2 + $0xa8] sm:$0xff] (!%p1725_p11)  ;;  %v1327_v28 = vadd.f32 (!%p1725_p11), %v1326_v20, %v1306_v24  ;;  %v1396_v29 = vmul.f32 (!%p1725_p11), %v1299_v60, %v1299_v60  ;;  %v1312_v48 = vld [vmem:[%s2646_s2 + $0xd0] sm:$0xff] (!%p1725_p11) }
 0x193   : > { %1280 = vst [vmem:[%s2646_s2 + $0xf0] sm:$0xff] %v1248_v31  ;;  %v1418_v30 = vadd.f32 (!%p1725_p11), %v1417_v22, %v1391_v10  ;;  %v1439_v31 = vadd.f32 (!%p1725_p11), %v1438_v23, %v1392_v13  ;;  %v1348_v33 = vadd.f32 (!%p1725_p11), %v1347_v25, %v1307_v27  ;;  %v1401_v50 = vmul.f32 (!%p1725_p11), %v1304_v16, %v1304_v16  ;;  %v1313_v51 = vld [vmem:[%s2646_s2 + $0xd8] sm:$0xff] (!%p1725_p11) }
 0x194   : > { %1281 = vst [vmem:[%s2646_s2 + $0xf8] sm:$0xff] %v1249_v32  ;;  %v1308_v32 = vld [vmem:[%s2646_s2 + $0xb0] sm:$0xff] (!%p1725_p11)  ;;  %v1402_v53 = vmul.f32 (!%p1725_p11), %v1305_v19, %v1305_v19  ;;  %v1403_v58 = vmul.f32 (!%p1725_p11), %v1306_v24, %v1306_v24  ;;  %v1404_v61 = vmul.f32 (!%p1725_p11), %v1307_v27, %v1307_v27  ;;  %v1406_v5 = vmul.f32 (!%p1725_p11), %v1309_v35, %v1309_v35 }
 0x195   : > { %v1328_v36 = vadd.f32 %v1327_v28, %v1308_v32  ;;  %v1419_v38 = vadd.f32 %v1418_v30, %v1393_v18  ;;  %v1440_v39 = vadd.f32 %v1439_v31, %v1394_v21  ;;  %v1349_v41 = vadd.f32 %v1348_v33, %v1309_v35 }
 0x196   : > { %v1405_v2 = vmul.f32 %v1308_v32, %v1308_v32  ;;  %v1407_v9 = vmul.f32 %v1310_v40, %v1310_v40  ;;  %v1408_v11 = vmul.f32 %v1311_v43, %v1311_v43  ;;  %v1409_v15 = vmul.f32 %v1312_v48, %v1312_v48 }
 0x197   : > { %v1329_v44 = vadd.f32 %v1328_v36, %v1310_v40  ;;  %v1420_v46 = vadd.f32 %v1419_v38, %v1395_v26  ;;  %v1441_v47 = vadd.f32 %v1440_v39, %v1396_v29  ;;  %v1350_v49 = vadd.f32 %v1349_v41, %v1311_v43 }
 0x198   : > { %v1314_v56 = vld [vmem:[%s2646_s2 + $0xe0] sm:$0xff]  ;;  %v1410_v17 = vmul.f32 %v1313_v51, %v1313_v51  ;;  %v1993_v21 = vmov 1966171168   ;;  %v1366_v23 = vlaneseq }
 0x199   : > { %v1330_v52 = vadd.f32 %v1329_v44, %v1312_v48  ;;  %v1421_v54 = vadd.f32 %v1420_v46, %v1397_v34  ;;  %v1442_v55 = vadd.f32 %v1441_v47, %v1398_v37  ;;  %v1351_v57 = vadd.f32 %v1350_v49, %v1313_v51  ;;  %v1315_v59 = vld [vmem:[%s2646_s2 + $0xe8] sm:$0xff] }
 0x19a   : > { %v1316_v0 = vld [vmem:[%s2646_s2 + $0xf0] sm:$0xff]  ;;  %v1364_v22 = vunpack.c.l.s4 %v1993_v21  ;;  %v1411_v24 = vmul.f32 %v1314_v56, %v1314_v56  ;;  %v1412_v26 = vmul.f32 %v1315_v59, %v1315_v59  ;;  %v1367_v37 = vshrl.u32 %v1366_v23, 7 }
 0x19b   : > { %v1331_v60 = vadd.f32 %v1330_v52, %v1314_v56  ;;  %v1422_v62 = vadd.f32 %v1421_v54, %v1399_v42  ;;  %v1443_v63 = vadd.f32 %v1442_v55, %v1400_v45  ;;  %v1352_v1 = vadd.f32 %v1351_v57, %v1315_v59  ;;  %v1317_v3 = vld [vmem:[%s2646_s2 + $0xf8] sm:$0xff] }
 0x19c   : > { %v1413_v30 = vmul.f32 %v1316_v0, %v1316_v0  ;;  %v1414_v32 = vmul.f32 %v1317_v3, %v1317_v3  ;;  %v1365_v36 = vunpack.c.0.s8 %v1364_v22  ;;  %vm1380_vm0 = vcmp.lt.s32.totalorder %v1366_v23, 256 }
 0x19d   : > { %v1332_v4 = vadd.f32 %v1331_v60, %v1316_v0  ;;  %v1423_v6 = vadd.f32 %v1422_v62, %v1401_v50  ;;  %v1444_v7 = vadd.f32 %v1443_v63, %v1402_v53  ;;  %v1353_v8 = vadd.f32 %v1352_v1, %v1317_v3 }
 0x19e   : > { %v1368_v46 = vsub.s32 %v1365_v36, %v1367_v37 }
 0x19f   : > { %v1333_v10 = vrot.slane %v1332_v4, 4  ;;  %v1424_v12 = vadd.f32 %v1423_v6, %v1403_v58  ;;  %v1445_v13 = vadd.f32 %v1444_v7, %v1404_v61  ;;  %v1354_v14 = vrot.slane %v1353_v8, 4 }
 0x1a1   : > { %v1334_v16 = vadd.f32 %v1333_v10, %v1332_v4  ;;  %v1425_v18 = vadd.f32 %v1424_v12, %v1405_v2  ;;  %v1446_v19 = vadd.f32 %v1445_v13, %v1406_v5  ;;  %v1355_v20 = vadd.f32 %v1354_v14, %v1353_v8 }
 0x1a3   : > { %v1335_v25 = vrot.slane %v1334_v16, 2  ;;  %v1426_v27 = vadd.f32 %v1425_v18, %v1407_v9  ;;  %v1447_v28 = vadd.f32 %v1446_v19, %v1408_v11  ;;  %v1356_v29 = vrot.slane %v1355_v20, 2 }
 0x1a5   : > { %v1336_v31 = vadd.f32 %v1335_v25, %v1334_v16  ;;  %v1427_v33 = vadd.f32 %v1426_v27, %v1409_v15  ;;  %v1448_v34 = vadd.f32 %v1447_v28, %v1410_v17  ;;  %v1357_v35 = vadd.f32 %v1356_v29, %v1355_v20 }
 0x1a7   : > { %v1337_v38 = vrot.slane %v1336_v31, 1  ;;  %v1428_v39 = vadd.f32 %v1427_v33, %v1411_v24  ;;  %v1449_v40 = vadd.f32 %v1448_v34, %v1412_v26  ;;  %v1358_v41 = vrot.slane %v1357_v35, 1 }
 0x1a9   : > { %v1338_v42 = vadd.f32 %v1337_v38, %v1336_v31  ;;  %v1429_v43 = vadd.f32 %v1428_v39, %v1413_v30  ;;  %v1450_v44 = vadd.f32 %v1449_v40, %v1414_v32  ;;  %v1359_v45 = vadd.f32 %v1358_v41, %v1357_v35 }
 0x1ab   : > { %v1430_v47 = vrot.slane %v1429_v43, 4  ;;  %v1451_v48 = vrot.slane %v1450_v44, 4  ;;  %v1362_v49 = vcombine.low %v1338_v42, %v1359_v45 }
 0x1ad   : > { %v1431_v50 = vadd.f32 %v1430_v47, %v1429_v43  ;;  %v1452_v51 = vadd.f32 %v1451_v48, %v1450_v44  ;;  %v1369_v52 = vrot.slane %v1362_v49, %v1368_v46 }
 0x1af   : > { %v1432_v53 = vrot.slane %v1431_v50, 2  ;;  %v1453_v54 = vrot.slane %v1452_v51, 2  ;;  %v1376_v55 = vrot.slane %v1369_v52, %v1368_v46 }
 0x1b1   : > { %v1433_v56 = vadd.f32 %v1432_v53, %v1431_v50  ;;  %v1454_v57 = vadd.f32 %v1453_v54, %v1452_v51  ;;  %1382 = vst.msk [vmem:[%s2647_s3] sm:$0x3] %vm1380_vm0, %v1376_v55 }
 0x1b3   : > { %v1434_v58 = vrot.slane %v1433_v56, 1  ;;  %v1455_v59 = vrot.slane %v1454_v57, 1 }
 0x1b5   : > { %v1435_v60 = vadd.f32 %v1434_v58, %v1433_v56  ;;  %v1456_v61 = vadd.f32 %v1455_v59, %v1454_v57 }
 0x1b7   : > { %v1459_v62 = vcombine.low %v1435_v60, %v1456_v61 }
 0x1b9   : > { %v1466_v63 = vrot.slane %v1459_v62, %v1368_v46 }
 0x1bb   : > { %v1473_v0 = vrot.slane %v1466_v63, %v1368_v46 }
 0x1bd   : > { %1475 = vst.msk [vmem:[%s2648_s4] sm:$0x3] %vm1380_vm0, %v1473_v0 }
 0x1be PF: > { %s15_s19 = sadd.s32 1, %s1990_s19   ;;  %s2649_s15 = smov %s1978_s16 }
 0x1bf   : > { %p12_p12 = scmp.ge.s32.totalorder %s15_s19, 6   ;;  %s2650_s16 = smov %s2054_s23 }
 0x1c0   : > { %s2651_s17 = smov %s1986_s18  ;;  %s2652_s18 = smov %s2654_s20 }
 0x1c1   :  { %14 = sbr.rel (!%p12_p12) target bundleno = 3 (0x3), region = 121 }

// kernel: image_encoder_forward.12
= control target key start
LH: loop header
LB: loop body
LE: loop exit
PB: predicated region body
PF: predicated region fallthrough
CT: control target
= control target key end

     0   :  { %v48_v0 = vlaneseq  ;;  %s621_s1 = inlined_call_operand.vmem [shape: f32[1,256], index: 1, kind: input, shape index: {}]   ;;  %s622_s2 = inlined_call_operand.vmem [shape: f32[1,256], index: 2, kind: input, shape index: {}]   ;;  %s623_s0 = inlined_call_operand.vmem [shape: f32[128,256], index: 0, kind: input, shape index: {}]   ;;  %s624_s3 = inlined_call_operand.vmem [shape: bf16[128,256], index: 3, kind: output, shape index: {}]  }
   0x1   :  { %v46_v2 = vld [vmem:[%s621_s1] sm:$0x3]  ;;  %v15_v5 = vld [vmem:[%s623_s0 + $0x8] sm:$0xff]  ;;  %v16_v8 = vld [vmem:[%s623_s0 + $0x10] sm:$0xff] }
   0x2   :  { %v49_v1 = vshrl.u32 %v48_v0, 7  ;;  %v90_v3 = vld [vmem:[%s622_s2] sm:$0x3]  ;;  %v17_v9 = vld [vmem:[%s623_s0 + $0x18] sm:$0xff]  ;;  %v19_v15 = vld [vmem:[%s623_s0 + $0x28] sm:$0xff] }
   0x3   :  { %v14_v4 = vld [vmem:[%s623_s0] sm:$0xff]  ;;  %v20_v16 = vld [vmem:[%s623_s0 + $0x30] sm:$0xff]  ;;  %v21_v17 = vld [vmem:[%s623_s0 + $0x38] sm:$0xff] }
   0x4   :  { %v50_v6 = vsub.s32 0, %v49_v1  ;;  %v54_v7 = vsub.s32 1, %v49_v1  ;;  %v18_v10 = vld [vmem:[%s623_s0 + $0x20] sm:$0xff]  ;;  %v23_v45 = vld [vmem:[%s623_s0 + $0x48] sm:$0xff]  ;;  %v24_v46 = vld [vmem:[%s623_s0 + $0x50] sm:$0xff] }
   0x5   :  { %v22_v40 = vld [vmem:[%s623_s0 + $0x40] sm:$0xff]  ;;  %v25_v47 = vld [vmem:[%s623_s0 + $0x58] sm:$0xff]  ;;  %v27_v59 = vld [vmem:[%s623_s0 + $0x68] sm:$0xff] }
   0x6   :  { %v419_v11 = vrot.slane %v46_v2, %v50_v6  ;;  %v421_v12 = vrot.slane %v46_v2, %v54_v7  ;;  %v423_v13 = vrot.slane %v90_v3, %v50_v6  ;;  %v425_v14 = vrot.slane %v90_v3, %v54_v7  ;;  %v26_v58 = vld [vmem:[%s623_s0 + $0x60] sm:$0xff]  ;;  %v28_v7 = vld [vmem:[%s623_s0 + $0x70] sm:$0xff] }
   0x8   :  { %v58_v18 = vmul.f32 %v419_v11, %v14_v4  ;;  %v59_v19 = vmul.f32 %v421_v12, %v15_v5  ;;  %v60_v20 = vmul.f32 %v419_v11, %v16_v8  ;;  %v61_v21 = vmul.f32 %v421_v12, %v17_v9  ;;  %v29_v8 = vld [vmem:[%s623_s0 + $0x78] sm:$0xff] }
   0x9   :  { %v62_v22 = vmul.f32 %v419_v11, %v18_v10  ;;  %v63_v23 = vmul.f32 %v421_v12, %v19_v15  ;;  %v64_v24 = vmul.f32 %v419_v11, %v20_v16  ;;  %v65_v25 = vmul.f32 %v421_v12, %v21_v17 }
   0xa   :  { %v102_v26 = vadd.f32 %v423_v13, %v58_v18  ;;  %v103_v27 = vadd.f32 %v425_v14, %v59_v19  ;;  %v104_v28 = vadd.f32 %v423_v13, %v60_v20  ;;  %v105_v29 = vadd.f32 %v425_v14, %v61_v21 }
   0xb   :  { %v106_v30 = vadd.f32 %v423_v13, %v62_v22  ;;  %v107_v31 = vadd.f32 %v425_v14, %v63_v23  ;;  %v108_v32 = vadd.f32 %v423_v13, %v64_v24  ;;  %v109_v33 = vadd.f32 %v425_v14, %v65_v25  ;;  %v30_v22 = vld [vmem:[%s623_s0 + $0x80] sm:$0xff]  ;;  %v31_v23 = vld [vmem:[%s623_s0 + $0x88] sm:$0xff] }
   0xc   :  { %vm134_vm0 = vcmp.gt.f32.partialorder %v102_v26, 0.0  ;;  %vm135_vm1 = vcmp.gt.f32.partialorder %v103_v27, 0.0  ;;  %v166_v34 = vmul.f32 0.2, %v102_v26  ;;  %v167_v35 = vmul.f32 0.2, %v103_v27 }
   0xd   :  { %vm136_vm2 = vcmp.gt.f32.partialorder %v104_v28, 0.0  ;;  %vm137_vm3 = vcmp.gt.f32.partialorder %v105_v29, 0.0  ;;  %v168_v36 = vmul.f32 0.2, %v104_v28  ;;  %v169_v37 = vmul.f32 0.2, %v105_v29 }
   0xe   :  { %v198_v38 = vsel %vm134_vm0, %v102_v26, %v166_v34  ;;  %v199_v39 = vsel %vm135_vm1, %v103_v27, %v167_v35  ;;  %vm138_vm4 = vcmp.gt.f32.partialorder %v106_v30, 0.0  ;;  %vm139_vm5 = vcmp.gt.f32.partialorder %v107_v31, 0.0  ;;  %v32_v27 = vld [vmem:[%s623_s0 + $0x90] sm:$0xff] }
   0xf   :  { %v362_v41 = vpack.c.bf16 %v199_v39, %v198_v38  ;;  %v200_v42 = vsel %vm136_vm2, %v104_v28, %v168_v36  ;;  %v201_v43 = vsel %vm137_vm3, %v105_v29, %v169_v37  ;;  %v170_v44 = vmul.f32 0.2, %v106_v30  ;;  %v33_v28 = vld [vmem:[%s623_s0 + $0x98] sm:$0xff] }
  0x10   :  { %v363_v48 = vpack.c.bf16 %v201_v43, %v200_v42  ;;  %v171_v49 = vmul.f32 0.2, %v107_v31  ;;  %vm140_vm6 = vcmp.gt.f32.partialorder %v108_v32, 0.0  ;;  %vm141_vm7 = vcmp.gt.f32.partialorder %v109_v33, 0.0 }
  0x11   :  { %326 = vst [vmem:[%s624_s3] sm:$0xff] %v362_v41  ;;  %v202_v50 = vsel %vm138_vm4, %v106_v30, %v170_v44  ;;  %v172_v51 = vmul.f32 0.2, %v108_v32  ;;  %v173_v52 = vmul.f32 0.2, %v109_v33  ;;  %v66_v53 = vmul.f32 %v419_v11, %v22_v40  ;;  %v34_v40 = vld [vmem:[%s623_s0 + $0xa0] sm:$0xff]  ;;  %v35_v41 = vld [vmem:[%s623_s0 + $0xa8] sm:$0xff] }
  0x12   :  { %327 = vst [vmem:[%s624_s3 + $0x8] sm:$0xff] %v363_v48  ;;  %v203_v54 = vsel %vm139_vm5, %v107_v31, %v171_v49  ;;  %v67_v55 = vmul.f32 %v421_v12, %v23_v45  ;;  %v68_v56 = vmul.f32 %v419_v11, %v24_v46  ;;  %v69_v57 = vmul.f32 %v421_v12, %v25_v47 }
  0x13   :  { %v364_v60 = vpack.c.bf16 %v203_v54, %v202_v50  ;;  %v204_v61 = vsel %vm140_vm6, %v108_v32, %v172_v51  ;;  %v205_v62 = vsel %vm141_vm7, %v109_v33, %v173_v52  ;;  %v110_v63 = vadd.f32 %v423_v13, %v66_v53  ;;  %v36_v54 = vld [vmem:[%s623_s0 + $0xb0] sm:$0xff] }
  0x14   :  { %v365_v0 = vpack.c.bf16 %v205_v62, %v204_v61  ;;  %v111_v1 = vadd.f32 %v425_v14, %v67_v55  ;;  %v112_v2 = vadd.f32 %v423_v13, %v68_v56  ;;  %v113_v3 = vadd.f32 %v425_v14, %v69_v57  ;;  %v37_v55 = vld [vmem:[%s623_s0 + $0xb8] sm:$0xff] }
  0x15   :  { %328 = vst [vmem:[%s624_s3 + $0x10] sm:$0xff] %v364_v60  ;;  %vm142_vm8 = vcmp.gt.f32.partialorder %v110_v63, 0.0  ;;  %v174_v4 = vmul.f32 0.2, %v110_v63  ;;  %v70_v5 = vmul.f32 %v419_v11, %v26_v58  ;;  %v71_v6 = vmul.f32 %v421_v12, %v27_v59 }
  0x16   :  { %329 = vst [vmem:[%s624_s3 + $0x18] sm:$0xff] %v365_v0  ;;  %vm143_vm9 = vcmp.gt.f32.partialorder %v111_v1, 0.0  ;;  %v175_v9 = vmul.f32 0.2, %v111_v1  ;;  %vm144_vm10 = vcmp.gt.f32.partialorder %v112_v2, 0.0  ;;  %vm145_vm11 = vcmp.gt.f32.partialorder %v113_v3, 0.0 }
  0x17   :  { %v206_v10 = vsel %vm142_vm8, %v110_v63, %v174_v4  ;;  %v176_v15 = vmul.f32 0.2, %v112_v2  ;;  %v177_v16 = vmul.f32 0.2, %v113_v3  ;;  %v114_v17 = vadd.f32 %v423_v13, %v70_v5 }
  0x18   :  { %v207_v18 = vsel %vm143_vm9, %v111_v1, %v175_v9  ;;  %v115_v19 = vadd.f32 %v425_v14, %v71_v6  ;;  %v72_v20 = vmul.f32 %v419_v11, %v28_v7  ;;  %v73_v21 = vmul.f32 %v421_v12, %v29_v8  ;;  %v40_v7 = vld [vmem:[%s623_s0 + $0xd0] sm:$0xff]  ;;  %v41_v8 = vld [vmem:[%s623_s0 + $0xd8] sm:$0xff] }
  0x19   :  { %v366_v24 = vpack.c.bf16 %v207_v18, %v206_v10  ;;  %v208_v25 = vsel %vm144_vm10, %v112_v2, %v176_v15  ;;  %v209_v26 = vsel %vm145_vm11, %v113_v3, %v177_v16  ;;  %vm146_vm12 = vcmp.gt.f32.partialorder %v114_v17, 0.0  ;;  %v38_v2 = vld [vmem:[%s623_s0 + $0xc0] sm:$0xff]  ;;  %v39_v3 = vld [vmem:[%s623_s0 + $0xc8] sm:$0xff] }
  0x1a   :  { %v367_v29 = vpack.c.bf16 %v209_v26, %v208_v25  ;;  %vm147_vm13 = vcmp.gt.f32.partialorder %v115_v19, 0.0  ;;  %v178_v30 = vmul.f32 0.2, %v114_v17  ;;  %v179_v31 = vmul.f32 0.2, %v115_v19  ;;  %v43_v25 = vld [vmem:[%s623_s0 + $0xe8] sm:$0xff] }
  0x1b   :  { %330 = vst [vmem:[%s624_s3 + $0x20] sm:$0xff] %v366_v24  ;;  %v116_v32 = vadd.f32 %v423_v13, %v72_v20  ;;  %v117_v33 = vadd.f32 %v425_v14, %v73_v21  ;;  %v74_v34 = vmul.f32 %v419_v11, %v30_v22  ;;  %v75_v35 = vmul.f32 %v421_v12, %v31_v23  ;;  %v42_v24 = vld [vmem:[%s623_s0 + $0xe0] sm:$0xff] }
  0x1c   :  { %331 = vst [vmem:[%s624_s3 + $0x28] sm:$0xff] %v367_v29  ;;  %v210_v36 = vsel %vm146_vm12, %v114_v17, %v178_v30  ;;  %v211_v37 = vsel %vm147_vm13, %v115_v19, %v179_v31  ;;  %v76_v38 = vmul.f32 %v419_v11, %v32_v27  ;;  %v77_v39 = vmul.f32 %v421_v12, %v33_v28 }
  0x1d   :  { %v368_v42 = vpack.c.bf16 %v211_v37, %v210_v36  ;;  %vm148_vm14 = vcmp.gt.f32.partialorder %v116_v32, 0.0  ;;  %vm149_vm15 = vcmp.gt.f32.partialorder %v117_v33, 0.0  ;;  %v180_v43 = vmul.f32 0.2, %v116_v32 }
  0x1e   :  { %v181_v44 = vmul.f32 0.2, %v117_v33  ;;  %v118_v45 = vadd.f32 %v423_v13, %v74_v34  ;;  %v119_v46 = vadd.f32 %v425_v14, %v75_v35  ;;  %v120_v47 = vadd.f32 %v423_v13, %v76_v38  ;;  %v44_v38 = vld [vmem:[%s623_s0 + $0xf0] sm:$0xff] }
  0x1f   :  { %332 = vst [vmem:[%s624_s3 + $0x30] sm:$0xff] %v368_v42  ;;  %v212_v48 = vsel %vm148_vm14, %v116_v32, %v180_v43  ;;  %v121_v49 = vadd.f32 %v425_v14, %v77_v39  ;;  %v78_v50 = vmul.f32 %v419_v11, %v34_v40  ;;  %v79_v51 = vmul.f32 %v421_v12, %v35_v41  ;;  %v45_v39 = vld [vmem:[%s623_s0 + $0xf8] sm:$0xff] }
  0x20   :  { %v213_v52 = vsel %vm149_vm15, %v117_v33, %v181_v44  ;;  %vm150_vm0 = vcmp.gt.f32.partialorder %v118_v45, 0.0  ;;  %vm151_vm1 = vcmp.gt.f32.partialorder %v119_v46, 0.0  ;;  %v182_v53 = vmul.f32 0.2, %v118_v45 }
  0x21   :  { %v369_v56 = vpack.c.bf16 %v213_v52, %v212_v48  ;;  %v183_v57 = vmul.f32 0.2, %v119_v46  ;;  %vm152_vm2 = vcmp.gt.f32.partialorder %v120_v47, 0.0  ;;  %vm153_vm3 = vcmp.gt.f32.partialorder %v121_v49, 0.0 }
  0x22   :  { %v214_v58 = vsel %vm150_vm0, %v118_v45, %v182_v53  ;;  %v184_v59 = vmul.f32 0.2, %v120_v47  ;;  %v185_v60 = vmul.f32 0.2, %v121_v49  ;;  %v122_v61 = vadd.f32 %v423_v13, %v78_v50 }
  0x23   :  { %333 = vst [vmem:[%s624_s3 + $0x38] sm:$0xff] %v369_v56  ;;  %v215_v62 = vsel %vm151_vm1, %v119_v46, %v183_v57  ;;  %v123_v63 = vadd.f32 %v425_v14, %v79_v51  ;;  %v80_v0 = vmul.f32 %v419_v11, %v36_v54  ;;  %v81_v1 = vmul.f32 %v421_v12, %v37_v55 }
  0x24   :  { %v370_v4 = vpack.c.bf16 %v215_v62, %v214_v58  ;;  %v216_v5 = vsel %vm152_vm2, %v120_v47, %v184_v59  ;;  %v217_v6 = vsel %vm153_vm3, %v121_v49, %v185_v60  ;;  %vm154_vm4 = vcmp.gt.f32.partialorder %v122_v61, 0.0 }
  0x25   :  { %v371_v9 = vpack.c.bf16 %v217_v6, %v216_v5  ;;  %vm155_vm5 = vcmp.gt.f32.partialorder %v123_v63, 0.0  ;;  %v186_v10 = vmul.f32 0.2, %v122_v61  ;;  %v187_v15 = vmul.f32 0.2, %v123_v63 }
  0x26   :  { %334 = vst [vmem:[%s624_s3 + $0x40] sm:$0xff] %v370_v4  ;;  %v124_v16 = vadd.f32 %v423_v13, %v80_v0  ;;  %v125_v17 = vadd.f32 %v425_v14, %v81_v1  ;;  %v82_v18 = vmul.f32 %v419_v11, %v38_v2  ;;  %v83_v19 = vmul.f32 %v421_v12, %v39_v3 }
  0x27   :  { %335 = vst [vmem:[%s624_s3 + $0x48] sm:$0xff] %v371_v9  ;;  %v218_v20 = vsel %vm154_vm4, %v122_v61, %v186_v10  ;;  %v219_v21 = vsel %vm155_vm5, %v123_v63, %v187_v15  ;;  %v84_v22 = vmul.f32 %v419_v11, %v40_v7  ;;  %v85_v23 = vmul.f32 %v421_v12, %v41_v8 }
  0x28   :  { %v372_v26 = vpack.c.bf16 %v219_v21, %v218_v20  ;;  %vm156_vm6 = vcmp.gt.f32.partialorder %v124_v16, 0.0  ;;  %vm157_vm7 = vcmp.gt.f32.partialorder %v125_v17, 0.0  ;;  %v188_v27 = vmul.f32 0.2, %v124_v16 }
  0x29   :  { %v189_v28 = vmul.f32 0.2, %v125_v17  ;;  %v126_v29 = vadd.f32 %v423_v13, %v82_v18  ;;  %v127_v30 = vadd.f32 %v425_v14, %v83_v19  ;;  %v128_v31 = vadd.f32 %v423_v13, %v84_v22 }
  0x2a   :  { %336 = vst [vmem:[%s624_s3 + $0x50] sm:$0xff] %v372_v26  ;;  %v220_v32 = vsel %vm156_vm6, %v124_v16, %v188_v27  ;;  %v129_v33 = vadd.f32 %v425_v14, %v85_v23  ;;  %v86_v34 = vmul.f32 %v419_v11, %v42_v24  ;;  %v87_v35 = vmul.f32 %v421_v12, %v43_v25 }
  0x2b   :  { %v221_v36 = vsel %vm157_vm7, %v125_v17, %v189_v28  ;;  %vm158_vm8 = vcmp.gt.f32.partialorder %v126_v29, 0.0  ;;  %vm159_vm9 = vcmp.gt.f32.partialorder %v127_v30, 0.0  ;;  %v190_v37 = vmul.f32 0.2, %v126_v29 }
  0x2c   :  { %v373_v40 = vpack.c.bf16 %v221_v36, %v220_v32  ;;  %v191_v41 = vmul.f32 0.2, %v127_v30  ;;  %vm160_vm10 = vcmp.gt.f32.partialorder %v128_v31, 0.0  ;;  %vm161_vm11 = vcmp.gt.f32.partialorder %v129_v33, 0.0 }
  0x2d   :  { %v222_v42 = vsel %vm158_vm8, %v126_v29, %v190_v37  ;;  %v192_v43 = vmul.f32 0.2, %v128_v31  ;;  %v193_v44 = vmul.f32 0.2, %v129_v33  ;;  %v130_v45 = vadd.f32 %v423_v13, %v86_v34 }
  0x2e   :  { %337 = vst [vmem:[%s624_s3 + $0x58] sm:$0xff] %v373_v40  ;;  %v223_v46 = vsel %vm159_vm9, %v127_v30, %v191_v41  ;;  %v131_v47 = vadd.f32 %v425_v14, %v87_v35  ;;  %v88_v48 = vmul.f32 %v419_v11, %v44_v38  ;;  %v89_v49 = vmul.f32 %v421_v12, %v45_v39 }
  0x2f   :  { %v374_v50 = vpack.c.bf16 %v223_v46, %v222_v42  ;;  %v224_v51 = vsel %vm160_vm10, %v128_v31, %v192_v43  ;;  %v225_v52 = vsel %vm161_vm11, %v129_v33, %v193_v44  ;;  %vm162_vm12 = vcmp.gt.f32.partialorder %v130_v45, 0.0 }
  0x30   :  { %v375_v53 = vpack.c.bf16 %v225_v52, %v224_v51  ;;  %vm163_vm13 = vcmp.gt.f32.partialorder %v131_v47, 0.0  ;;  %v194_v54 = vmul.f32 0.2, %v130_v45  ;;  %v195_v55 = vmul.f32 0.2, %v131_v47 }
  0x31   :  { %338 = vst [vmem:[%s624_s3 + $0x60] sm:$0xff] %v374_v50  ;;  %v132_v56 = vadd.f32 %v423_v13, %v88_v48  ;;  %v133_v57 = vadd.f32 %v425_v14, %v89_v49 }
  0x32   :  { %339 = vst [vmem:[%s624_s3 + $0x68] sm:$0xff] %v375_v53  ;;  %v226_v11 = vsel %vm162_vm12, %v130_v45, %v194_v54  ;;  %v227_v12 = vsel %vm163_vm13, %v131_v47, %v195_v55 }
  0x33   :  { %v376_v58 = vpack.c.bf16 %v227_v12, %v226_v11  ;;  %vm164_vm14 = vcmp.gt.f32.partialorder %v132_v56, 0.0  ;;  %vm165_vm15 = vcmp.gt.f32.partialorder %v133_v57, 0.0  ;;  %v196_v59 = vmul.f32 0.2, %v132_v56 }
  0x34   :  { %v197_v60 = vmul.f32 0.2, %v133_v57 }
  0x35   :  { %340 = vst [vmem:[%s624_s3 + $0x70] sm:$0xff] %v376_v58  ;;  %v228_v61 = vsel %vm164_vm14, %v132_v56, %v196_v59 }
  0x36   :  { %v229_v62 = vsel %vm165_vm15, %v133_v57, %v197_v60 }
  0x37   :  { %v377_v13 = vpack.c.bf16 %v229_v62, %v228_v61 }
  0x39   :  { %341 = vst [vmem:[%s624_s3 + $0x78] sm:$0xff] %v377_v13 }

// kernel: image_encoder_forward.14
= control target key start
LH: loop header
LB: loop body
LE: loop exit
PB: predicated region body
PF: predicated region fallthrough
CT: control target
= control target key end

     0   :  { %v32_v0 = vlaneseq  ;;  %s377_s1 = inlined_call_operand.vmem [shape: f32[1,512], index: 1, kind: input, shape index: {}]   ;;  %s378_s2 = inlined_call_operand.vmem [shape: f32[1,512], index: 2, kind: input, shape index: {}]   ;;  %s379_s0 = inlined_call_operand.vmem [shape: f32[32,512], index: 0, kind: input, shape index: {}]   ;;  %s380_s3 = inlined_call_operand.vmem [shape: bf16[32,512], index: 3, kind: output, shape index: {}]  }
   0x1   :  { %v30_v2 = vld [vmem:[%s377_s1] sm:$0xf]  ;;  %v15_v5 = vld [vmem:[%s379_s0 + $0x8] sm:$0xff]  ;;  %v16_v10 = vld [vmem:[%s379_s0 + $0x10] sm:$0xff] }
   0x2   :  { %v33_v1 = vshrl.u32 %v32_v0, 7  ;;  %v68_v3 = vld [vmem:[%s378_s2] sm:$0xf]  ;;  %v19_v12 = vld [vmem:[%s379_s0 + $0x28] sm:$0xff]  ;;  %v17_v17 = vld [vmem:[%s379_s0 + $0x18] sm:$0xff] }
   0x3   :  { %v14_v4 = vld [vmem:[%s379_s0] sm:$0xff]  ;;  %v20_v18 = vld [vmem:[%s379_s0 + $0x30] sm:$0xff]  ;;  %v21_v19 = vld [vmem:[%s379_s0 + $0x38] sm:$0xff] }
   0x4   :  { %v34_v6 = vsub.s32 0, %v33_v1  ;;  %v38_v7 = vsub.s32 1, %v33_v1  ;;  %v42_v8 = vsub.s32 2, %v33_v1  ;;  %v46_v9 = vsub.s32 3, %v33_v1  ;;  %v18_v11 = vld [vmem:[%s379_s0 + $0x20] sm:$0xff]  ;;  %v23_v51 = vld [vmem:[%s379_s0 + $0x48] sm:$0xff] }
   0x5   :  { %v22_v46 = vld [vmem:[%s379_s0 + $0x40] sm:$0xff]  ;;  %v24_v52 = vld [vmem:[%s379_s0 + $0x50] sm:$0xff]  ;;  %v25_v53 = vld [vmem:[%s379_s0 + $0x58] sm:$0xff] }
   0x6   :  { %v271_v13 = vrot.slane %v30_v2, %v34_v6  ;;  %v273_v14 = vrot.slane %v30_v2, %v38_v7  ;;  %v275_v15 = vrot.slane %v68_v3, %v34_v6  ;;  %v277_v16 = vrot.slane %v68_v3, %v38_v7  ;;  %v26_v0 = vld [vmem:[%s379_s0 + $0x60] sm:$0xff]  ;;  %v27_v1 = vld [vmem:[%s379_s0 + $0x68] sm:$0xff] }
   0x7   :  { %v288_v20 = vrot.slane %v30_v2, %v42_v8  ;;  %v290_v21 = vrot.slane %v30_v2, %v46_v9  ;;  %v292_v22 = vrot.slane %v68_v3, %v42_v8  ;;  %v294_v23 = vrot.slane %v68_v3, %v46_v9 }
   0x8   :  { %v52_v24 = vmul.f32 %v271_v13, %v14_v4  ;;  %v53_v25 = vmul.f32 %v273_v14, %v15_v5  ;;  %v56_v26 = vmul.f32 %v271_v13, %v18_v11  ;;  %v57_v27 = vmul.f32 %v273_v14, %v19_v12 }
   0x9   :  { %v54_v28 = vmul.f32 %v288_v20, %v16_v10  ;;  %v55_v29 = vmul.f32 %v290_v21, %v17_v17  ;;  %v58_v30 = vmul.f32 %v288_v20, %v20_v18  ;;  %v59_v31 = vmul.f32 %v290_v21, %v21_v19  ;;  %v28_v17 = vld [vmem:[%s379_s0 + $0x70] sm:$0xff]  ;;  %v29_v18 = vld [vmem:[%s379_s0 + $0x78] sm:$0xff] }
   0xa   :  { %v90_v32 = vadd.f32 %v275_v15, %v52_v24  ;;  %v91_v33 = vadd.f32 %v277_v16, %v53_v25  ;;  %v94_v34 = vadd.f32 %v275_v15, %v56_v26  ;;  %v95_v35 = vadd.f32 %v277_v16, %v57_v27 }
   0xb   :  { %v92_v36 = vadd.f32 %v292_v22, %v54_v28  ;;  %v93_v37 = vadd.f32 %v294_v23, %v55_v29  ;;  %v96_v38 = vadd.f32 %v292_v22, %v58_v30  ;;  %v97_v39 = vadd.f32 %v294_v23, %v59_v31 }
   0xc   :  { %vm106_vm0 = vcmp.gt.f32.partialorder %v90_v32, 0.0  ;;  %vm107_vm1 = vcmp.gt.f32.partialorder %v91_v33, 0.0  ;;  %v122_v40 = vmul.f32 0.2, %v90_v32  ;;  %v123_v41 = vmul.f32 0.2, %v91_v33 }
   0xd   :  { %vm108_vm2 = vcmp.gt.f32.partialorder %v92_v36, 0.0  ;;  %vm109_vm3 = vcmp.gt.f32.partialorder %v93_v37, 0.0  ;;  %v124_v42 = vmul.f32 0.2, %v92_v36  ;;  %v125_v43 = vmul.f32 0.2, %v93_v37 }
   0xe   :  { %v138_v44 = vsel %vm106_vm0, %v90_v32, %v122_v40  ;;  %v139_v45 = vsel %vm107_vm1, %v91_v33, %v123_v41  ;;  %vm110_vm4 = vcmp.gt.f32.partialorder %v94_v34, 0.0  ;;  %vm111_vm5 = vcmp.gt.f32.partialorder %v95_v35, 0.0 }
   0xf   :  { %v222_v47 = vpack.c.bf16 %v139_v45, %v138_v44  ;;  %v140_v48 = vsel %vm108_vm2, %v92_v36, %v124_v42  ;;  %v141_v49 = vsel %vm109_vm3, %v93_v37, %v125_v43  ;;  %v126_v50 = vmul.f32 0.2, %v94_v34 }
  0x10   :  { %v223_v54 = vpack.c.bf16 %v141_v49, %v140_v48  ;;  %v127_v55 = vmul.f32 0.2, %v95_v35  ;;  %vm112_vm6 = vcmp.gt.f32.partialorder %v96_v38, 0.0  ;;  %vm113_vm7 = vcmp.gt.f32.partialorder %v97_v39, 0.0 }
  0x11   :  { %202 = vst [vmem:[%s380_s3] sm:$0xff] %v222_v47  ;;  %v142_v56 = vsel %vm110_vm4, %v94_v34, %v126_v50  ;;  %v128_v57 = vmul.f32 0.2, %v96_v38  ;;  %v129_v58 = vmul.f32 0.2, %v97_v39  ;;  %v60_v59 = vmul.f32 %v271_v13, %v22_v46 }
  0x12   :  { %203 = vst [vmem:[%s380_s3 + $0x8] sm:$0xff] %v223_v54  ;;  %v143_v60 = vsel %vm111_vm5, %v95_v35, %v127_v55  ;;  %v61_v61 = vmul.f32 %v273_v14, %v23_v51  ;;  %v62_v62 = vmul.f32 %v288_v20, %v24_v52  ;;  %v63_v63 = vmul.f32 %v290_v21, %v25_v53 }
  0x13   :  { %v224_v2 = vpack.c.bf16 %v143_v60, %v142_v56  ;;  %v144_v3 = vsel %vm112_vm6, %v96_v38, %v128_v57  ;;  %v145_v4 = vsel %vm113_vm7, %v97_v39, %v129_v58  ;;  %v98_v5 = vadd.f32 %v275_v15, %v60_v59 }
  0x14   :  { %v225_v6 = vpack.c.bf16 %v145_v4, %v144_v3  ;;  %v99_v7 = vadd.f32 %v277_v16, %v61_v61  ;;  %v100_v8 = vadd.f32 %v292_v22, %v62_v62  ;;  %v101_v9 = vadd.f32 %v294_v23, %v63_v63 }
  0x15   :  { %204 = vst [vmem:[%s380_s3 + $0x10] sm:$0xff] %v224_v2  ;;  %vm114_vm8 = vcmp.gt.f32.partialorder %v98_v5, 0.0  ;;  %v130_v10 = vmul.f32 0.2, %v98_v5  ;;  %v64_v11 = vmul.f32 %v271_v13, %v26_v0  ;;  %v65_v12 = vmul.f32 %v273_v14, %v27_v1 }
  0x16   :  { %205 = vst [vmem:[%s380_s3 + $0x18] sm:$0xff] %v225_v6  ;;  %vm115_vm9 = vcmp.gt.f32.partialorder %v99_v7, 0.0  ;;  %v131_v19 = vmul.f32 0.2, %v99_v7  ;;  %vm116_vm10 = vcmp.gt.f32.partialorder %v100_v8, 0.0  ;;  %vm117_vm11 = vcmp.gt.f32.partialorder %v101_v9, 0.0 }
  0x17   :  { %v146_v24 = vsel %vm114_vm8, %v98_v5, %v130_v10  ;;  %v132_v13 = vmul.f32 0.2, %v100_v8  ;;  %v133_v25 = vmul.f32 0.2, %v101_v9  ;;  %v102_v14 = vadd.f32 %v275_v15, %v64_v11 }
  0x18   :  { %v147_v26 = vsel %vm115_vm9, %v99_v7, %v131_v19  ;;  %v103_v27 = vadd.f32 %v277_v16, %v65_v12  ;;  %v66_v28 = vmul.f32 %v288_v20, %v28_v17  ;;  %v67_v29 = vmul.f32 %v290_v21, %v29_v18 }
  0x19   :  { %v226_v30 = vpack.c.bf16 %v147_v26, %v146_v24  ;;  %v148_v31 = vsel %vm116_vm10, %v100_v8, %v132_v13  ;;  %v149_v32 = vsel %vm117_vm11, %v101_v9, %v133_v25  ;;  %vm118_vm12 = vcmp.gt.f32.partialorder %v102_v14, 0.0 }
  0x1a   :  { %v227_v33 = vpack.c.bf16 %v149_v32, %v148_v31  ;;  %vm119_vm13 = vcmp.gt.f32.partialorder %v103_v27, 0.0  ;;  %v134_v34 = vmul.f32 0.2, %v102_v14  ;;  %v135_v35 = vmul.f32 0.2, %v103_v27 }
  0x1b   :  { %206 = vst [vmem:[%s380_s3 + $0x20] sm:$0xff] %v226_v30  ;;  %v104_v15 = vadd.f32 %v292_v22, %v66_v28  ;;  %v105_v16 = vadd.f32 %v294_v23, %v67_v29 }
  0x1c   :  { %207 = vst [vmem:[%s380_s3 + $0x28] sm:$0xff] %v227_v33  ;;  %v150_v20 = vsel %vm118_vm12, %v102_v14, %v134_v34  ;;  %v151_v21 = vsel %vm119_vm13, %v103_v27, %v135_v35 }
  0x1d   :  { %v228_v36 = vpack.c.bf16 %v151_v21, %v150_v20  ;;  %vm120_vm14 = vcmp.gt.f32.partialorder %v104_v15, 0.0  ;;  %vm121_vm15 = vcmp.gt.f32.partialorder %v105_v16, 0.0  ;;  %v136_v37 = vmul.f32 0.2, %v104_v15 }
  0x1e   :  { %v137_v38 = vmul.f32 0.2, %v105_v16 }
  0x1f   :  { %208 = vst [vmem:[%s380_s3 + $0x30] sm:$0xff] %v228_v36  ;;  %v152_v39 = vsel %vm120_vm14, %v104_v15, %v136_v37 }
  0x20   :  { %v153_v40 = vsel %vm121_vm15, %v105_v16, %v137_v38 }
  0x21   :  { %v229_v22 = vpack.c.bf16 %v153_v40, %v152_v39 }
  0x23   :  { %209 = vst [vmem:[%s380_s3 + $0x38] sm:$0xff] %v229_v22 }

// kernel: image_encoder_forward.13
= control target key start
LH: loop header
LB: loop body
LE: loop exit
PB: predicated region body
PF: predicated region fallthrough
CT: control target
= control target key end

     0   :  { %s2195_s15 = smov 0   ;;  %s2197_s16 = smov 0   ;;  %s2610_s0 = inlined_call_operand.vmem [shape: bf16[32,4096], index: 0, kind: input, shape index: {}]   ;;  %s2611_s1 = inlined_call_operand.vmem [shape: bf16[4096,512], index: 1, kind: input, shape index: {}]   ;;  %s2612_s2 = inlined_call_operand.vmem [shape: f32[32,512], index: 2, kind: output, shape index: {0}]   ;;  %s2613_s3 = inlined_call_operand.vmem [shape: f32[1,1,512], index: 3, kind: output, shape index: {1}]   ;;  %s2614_s4 = inlined_call_operand.vmem [shape: f32[1,1,512], index: 4, kind: output, shape index: {2}]  }
   0x1   :  { %s2199_s17 = smov 0   ;;  %s2201_s18 = smov 0  }
   0x2   :  { %s2203_s19 = smov 0  }
   0x3 LB: > { %s24_s20 = sadd.s32 1, %s2162_s18  ;;  %p43_p1 = scmp.ne.s32.totalorder %s2154_s16, %s2150_s15  ;;  %s2166_s19 = sphi %s2203_s19, %s15_s19   ;;  %s2162_s18 = sphi %s2201_s18, %s2618_s18   ;;  %s2158_s17 = sphi %s2199_s17, %s2617_s17   ;;  %s2154_s16 = sphi %s2197_s16, %s2616_s16   ;;  %s2150_s15 = sphi %s2195_s15, %s2615_s15  }
   0x4   : > { %p25_p0 = scmp.ge.s32.totalorder %s24_s20, 8  ;;  %p44_p2 = scmp.eq.s32.totalorder %s2166_s19, 0 }
   0x5   : > { %s36_s22 = sadd.s32 1, %s2154_s16  ;;  %p1711_p5 = scmp.ge.s32.totalorder %s2166_s19, 8 }
   0x6   : > { %s2620_s20 = smov (%p25_p0, %s24_s20), 0  ;;  %p45_p3 = por %p44_p2, %p43_p1 }
   0x7   : > { %s32_s21 = ssub.s32 %s2162_s18, %s2620_s20  ;;  %173 = sbr.rel (%p1711_p5) target bundleno = 22 (0x16), region = 16 }
   0x8   : > { %p34_p4 = scmp.eq.s32.totalorder %s32_s21, 0 }
   0xa   : > { %s2230_s23 = scalar_select %p34_p4, %s2154_s16, %s36_s22  }
   0xe   : > { %176 = sbr.rel (!%p45_p3) target bundleno = 22 (0x16), region = 20  ;;  %s178_s24 = sand.u32 (%p45_p3), 1, %s2154_s16  }
   0xf   : > { %s1864_s25 = sshll.u32 (%p45_p3), %s2162_s18, 4  ;;  %s1712_s26 = sshll.u32 (%p45_p3), %s178_s24, 6 }
  0x10   : > { %s186_s29 = scalar_lea.vmem (%p45_p3), %s2610_s0, %s1864_s25  ;;  %s180_s30 = scalar_lea.vmem (%p45_p3), [#allocation2], %s1712_s26 }
  0x11   : > { %v199_v0 = vld [vmem:[%s186_s29] sm:$0xff] (%p45_p3)  ;;  %v201_v1 = vld [vmem:[%s186_s29 + $0x8] sm:$0xff] (%p45_p3) }
  0x12   : > { %v203_v2 = vld [vmem:[%s186_s29 + $0x80] sm:$0xff] (%p45_p3)  ;;  %200 = vst [vmem:[%s180_s30] sm:$0xff] (%p45_p3), %v199_v0  ;;  %202 = vst [vmem:[%s180_s30 + $0x8] sm:$0xff] (%p45_p3), %v201_v1  ;;  %v205_v3 = vld [vmem:[%s186_s29 + $0x88] sm:$0xff] (%p45_p3) }
  0x13   : > { %204 = vst [vmem:[%s180_s30 + $0x10] sm:$0xff] (%p45_p3), %v203_v2  ;;  %v207_v4 = vld [vmem:[%s186_s29 + $0x100] sm:$0xff] (%p45_p3)  ;;  %v209_v5 = vld [vmem:[%s186_s29 + $0x108] sm:$0xff] (%p45_p3)  ;;  %206 = vst [vmem:[%s180_s30 + $0x18] sm:$0xff] (%p45_p3), %v205_v3 }
  0x14   : > { %208 = vst [vmem:[%s180_s30 + $0x20] sm:$0xff] (%p45_p3), %v207_v4  ;;  %210 = vst [vmem:[%s180_s30 + $0x28] sm:$0xff] (%p45_p3), %v209_v5  ;;  %v211_v6 = vld [vmem:[%s186_s29 + $0x180] sm:$0xff] (%p45_p3)  ;;  %v213_v7 = vld [vmem:[%s186_s29 + $0x188] sm:$0xff] (%p45_p3) }
  0x15   : > { %212 = vst [vmem:[%s180_s30 + $0x30] sm:$0xff] %v211_v6  ;;  %214 = vst [vmem:[%s180_s30 + $0x38] sm:$0xff] %v213_v7 }
  0x16 PF: > { %p1715_p6 = scmp.ge.s32.totalorder %s2166_s19, 1  ;;  %p229_p7 = scmp.lt.s32.totalorder %s2166_s19, 9 }
  0x18   : > { %p230_p8 = pnand %p1715_p6, %p229_p7 }
  0x19   : > { %s236_s5 = sand.u32 (!%p230_p8), 1, %s2150_s15   ;;  %s1717_s6 = sshll.u32 (!%p230_p8), %s2158_s17, 6 }
  0x1a   : > { %233 = sbr.rel (%p230_p8) target bundleno = 432 (0x1b0), region = 47  ;;  %s1716_s7 = sshll.u32 (!%p230_p8), %s236_s5, 6 }
  0x1b   : > { %p279_p9 = scmp.lt.s32.totalorder (!%p230_p8), %s1717_s6, 511  ;;  %s2247_s12 = scalar_lea.vmem (!%p230_p8), [#allocation2], %s1716_s7 }
  0x1c   : > { %p1720_p10 = scmp.ne.s32.totalorder (!%p230_p8), %s2158_s17, 0 }
  0x21   : > { %s2622_s6 = smov (!%p279_p9, %s1717_s6), 511  ;;  %303 = sbr.rel (%p1720_p10) target bundleno = 43 (0x2b), region = 55 }
  0x22   : > { %s1865_s8 = sshll.u32 %s2622_s6, 4  ;;  %v2168_v8 = vmov (!%p1720_p10), 0.0  }
  0x23   : > { %s2245_s11 = scalar_lea.vmem %s2611_s1, %s1865_s8  ;;  %304 = vst [vmem:[%s2612_s2] sm:$0xff] (!%p1720_p10), %v2168_v8  ;;  %305 = vst [vmem:[%s2612_s2 + $0x8] sm:$0xff] (!%p1720_p10), %v2168_v8 }
  0x24   : > { %306 = vst [vmem:[%s2612_s2 + $0x10] sm:$0xff] (!%p1720_p10), %v2168_v8  ;;  %307 = vst [vmem:[%s2612_s2 + $0x18] sm:$0xff] (!%p1720_p10), %v2168_v8 }
  0x25   : > { %308 = vst [vmem:[%s2612_s2 + $0x20] sm:$0xff] (!%p1720_p10), %v2168_v8  ;;  %309 = vst [vmem:[%s2612_s2 + $0x28] sm:$0xff] (!%p1720_p10), %v2168_v8 }
  0x26   : > { %310 = vst [vmem:[%s2612_s2 + $0x30] sm:$0xff] (!%p1720_p10), %v2168_v8  ;;  %311 = vst [vmem:[%s2612_s2 + $0x38] sm:$0xff] (!%p1720_p10), %v2168_v8 }
  0x27   : > { %312 = vst [vmem:[%s2612_s2 + $0x40] sm:$0xff] (!%p1720_p10), %v2168_v8  ;;  %313 = vst [vmem:[%s2612_s2 + $0x48] sm:$0xff] (!%p1720_p10), %v2168_v8 }
  0x28   : > { %314 = vst [vmem:[%s2612_s2 + $0x50] sm:$0xff] %v2168_v8  ;;  %315 = vst [vmem:[%s2612_s2 + $0x58] sm:$0xff] %v2168_v8 }
  0x29   : > { %316 = vst [vmem:[%s2612_s2 + $0x60] sm:$0xff] %v2168_v8  ;;  %317 = vst [vmem:[%s2612_s2 + $0x68] sm:$0xff] %v2168_v8 }
  0x2a   : > { %318 = vst [vmem:[%s2612_s2 + $0x70] sm:$0xff] %v2168_v8  ;;  %319 = vst [vmem:[%s2612_s2 + $0x78] sm:$0xff] %v2168_v8 }
  0x2b PF: > { %v1924_v9 = vld [vmem:[%s2245_s11 + $0x4] ss:$16 sps:$4 sm:$0xff]   ;;  %v1926_v10 = vld [vmem:[%s2245_s11 + $0xc] ss:$16 sps:$4 sm:$0xff]   ;;  %v1928_v11 = vld [vmem:[%s2245_s11] ss:$16 sps:$4 sm:$0xff]  }
  0x2c   : > { %1152 = vmatprep.subr.bf16.mxu0 %v1924_v9  ;;  %v1929_v12 = vld [vmem:[%s2245_s11 + $0x8] ss:$16 sps:$4 sm:$0xff]   ;;  %1258 = vmatprep.subr.bf16.mxu1 %v1926_v10  ;;  %v1930_v13 = vld [vmem:[%s2245_s11 + $0x24] ss:$16 sps:$4 sm:$0xff]   ;;  %v1932_v14 = vld [vmem:[%s2245_s11 + $0x2c] ss:$16 sps:$4 sm:$0xff]  }
  0x2d   : > { %1153 = vmatpush1.bf16.msra.mxu0 %v1928_v11  ;;  %1259 = vmatpush1.bf16.msra.mxu1 %v1929_v12  ;;  %v1934_v15 = vld [vmem:[%s2245_s11 + $0x20] ss:$16 sps:$4 sm:$0xff]   ;;  %v1935_v16 = vld [vmem:[%s2245_s11 + $0x28] ss:$16 sps:$4 sm:$0xff]   ;;  %v1936_v17 = vld [vmem:[%s2245_s11 + $0x44] ss:$16 sps:$4 sm:$0xff]  }
  0x2e   : > { %1154 = vmatprep.subr.bf16.mxu0 %v1930_v13  ;;  %1260 = vmatprep.subr.bf16.mxu1 %v1932_v14  ;;  %v1938_v18 = vld [vmem:[%s2245_s11 + $0x4c] ss:$16 sps:$4 sm:$0xff]   ;;  %v1940_v19 = vld [vmem:[%s2245_s11 + $0x40] ss:$16 sps:$4 sm:$0xff]   ;;  %v1941_v20 = vld [vmem:[%s2245_s11 + $0x48] ss:$16 sps:$4 sm:$0xff]  }
  0x2f   : > { %v1942_v21 = vld [vmem:[%s2245_s11 + $0x64] ss:$16 sps:$4 sm:$0xff]   ;;  %v1944_v22 = vld [vmem:[%s2245_s11 + $0x6c] ss:$16 sps:$4 sm:$0xff]   ;;  %v1946_v23 = vld [vmem:[%s2245_s11 + $0x60] ss:$16 sps:$4 sm:$0xff]  }
  0x30   : > { %v1947_v24 = vld [vmem:[%s2245_s11 + $0x68] ss:$16 sps:$4 sm:$0xff]   ;;  %v1948_v25 = vld [vmem:[%s2245_s11 + $0x84] ss:$16 sps:$4 sm:$0xff]   ;;  %v1950_v26 = vld [vmem:[%s2245_s11 + $0x8c] ss:$16 sps:$4 sm:$0xff]  }
  0x31   : > { %1155 = vmatpush1.bf16.msra.mxu0 %v1934_v15  ;;  %1261 = vmatpush1.bf16.msra.mxu1 %v1935_v16  ;;  %v1952_v27 = vld [vmem:[%s2245_s11 + $0x80] ss:$16 sps:$4 sm:$0xff]   ;;  %v1953_v28 = vld [vmem:[%s2245_s11 + $0x88] ss:$16 sps:$4 sm:$0xff]   ;;  %v1954_v29 = vld [vmem:[%s2245_s11 + $0xa4] ss:$16 sps:$4 sm:$0xff]  }
  0x32   : > { %1156 = vmatprep.subr.bf16.mxu0 %v1936_v17  ;;  %1262 = vmatprep.subr.bf16.mxu1 %v1938_v18  ;;  %v1956_v30 = vld [vmem:[%s2245_s11 + $0xac] ss:$16 sps:$4 sm:$0xff]   ;;  %v1958_v31 = vld [vmem:[%s2245_s11 + $0xa0] ss:$16 sps:$4 sm:$0xff]   ;;  %v1959_v32 = vld [vmem:[%s2245_s11 + $0xa8] ss:$16 sps:$4 sm:$0xff]  }
  0x33   : > { %v1960_v33 = vld [vmem:[%s2245_s11 + $0xc4] ss:$16 sps:$4 sm:$0xff]   ;;  %v1962_v34 = vld [vmem:[%s2245_s11 + $0xcc] ss:$16 sps:$4 sm:$0xff]   ;;  %v1964_v35 = vld [vmem:[%s2245_s11 + $0xc0] ss:$16 sps:$4 sm:$0xff]  }
  0x34   : > { %v1965_v36 = vld [vmem:[%s2245_s11 + $0xc8] ss:$16 sps:$4 sm:$0xff]   ;;  %v1966_v37 = vld [vmem:[%s2245_s11 + $0xe4] ss:$16 sps:$4 sm:$0xff]   ;;  %v1968_v38 = vld [vmem:[%s2245_s11 + $0xec] ss:$16 sps:$4 sm:$0xff]  }
  0x35   : > { %1157 = vmatpush1.bf16.msra.mxu0 %v1940_v19  ;;  %1263 = vmatpush1.bf16.msra.mxu1 %v1941_v20  ;;  %v1970_v39 = vld [vmem:[%s2245_s11 + $0xe0] ss:$16 sps:$4 sm:$0xff]   ;;  %v1971_v40 = vld [vmem:[%s2245_s11 + $0xe8] ss:$16 sps:$4 sm:$0xff]   ;;  %v1972_v41 = vld [vmem:[%s2245_s11 + $0x104] ss:$16 sps:$4 sm:$0xff]  }
  0x36   : > { %1158 = vmatprep.subr.bf16.mxu0 %v1942_v21  ;;  %1264 = vmatprep.subr.bf16.mxu1 %v1944_v22  ;;  %v1974_v42 = vld [vmem:[%s2245_s11 + $0x10c] ss:$16 sps:$4 sm:$0xff]   ;;  %v1976_v43 = vld [vmem:[%s2245_s11 + $0x100] ss:$16 sps:$4 sm:$0xff]   ;;  %v1977_v44 = vld [vmem:[%s2245_s11 + $0x108] ss:$16 sps:$4 sm:$0xff]  }
  0x37   : > { %v1978_v45 = vld [vmem:[%s2245_s11 + $0x124] ss:$16 sps:$4 sm:$0xff]   ;;  %v1980_v46 = vld [vmem:[%s2245_s11 + $0x12c] ss:$16 sps:$4 sm:$0xff]   ;;  %v1982_v47 = vld [vmem:[%s2245_s11 + $0x120] ss:$16 sps:$4 sm:$0xff]  }
  0x38   : > { %v1983_v48 = vld [vmem:[%s2245_s11 + $0x128] ss:$16 sps:$4 sm:$0xff]   ;;  %v1984_v49 = vld [vmem:[%s2245_s11 + $0x144] ss:$16 sps:$4 sm:$0xff]   ;;  %v1986_v50 = vld [vmem:[%s2245_s11 + $0x14c] ss:$16 sps:$4 sm:$0xff]  }
  0x39   : > { %1159 = vmatpush1.bf16.msra.mxu0 %v1946_v23  ;;  %1265 = vmatpush1.bf16.msra.mxu1 %v1947_v24  ;;  %v1988_v51 = vld [vmem:[%s2245_s11 + $0x140] ss:$16 sps:$4 sm:$0xff]   ;;  %v1989_v52 = vld [vmem:[%s2245_s11 + $0x148] ss:$16 sps:$4 sm:$0xff]   ;;  %v1990_v53 = vld [vmem:[%s2245_s11 + $0x164] ss:$16 sps:$4 sm:$0xff]  }
  0x3a   : > { %1160 = vmatprep.subr.bf16.mxu0 %v1948_v25  ;;  %1266 = vmatprep.subr.bf16.mxu1 %v1950_v26  ;;  %v1992_v54 = vld [vmem:[%s2245_s11 + $0x16c] ss:$16 sps:$4 sm:$0xff]   ;;  %v1994_v55 = vld [vmem:[%s2245_s11 + $0x160] ss:$16 sps:$4 sm:$0xff]   ;;  %v1995_v56 = vld [vmem:[%s2245_s11 + $0x168] ss:$16 sps:$4 sm:$0xff]  }
  0x3b   : > { %v2022_v57 = vld [vmem:[%s2247_s12 + $0x4] ss:$16 sps:$4 sm:$0xff]   ;;  %v1998_v59 = vld [vmem:[%s2245_s11 + $0x18c] ss:$16 sps:$4 sm:$0xff]   ;;  %v2000_v60 = vld [vmem:[%s2245_s11 + $0x180] ss:$16 sps:$4 sm:$0xff]  }
  0x3c   : > { %v1996_v58 = vld [vmem:[%s2245_s11 + $0x184] ss:$16 sps:$4 sm:$0xff]   ;;  %1184 = vmatprep.mubr.bf16.mxu0 %v2022_v57  ;;  %1290 = vmatprep.mubr.bf16.mxu1 %v2022_v57  ;;  %v2001_v61 = vld [vmem:[%s2245_s11 + $0x188] ss:$16 sps:$4 sm:$0xff]   ;;  %v2004_v63 = vld [vmem:[%s2245_s11 + $0x1ac] ss:$16 sps:$4 sm:$0xff]  }
  0x3d   : > { %1161 = vmatpush1.bf16.msra.mxu0 %v1952_v27  ;;  %1267 = vmatpush1.bf16.msra.mxu1 %v1953_v28  ;;  %v2002_v62 = vld [vmem:[%s2245_s11 + $0x1a4] ss:$16 sps:$4 sm:$0xff]   ;;  %v2006_v0 = vld [vmem:[%s2245_s11 + $0x1a0] ss:$16 sps:$4 sm:$0xff]   ;;  %v2007_v1 = vld [vmem:[%s2245_s11 + $0x1a8] ss:$16 sps:$4 sm:$0xff]  }
  0x3e   : > { %1162 = vmatprep.subr.bf16.mxu0 %v1954_v29  ;;  %1268 = vmatprep.subr.bf16.mxu1 %v1956_v30  ;;  %v2008_v2 = vld [vmem:[%s2245_s11 + $0x1c4] ss:$16 sps:$4 sm:$0xff]   ;;  %v2010_v3 = vld [vmem:[%s2245_s11 + $0x1cc] ss:$16 sps:$4 sm:$0xff]   ;;  %v2012_v4 = vld [vmem:[%s2245_s11 + $0x1c0] ss:$16 sps:$4 sm:$0xff]  }
  0x3f   : > { %v2013_v5 = vld [vmem:[%s2245_s11 + $0x1c8] ss:$16 sps:$4 sm:$0xff]   ;;  %v2014_v6 = vld [vmem:[%s2245_s11 + $0x1e4] ss:$16 sps:$4 sm:$0xff]   ;;  %v2016_v7 = vld [vmem:[%s2245_s11 + $0x1ec] ss:$16 sps:$4 sm:$0xff]  }
  0x40   : > { %v2018_v8 = vld [vmem:[%s2245_s11 + $0x1e0] ss:$16 sps:$4 sm:$0xff]   ;;  %v2019_v9 = vld [vmem:[%s2245_s11 + $0x1e8] ss:$16 sps:$4 sm:$0xff]   ;;  %v2025_v10 = vld [vmem:[%s2245_s11 + $0x204] ss:$16 sps:$4 sm:$0xff]  }
  0x41   : > { %1163 = vmatpush1.bf16.msra.mxu0 %v1958_v31  ;;  %1269 = vmatpush1.bf16.msra.mxu1 %v1959_v32  ;;  %v2028_v11 = vld [vmem:[%s2245_s11 + $0x20c] ss:$16 sps:$4 sm:$0xff]   ;;  %v2020_v12 = vld [vmem:[%s2247_s12] ss:$16 sps:$4 sm:$0xff]   ;;  %v2026_v14 = vld [vmem:[%s2245_s11 + $0x208] ss:$16 sps:$4 sm:$0xff]  }
  0x42   : > { %1164 = vmatprep.subr.bf16.mxu0 %v1960_v33  ;;  %1270 = vmatprep.subr.bf16.mxu1 %v1962_v34  ;;  %v2023_v13 = vld [vmem:[%s2245_s11 + $0x200] ss:$16 sps:$4 sm:$0xff]   ;;  %v2031_v15 = vld [vmem:[%s2245_s11 + $0x224] ss:$16 sps:$4 sm:$0xff]   ;;  %v2034_v16 = vld [vmem:[%s2245_s11 + $0x22c] ss:$16 sps:$4 sm:$0xff]  }
  0x43   : > { %v2029_v17 = vld [vmem:[%s2245_s11 + $0x220] ss:$16 sps:$4 sm:$0xff]   ;;  %v2032_v18 = vld [vmem:[%s2245_s11 + $0x228] ss:$16 sps:$4 sm:$0xff]   ;;  %v2037_v19 = vld [vmem:[%s2245_s11 + $0x244] ss:$16 sps:$4 sm:$0xff]  }
  0x44   : > { %v2040_v20 = vld [vmem:[%s2245_s11 + $0x24c] ss:$16 sps:$4 sm:$0xff]   ;;  %v2035_v21 = vld [vmem:[%s2245_s11 + $0x240] ss:$16 sps:$4 sm:$0xff]   ;;  %v2038_v22 = vld [vmem:[%s2245_s11 + $0x248] ss:$16 sps:$4 sm:$0xff]  }
  0x45   : > { %1165 = vmatpush1.bf16.msra.mxu0 %v1964_v35  ;;  %1271 = vmatpush1.bf16.msra.mxu1 %v1965_v36  ;;  %v2043_v23 = vld [vmem:[%s2245_s11 + $0x264] ss:$16 sps:$4 sm:$0xff]   ;;  %v2046_v24 = vld [vmem:[%s2245_s11 + $0x26c] ss:$16 sps:$4 sm:$0xff]   ;;  %v2041_v25 = vld [vmem:[%s2245_s11 + $0x260] ss:$16 sps:$4 sm:$0xff]  }
  0x46   : > { %1166 = vmatprep.subr.bf16.mxu0 %v1966_v37  ;;  %1272 = vmatprep.subr.bf16.mxu1 %v1968_v38  ;;  %v2044_v26 = vld [vmem:[%s2245_s11 + $0x268] ss:$16 sps:$4 sm:$0xff]   ;;  %v2049_v27 = vld [vmem:[%s2245_s11 + $0x284] ss:$16 sps:$4 sm:$0xff]   ;;  %v2052_v28 = vld [vmem:[%s2245_s11 + $0x28c] ss:$16 sps:$4 sm:$0xff]  }
  0x47   : > { %v2047_v29 = vld [vmem:[%s2245_s11 + $0x280] ss:$16 sps:$4 sm:$0xff]   ;;  %v2050_v30 = vld [vmem:[%s2245_s11 + $0x288] ss:$16 sps:$4 sm:$0xff]   ;;  %v2055_v31 = vld [vmem:[%s2245_s11 + $0x2a4] ss:$16 sps:$4 sm:$0xff]  }
  0x48   : > { %v2058_v32 = vld [vmem:[%s2245_s11 + $0x2ac] ss:$16 sps:$4 sm:$0xff]   ;;  %v2053_v33 = vld [vmem:[%s2245_s11 + $0x2a0] ss:$16 sps:$4 sm:$0xff]   ;;  %v2107_v34 = vld [vmem:[%s2247_s12 + $0x24] ss:$16 sps:$4 sm:$0xff]  }
  0x49   : > { %1167 = vmatpush1.bf16.msra.mxu0 %v1970_v39  ;;  %1273 = vmatpush1.bf16.msra.mxu1 %v1971_v40  ;;  %v2056_v35 = vld [vmem:[%s2245_s11 + $0x2a8] ss:$16 sps:$4 sm:$0xff]   ;;  %v2109_v36 = vld [vmem:[%s2247_s12 + $0x20] ss:$16 sps:$4 sm:$0xff]   ;;  %v2061_v37 = vld [vmem:[%s2245_s11 + $0x2c4] ss:$16 sps:$4 sm:$0xff]  }
  0x4a   : > { %1168 = vmatprep.subr.bf16.mxu0 %v1972_v41  ;;  %1274 = vmatprep.subr.bf16.mxu1 %v1974_v42  ;;  %v2064_v38 = vld [vmem:[%s2245_s11 + $0x2cc] ss:$16 sps:$4 sm:$0xff]   ;;  %v2059_v39 = vld [vmem:[%s2245_s11 + $0x2c0] ss:$16 sps:$4 sm:$0xff]   ;;  %v2062_v40 = vld [vmem:[%s2245_s11 + $0x2c8] ss:$16 sps:$4 sm:$0xff]  }
  0x4b   : > { %v2067_v41 = vld [vmem:[%s2245_s11 + $0x2e4] ss:$16 sps:$4 sm:$0xff]   ;;  %v2070_v42 = vld [vmem:[%s2245_s11 + $0x2ec] ss:$16 sps:$4 sm:$0xff]   ;;  %v2086_v57 = vld [vmem:[%s2245_s11 + $0x348] ss:$16 sps:$4 sm:$0xff]  }
  0x4c   : > { %p1857_p11 = scmp.ne.s32.totalorder %s2158_s17, 7 }
  0x4d   : > { %1169 = vmatpush1.bf16.msra.mxu0 %v1976_v43  ;;  %1275 = vmatpush1.bf16.msra.mxu1 %v1977_v44  ;;  %v2124_v43 = vld [vmem:[%s2247_s12 + $0xc] ss:$16 sps:$4 sm:$0xff]   ;;  %v2065_v44 = vld [vmem:[%s2245_s11 + $0x2e0] ss:$16 sps:$4 sm:$0xff]  }
  0x4e   : > { %1170 = vmatprep.subr.bf16.mxu0 %v1978_v45  ;;  %1276 = vmatprep.subr.bf16.mxu1 %v1980_v46  ;;  %v2068_v45 = vld [vmem:[%s2245_s11 + $0x2e8] ss:$16 sps:$4 sm:$0xff]   ;;  %v2073_v46 = vld [vmem:[%s2245_s11 + $0x304] ss:$16 sps:$4 sm:$0xff]  }
  0x51   : > { %1171 = vmatpush1.bf16.msra.mxu0 %v1982_v47  ;;  %1277 = vmatpush1.bf16.msra.mxu1 %v1983_v48  ;;  %v2076_v47 = vld [vmem:[%s2245_s11 + $0x30c] ss:$16 sps:$4 sm:$0xff]   ;;  %v2071_v48 = vld [vmem:[%s2245_s11 + $0x300] ss:$16 sps:$4 sm:$0xff]  }
  0x52   : > { %1172 = vmatprep.subr.bf16.mxu0 %v1984_v49  ;;  %1278 = vmatprep.subr.bf16.mxu1 %v1986_v50  ;;  %v2074_v49 = vld [vmem:[%s2245_s11 + $0x308] ss:$16 sps:$4 sm:$0xff]   ;;  %v2079_v50 = vld [vmem:[%s2245_s11 + $0x324] ss:$16 sps:$4 sm:$0xff]  }
  0x55   : > { %1173 = vmatpush1.bf16.msra.mxu0 %v1988_v51  ;;  %1279 = vmatpush1.bf16.msra.mxu1 %v1989_v52  ;;  %v2082_v51 = vld [vmem:[%s2245_s11 + $0x32c] ss:$16 sps:$4 sm:$0xff]   ;;  %v2077_v52 = vld [vmem:[%s2245_s11 + $0x320] ss:$16 sps:$4 sm:$0xff]  }
  0x56   : > { %1174 = vmatprep.subr.bf16.mxu0 %v1990_v53  ;;  %1280 = vmatprep.subr.bf16.mxu1 %v1992_v54  ;;  %v2080_v53 = vld [vmem:[%s2245_s11 + $0x328] ss:$16 sps:$4 sm:$0xff]   ;;  %v2085_v54 = vld [vmem:[%s2245_s11 + $0x344] ss:$16 sps:$4 sm:$0xff]  }
  0x59   : > { %1175 = vmatpush1.bf16.msra.mxu0 %v1994_v55  ;;  %1281 = vmatpush1.bf16.msra.mxu1 %v1995_v56  ;;  %v2088_v55 = vld [vmem:[%s2245_s11 + $0x34c] ss:$16 sps:$4 sm:$0xff]   ;;  %v2083_v56 = vld [vmem:[%s2245_s11 + $0x340] ss:$16 sps:$4 sm:$0xff]  }
  0x5a   : > { %1176 = vmatprep.subr.bf16.mxu0 %v1996_v58  ;;  %1282 = vmatprep.subr.bf16.mxu1 %v1998_v59  ;;  %v2091_v58 = vld [vmem:[%s2245_s11 + $0x364] ss:$16 sps:$4 sm:$0xff]   ;;  %v2094_v59 = vld [vmem:[%s2245_s11 + $0x36c] ss:$16 sps:$4 sm:$0xff]  }
  0x5d   : > { %1177 = vmatpush1.bf16.msra.mxu0 %v2000_v60  ;;  %1283 = vmatpush1.bf16.msra.mxu1 %v2001_v61  ;;  %v2089_v60 = vld [vmem:[%s2245_s11 + $0x360] ss:$16 sps:$4 sm:$0xff]   ;;  %v2092_v61 = vld [vmem:[%s2245_s11 + $0x368] ss:$16 sps:$4 sm:$0xff]  }
  0x5e   : > { %1178 = vmatprep.subr.bf16.mxu0 %v2002_v62  ;;  %1284 = vmatprep.subr.bf16.mxu1 %v2004_v63  ;;  %v2097_v62 = vld [vmem:[%s2245_s11 + $0x384] ss:$16 sps:$4 sm:$0xff]   ;;  %v2100_v63 = vld [vmem:[%s2245_s11 + $0x38c] ss:$16 sps:$4 sm:$0xff]  }
  0x61   : > { %1179 = vmatpush1.bf16.msra.mxu0 %v2006_v0  ;;  %1285 = vmatpush1.bf16.msra.mxu1 %v2007_v1  ;;  %v2095_v0 = vld [vmem:[%s2245_s11 + $0x380] ss:$16 sps:$4 sm:$0xff]   ;;  %v2098_v1 = vld [vmem:[%s2245_s11 + $0x388] ss:$16 sps:$4 sm:$0xff]  }
  0x62   : > { %1180 = vmatprep.subr.bf16.mxu0 %v2008_v2  ;;  %1286 = vmatprep.subr.bf16.mxu1 %v2010_v3  ;;  %v2103_v2 = vld [vmem:[%s2245_s11 + $0x3a4] ss:$16 sps:$4 sm:$0xff]   ;;  %v2106_v3 = vld [vmem:[%s2245_s11 + $0x3ac] ss:$16 sps:$4 sm:$0xff]  }
  0x65   : > { %1181 = vmatpush1.bf16.msra.mxu0 %v2012_v4  ;;  %1287 = vmatpush1.bf16.msra.mxu1 %v2013_v5  ;;  %v2101_v4 = vld [vmem:[%s2245_s11 + $0x3a0] ss:$16 sps:$4 sm:$0xff]   ;;  %v2104_v5 = vld [vmem:[%s2245_s11 + $0x3a8] ss:$16 sps:$4 sm:$0xff]  }
  0x66   : > { %1182 = vmatprep.subr.bf16.mxu0 %v2014_v6  ;;  %1288 = vmatprep.subr.bf16.mxu1 %v2016_v7  ;;  %v2112_v6 = vld [vmem:[%s2245_s11 + $0x3c4] ss:$16 sps:$4 sm:$0xff]   ;;  %v2115_v7 = vld [vmem:[%s2245_s11 + $0x3cc] ss:$16 sps:$4 sm:$0xff]  }
  0x69   : > { %1183 = vmatpush1.bf16.msra.mxu0 %v2018_v8  ;;  %1289 = vmatpush1.bf16.msra.mxu1 %v2019_v9  ;;  %v2110_v8 = vld [vmem:[%s2245_s11 + $0x3c0] ss:$16 sps:$4 sm:$0xff]   ;;  %v2113_v9 = vld [vmem:[%s2245_s11 + $0x3c8] ss:$16 sps:$4 sm:$0xff]  }
  0x6a   : > { %1205 = vmatprep.subr.bf16.mxu0 %v2025_v10  ;;  %1311 = vmatprep.subr.bf16.mxu1 %v2028_v11  ;;  %v2118_v10 = vld [vmem:[%s2245_s11 + $0x3e4] ss:$16 sps:$4 sm:$0xff]   ;;  %v2121_v11 = vld [vmem:[%s2245_s11 + $0x3ec] ss:$16 sps:$4 sm:$0xff]  }
  0x6c   : > { %1185 = vmatmul.mubr.bf16.vlgmr.msra.gmra.mrb[0].mxu0 %v2020_v12  ;;  %1291 = vmatmul.mubr.bf16.vlgmr.msra.gmra.mrb[0].mxu1 %v2020_v12  ;;  %v2116_v12 = vld [vmem:[%s2245_s11 + $0x3e0] ss:$16 sps:$4 sm:$0xff]  }
  0x6d   : > { %1206 = vmatpush1.bf16.msra.mxu0 %v2023_v13  ;;  %1312 = vmatpush1.bf16.msra.mxu1 %v2026_v14  ;;  %v2119_v13 = vld [vmem:[%s2245_s11 + $0x3e8] ss:$16 sps:$4 sm:$0xff]  }
  0x6e   : > { %1207 = vmatprep.subr.bf16.mxu0 %v2031_v15  ;;  %1313 = vmatprep.subr.bf16.mxu1 %v2034_v16  ;;  %v2122_v14 = vld [vmem:[%s2247_s12 + $0x8] ss:$16 sps:$4 sm:$0xff]   ;;  %v2125_v15 = vld [vmem:[%s2247_s12 + $0x2c] ss:$16 sps:$4 sm:$0xff]  }
  0x6f   : > { %1194 = vmatprep.mubr.bf16.mxu0 %v2107_v34  ;;  %1300 = vmatprep.mubr.bf16.mxu1 %v2107_v34  ;;  %v2127_v16 = vld [vmem:[%s2247_s12 + $0x28] ss:$16 sps:$4 sm:$0xff]  }
  0x71   : > { %1208 = vmatpush1.bf16.msra.mxu0 %v2029_v17  ;;  %1314 = vmatpush1.bf16.msra.mxu1 %v2032_v18  ;;  %v320_v17 = vld [vmem:[%s2612_s2] sm:$0xff]  ;;  %v322_v18 = vld [vmem:[%s2612_s2 + $0x10] sm:$0xff] }
  0x72   : > { %1209 = vmatprep.subr.bf16.mxu0 %v2037_v19  ;;  %1315 = vmatprep.subr.bf16.mxu1 %v2040_v20  ;;  %v321_v19 = vld [vmem:[%s2612_s2 + $0x8] sm:$0xff]  ;;  %v323_v20 = vld [vmem:[%s2612_s2 + $0x18] sm:$0xff] }
  0x74   : > { %1195 = vmatmul.mubr.bf16.gmra.mrb[4].mxu0 %v2109_v36  ;;  %1301 = vmatmul.mubr.bf16.gmra.mrb[4].mxu1 %v2109_v36 }
  0x75   : > { %1210 = vmatpush1.bf16.msra.mxu0 %v2035_v21  ;;  %1316 = vmatpush1.bf16.msra.mxu1 %v2038_v22 }
  0x76   : > { %1211 = vmatprep.subr.bf16.mxu0 %v2043_v23  ;;  %1317 = vmatprep.subr.bf16.mxu1 %v2046_v24  ;;  %v324_v23 = vld [vmem:[%s2612_s2 + $0x20] sm:$0xff]  ;;  %v326_v24 = vld [vmem:[%s2612_s2 + $0x30] sm:$0xff] }
  0x77   : > { %1237 = vmatprep.mubr.bf16.mxu0 %v2124_v43  ;;  %1343 = vmatprep.mubr.bf16.mxu1 %v2124_v43  ;;  %v329_v43 = vld [vmem:[%s2612_s2 + $0x48] sm:$0xff] }
  0x79   : > { %1212 = vmatpush1.bf16.msra.mxu0 %v2041_v25  ;;  %1318 = vmatpush1.bf16.msra.mxu1 %v2044_v26 }
  0x7a   : > { %1213 = vmatprep.subr.bf16.mxu0 %v2049_v27  ;;  %1319 = vmatprep.subr.bf16.mxu1 %v2052_v28 }
  0x7d   : > { %1214 = vmatpush1.bf16.msra.mxu0 %v2047_v29  ;;  %1320 = vmatpush1.bf16.msra.mxu1 %v2050_v30  ;;  %v325_v29 = vld [vmem:[%s2612_s2 + $0x28] sm:$0xff]  ;;  %v327_v30 = vld [vmem:[%s2612_s2 + $0x38] sm:$0xff] }
  0x7e   : > { %1215 = vmatprep.subr.bf16.mxu0 %v2055_v31  ;;  %1321 = vmatprep.subr.bf16.mxu1 %v2058_v32 }
  0x81   : > { %1216 = vmatpush1.bf16.msra.mxu0 %v2053_v33  ;;  %1322 = vmatpush1.bf16.msra.mxu1 %v2056_v35 }
  0x82   : > { %1217 = vmatprep.subr.bf16.mxu0 %v2061_v37  ;;  %1323 = vmatprep.subr.bf16.mxu1 %v2064_v38 }
  0x85   : > { %1218 = vmatpush1.bf16.msra.mxu0 %v2059_v39  ;;  %1324 = vmatpush1.bf16.msra.mxu1 %v2062_v40 }
  0x86   : > { %1219 = vmatprep.subr.bf16.mxu0 %v2067_v41  ;;  %1325 = vmatprep.subr.bf16.mxu1 %v2070_v42  ;;  %v328_v41 = vld [vmem:[%s2612_s2 + $0x40] sm:$0xff]  ;;  %v330_v42 = vld [vmem:[%s2612_s2 + $0x50] sm:$0xff] }
  0x89   : > { %1220 = vmatpush1.bf16.msra.mxu0 %v2065_v44  ;;  %1326 = vmatpush1.bf16.msra.mxu1 %v2068_v45  ;;  %v331_v44 = vld [vmem:[%s2612_s2 + $0x58] sm:$0xff] }
  0x8a   : > { %1221 = vmatprep.subr.bf16.mxu0 %v2073_v46  ;;  %1327 = vmatprep.subr.bf16.mxu1 %v2076_v47  ;;  %v332_v47 = vld [vmem:[%s2612_s2 + $0x60] sm:$0xff] }
  0x8d   : > { %1222 = vmatpush1.bf16.msra.mxu0 %v2071_v48  ;;  %1328 = vmatpush1.bf16.msra.mxu1 %v2074_v49  ;;  %v334_v48 = vld [vmem:[%s2612_s2 + $0x70] sm:$0xff] }
  0x8e   : > { %1223 = vmatprep.subr.bf16.mxu0 %v2079_v50  ;;  %1329 = vmatprep.subr.bf16.mxu1 %v2082_v51 }
  0x91   : > { %1224 = vmatpush1.bf16.msra.mxu0 %v2077_v52  ;;  %1330 = vmatpush1.bf16.msra.mxu1 %v2080_v53  ;;  %v333_v53 = vld [vmem:[%s2612_s2 + $0x68] sm:$0xff] }
  0x92   : > { %1225 = vmatprep.subr.bf16.mxu0 %v2085_v54  ;;  %1331 = vmatprep.subr.bf16.mxu1 %v2088_v55  ;;  %v335_v54 = vld [vmem:[%s2612_s2 + $0x78] sm:$0xff] }
  0x95   : > { %1226 = vmatpush1.bf16.msra.mxu0 %v2083_v56  ;;  %1332 = vmatpush1.bf16.msra.mxu1 %v2086_v57 }
  0x96   : > { %1227 = vmatprep.subr.bf16.mxu0 %v2091_v58  ;;  %1333 = vmatprep.subr.bf16.mxu1 %v2094_v59 }
  0x99   : > { %1228 = vmatpush1.bf16.msra.mxu0 %v2089_v60  ;;  %1334 = vmatpush1.bf16.msra.mxu1 %v2092_v61 }
  0x9a   : > { %1229 = vmatprep.subr.bf16.mxu0 %v2097_v62  ;;  %1335 = vmatprep.subr.bf16.mxu1 %v2100_v63 }
  0x9d   : > { %1230 = vmatpush1.bf16.msra.mxu0 %v2095_v0  ;;  %1336 = vmatpush1.bf16.msra.mxu1 %v2098_v1 }
  0x9e   : > { %1231 = vmatprep.subr.bf16.mxu0 %v2103_v2  ;;  %1337 = vmatprep.subr.bf16.mxu1 %v2106_v3 }
  0xa1   : > { %1232 = vmatpush1.bf16.msra.mxu0 %v2101_v4  ;;  %1338 = vmatpush1.bf16.msra.mxu1 %v2104_v5  ;;  %v1461_v4 = vlaneseq (!%p1857_p11) }
  0xa2   : > { %1233 = vmatprep.subr.bf16.mxu0 %v2112_v6  ;;  %1339 = vmatprep.subr.bf16.mxu1 %v2115_v7 }
  0xa3   : > { %vm1483_vm0 = vcmp.lt.s32.totalorder (!%p1857_p11), %v1461_v4, 512 }
  0xa5   : > { %1234 = vmatpush1.bf16.msra.mxu0 %v2110_v8  ;;  %1340 = vmatpush1.bf16.msra.mxu1 %v2113_v9  ;;  %v2169_v8 = vmov (!%p1857_p11), 1966171168  }
  0xa6   : > { %1235 = vmatprep.subr.bf16.mxu0 %v2118_v10  ;;  %1341 = vmatprep.subr.bf16.mxu1 %v2121_v11  ;;  %v1459_v9 = vunpack.c.l.s4 (!%p1857_p11), %v2169_v8 }
  0xa9   : > { %1236 = vmatpush1.bf16.msra.mxu0 %v2116_v12  ;;  %1342 = vmatpush1.bf16.msra.mxu1 %v2119_v13 }
  0xac   : > { %1238 = vmatmul.mubr.bf16.vlgmr.msra.gmra.mrb[0].mxu0 %v2122_v14  ;;  %1344 = vmatmul.mubr.bf16.vlgmr.msra.gmra.mrb[0].mxu1 %v2122_v14 }
  0xad   : > { %1247 = vmatprep.mubr.bf16.mxu0 %v2125_v15  ;;  %1353 = vmatprep.mubr.bf16.mxu1 %v2125_v15 }
  0xb4   : > { %1248 = vmatmul.mubr.bf16.gmra.mrb[4].mxu0 %v2127_v16  ;;  %1354 = vmatmul.mubr.bf16.gmra.mrb[4].mxu1 %v2127_v16  ;;  %v1462_v16 = vshrl.u32 (!%p1857_p11), %v1461_v4, 7 }
 0x17f   : > { %v1239_v21 = vpop.f32.mrb[0].mxu0  ;;  %v1345_v22 = vpop.f32.mrb[0].mxu1 }
 0x180   : > { %v1364_v25 = vadd.f32 %v1239_v21, %v320_v17  ;;  %v1366_v26 = vadd.f32 %v1345_v22, %v322_v18  ;;  %v1241_v27 = vpop.f32.mrb[1].mxu0  ;;  %v1347_v28 = vpop.f32.mrb[1].mxu1  ;;  %v1460_v22 = vunpack.c.0.s8 (!%p1857_p11), %v1459_v9 }
 0x181   : > { %v1365_v31 = vadd.f32 %v1241_v27, %v321_v19  ;;  %v1367_v32 = vadd.f32 %v1347_v28, %v323_v20  ;;  %v1243_v33 = vpop.f32.mrb[2].mxu0  ;;  %v1349_v34 = vpop.f32.mrb[2].mxu1 }
 0x182   : > { %1380 = vst [vmem:[%s2612_s2] sm:$0xff] %v1364_v25  ;;  %1382 = vst [vmem:[%s2612_s2 + $0x10] sm:$0xff] %v1366_v26  ;;  %v1368_v35 = vadd.f32 %v1243_v33, %v324_v23  ;;  %v1370_v36 = vadd.f32 %v1349_v34, %v326_v24  ;;  %v1245_v37 = vpop.f32.mrb[3].mxu0  ;;  %v1351_v38 = vpop.f32.mrb[3].mxu1  ;;  %v2574_v34 = vsub.s32 (!%p1857_p11), %v1460_v22, %v1462_v16 }
 0x183   : > { %1381 = vst [vmem:[%s2612_s2 + $0x8] sm:$0xff] %v1365_v31  ;;  %1383 = vst [vmem:[%s2612_s2 + $0x18] sm:$0xff] %v1367_v32  ;;  %v1369_v39 = vadd.f32 %v1245_v37, %v325_v29  ;;  %v1371_v40 = vadd.f32 %v1351_v38, %v327_v30 }
 0x184   : > { %1384 = vst [vmem:[%s2612_s2 + $0x20] sm:$0xff] %v1368_v35  ;;  %1386 = vst [vmem:[%s2612_s2 + $0x30] sm:$0xff] %v1370_v36 }
 0x185   : > { %1385 = vst [vmem:[%s2612_s2 + $0x28] sm:$0xff] %v1369_v39  ;;  %1387 = vst [vmem:[%s2612_s2 + $0x38] sm:$0xff] %v1371_v40 }
 0x187   : > { %v1249_v45 = vpop.f32.mrb[4].mxu0  ;;  %v1355_v46 = vpop.f32.mrb[4].mxu1  ;;  %1399 = sbr.rel (%p1857_p11) target bundleno = 432 (0x1b0), region = 59 }
 0x188   : > { %v1372_v49 = vadd.f32 %v1249_v45, %v328_v41  ;;  %v1374_v50 = vadd.f32 %v1355_v46, %v330_v42  ;;  %v1251_v51 = vpop.f32.mrb[5].mxu0  ;;  %v1357_v52 = vpop.f32.mrb[5].mxu1 }
 0x189   : > { %v1373_v55 = vadd.f32 %v1251_v51, %v329_v43  ;;  %v1375_v56 = vadd.f32 %v1357_v52, %v331_v44  ;;  %v1253_v57 = vpop.f32.mrb[6].mxu0  ;;  %v1359_v58 = vpop.f32.mrb[6].mxu1  ;;  %v1400_v1 = vld [vmem:[%s2612_s2] sm:$0xff] (!%p1857_p11)  ;;  %v1402_v3 = vld [vmem:[%s2612_s2 + $0x10] sm:$0xff] (!%p1857_p11) }
 0x18a   : > { %1388 = vst [vmem:[%s2612_s2 + $0x40] sm:$0xff] %v1372_v49  ;;  %1390 = vst [vmem:[%s2612_s2 + $0x50] sm:$0xff] %v1374_v50  ;;  %v1376_v59 = vadd.f32 %v1253_v57, %v332_v47  ;;  %v1378_v60 = vadd.f32 %v1359_v58, %v334_v48  ;;  %v1255_v61 = vpop.f32.mrb[7].mxu0  ;;  %v1361_v62 = vpop.f32.mrb[7].mxu1  ;;  %v1401_v2 = vld [vmem:[%s2612_s2 + $0x8] sm:$0xff] (!%p1857_p11)  ;;  %v1403_v5 = vld [vmem:[%s2612_s2 + $0x18] sm:$0xff] (!%p1857_p11)  ;;  %v1486_v10 = vmul.f32 (!%p1857_p11), %v1400_v1, %v1400_v1 }
 0x18b   : > { %1389 = vst [vmem:[%s2612_s2 + $0x48] sm:$0xff] %v1373_v55  ;;  %1391 = vst [vmem:[%s2612_s2 + $0x58] sm:$0xff] %v1375_v56  ;;  %v1377_v63 = vadd.f32 %v1255_v61, %v333_v53  ;;  %v1379_v0 = vadd.f32 %v1361_v62, %v335_v54  ;;  %v1404_v6 = vld [vmem:[%s2612_s2 + $0x20] sm:$0xff] (!%p1857_p11)  ;;  %v1487_v11 = vmul.f32 (!%p1857_p11), %v1401_v2, %v1401_v2  ;;  %v1406_v12 = vld [vmem:[%s2612_s2 + $0x30] sm:$0xff] (!%p1857_p11) }
 0x18c   : > { %1392 = vst [vmem:[%s2612_s2 + $0x60] sm:$0xff] %v1376_v59  ;;  %1394 = vst [vmem:[%s2612_s2 + $0x70] sm:$0xff] %v1378_v60  ;;  %v1405_v7 = vld [vmem:[%s2612_s2 + $0x28] sm:$0xff] (!%p1857_p11)  ;;  %v1407_v13 = vld [vmem:[%s2612_s2 + $0x38] sm:$0xff] (!%p1857_p11)  ;;  %v1416_v14 = vadd.f32 (!%p1857_p11), %v1404_v6, %v1400_v1  ;;  %v1488_v17 = vmul.f32 (!%p1857_p11), %v1402_v3, %v1402_v3  ;;  %v1434_v20 = vadd.f32 (!%p1857_p11), %v1406_v12, %v1402_v3 }
 0x18d   : > { %1393 = vst [vmem:[%s2612_s2 + $0x68] sm:$0xff] %v1377_v63  ;;  %1395 = vst [vmem:[%s2612_s2 + $0x78] sm:$0xff] %v1379_v0  ;;  %v1425_v15 = vadd.f32 (!%p1857_p11), %v1405_v7, %v1401_v2  ;;  %v1443_v21 = vadd.f32 (!%p1857_p11), %v1407_v13, %v1403_v5  ;;  %v1489_v23 = vmul.f32 (!%p1857_p11), %v1403_v5, %v1403_v5 }
 0x18e   : > { %v1490_v28 = vmul.f32 %v1404_v6, %v1404_v6  ;;  %v1491_v29 = vmul.f32 %v1405_v7, %v1405_v7  ;;  %v1492_v35 = vmul.f32 %v1406_v12, %v1406_v12  ;;  %v1493_v40 = vmul.f32 %v1407_v13, %v1407_v13 }
 0x190   : > { %v1502_v57 = vadd.f32 %v1490_v28, %v1486_v10  ;;  %v1511_v60 = vadd.f32 %v1491_v29, %v1487_v11  ;;  %v1520_v61 = vadd.f32 %v1492_v35, %v1488_v17  ;;  %v1529_v1 = vadd.f32 %v1493_v40, %v1489_v23 }
 0x191   : > { %v1408_v18 = vld [vmem:[%s2612_s2 + $0x40] sm:$0xff]  ;;  %v1410_v24 = vld [vmem:[%s2612_s2 + $0x50] sm:$0xff] }
 0x192   : > { %v1409_v19 = vld [vmem:[%s2612_s2 + $0x48] sm:$0xff]  ;;  %v1411_v25 = vld [vmem:[%s2612_s2 + $0x58] sm:$0xff]  ;;  %v1417_v26 = vadd.f32 %v1416_v14, %v1408_v18  ;;  %v1435_v32 = vadd.f32 %v1434_v20, %v1410_v24  ;;  %v1494_v41 = vmul.f32 %v1408_v18, %v1408_v18  ;;  %v1496_v45 = vmul.f32 %v1410_v24, %v1410_v24 }
 0x193   : > { %v1426_v27 = vadd.f32 %v1425_v15, %v1409_v19  ;;  %v1412_v30 = vld [vmem:[%s2612_s2 + $0x60] sm:$0xff]  ;;  %v1444_v33 = vadd.f32 %v1443_v21, %v1411_v25  ;;  %v1414_v36 = vld [vmem:[%s2612_s2 + $0x70] sm:$0xff]  ;;  %v1495_v44 = vmul.f32 %v1409_v19, %v1409_v19  ;;  %v1497_v48 = vmul.f32 %v1411_v25, %v1411_v25 }
 0x194   : > { %v1413_v31 = vld [vmem:[%s2612_s2 + $0x68] sm:$0xff]  ;;  %v1415_v37 = vld [vmem:[%s2612_s2 + $0x78] sm:$0xff]  ;;  %v1418_v38 = vadd.f32 %v1417_v26, %v1412_v30  ;;  %v1436_v42 = vadd.f32 %v1435_v32, %v1414_v36  ;;  %v1498_v49 = vmul.f32 %v1412_v30, %v1412_v30  ;;  %v1500_v53 = vmul.f32 %v1414_v36, %v1414_v36 }
 0x195   : > { %v1427_v39 = vadd.f32 %v1426_v27, %v1413_v31  ;;  %v1445_v43 = vadd.f32 %v1444_v33, %v1415_v37  ;;  %v1499_v52 = vmul.f32 %v1413_v31, %v1413_v31  ;;  %v1501_v56 = vmul.f32 %v1415_v37, %v1415_v37 }
 0x196   : > { %v1419_v46 = vrot.slane %v1418_v38, 4  ;;  %v1437_v50 = vrot.slane %v1436_v42, 4  ;;  %v1503_v0 = vadd.f32 %v1502_v57, %v1494_v41  ;;  %v1512_v5 = vadd.f32 %v1511_v60, %v1495_v44 }
 0x197   : > { %v1428_v47 = vrot.slane %v1427_v39, 4  ;;  %v1446_v51 = vrot.slane %v1445_v43, 4  ;;  %v1521_v6 = vadd.f32 %v1520_v61, %v1496_v45  ;;  %v1530_v12 = vadd.f32 %v1529_v1, %v1497_v48 }
 0x198   : > { %v1420_v54 = vadd.f32 %v1419_v46, %v1418_v38  ;;  %v1438_v58 = vadd.f32 %v1437_v50, %v1436_v42  ;;  %v1504_v9 = vadd.f32 %v1503_v0, %v1498_v49  ;;  %v1513_v15 = vadd.f32 %v1512_v5, %v1499_v52 }
 0x199   : > { %v1429_v55 = vadd.f32 %v1428_v47, %v1427_v39  ;;  %v1447_v59 = vadd.f32 %v1446_v51, %v1445_v43  ;;  %v1522_v10 = vadd.f32 %v1521_v6, %v1500_v53  ;;  %v1531_v17 = vadd.f32 %v1530_v12, %v1501_v56 }
 0x19a   : > { %v1421_v62 = vrot.slane %v1420_v54, 2  ;;  %v1439_v2 = vrot.slane %v1438_v58, 2  ;;  %v1505_v11 = vrot.slane %v1504_v9, 4  ;;  %v1514_v21 = vrot.slane %v1513_v15, 4 }
 0x19b   : > { %v1430_v63 = vrot.slane %v1429_v55, 2  ;;  %v1448_v3 = vrot.slane %v1447_v59, 2  ;;  %v1523_v22 = vrot.slane %v1522_v10, 4  ;;  %v1532_v26 = vrot.slane %v1531_v17, 4 }
 0x19c   : > { %v1422_v7 = vadd.f32 %v1421_v62, %v1420_v54  ;;  %v1440_v13 = vadd.f32 %v1439_v2, %v1438_v58  ;;  %v1506_v25 = vadd.f32 %v1505_v11, %v1504_v9  ;;  %v1515_v29 = vadd.f32 %v1514_v21, %v1513_v15 }
 0x19d   : > { %v1431_v8 = vadd.f32 %v1430_v63, %v1429_v55  ;;  %v1449_v14 = vadd.f32 %v1448_v3, %v1447_v59  ;;  %v1524_v30 = vadd.f32 %v1523_v22, %v1522_v10  ;;  %v1533_v33 = vadd.f32 %v1532_v26, %v1531_v17 }
 0x19e   : > { %v1423_v16 = vrot.slane %v1422_v7, 1  ;;  %v1441_v19 = vrot.slane %v1440_v13, 1  ;;  %v1507_v32 = vrot.slane %v1506_v25, 2  ;;  %v1516_v36 = vrot.slane %v1515_v29, 2 }
 0x19f   : > { %v1432_v18 = vrot.slane %v1431_v8, 1  ;;  %v1450_v20 = vrot.slane %v1449_v14, 1  ;;  %v1525_v37 = vrot.slane %v1524_v30, 2  ;;  %v1534_v40 = vrot.slane %v1533_v33, 2 }
 0x1a0   : > { %v1424_v23 = vadd.f32 %v1423_v16, %v1422_v7  ;;  %v1442_v27 = vadd.f32 %v1441_v19, %v1440_v13  ;;  %v1508_v39 = vadd.f32 %v1507_v32, %v1506_v25  ;;  %v1517_v42 = vadd.f32 %v1516_v36, %v1515_v29 }
 0x1a1   : > { %v1433_v24 = vadd.f32 %v1432_v18, %v1431_v8  ;;  %v1451_v28 = vadd.f32 %v1450_v20, %v1449_v14  ;;  %v1526_v43 = vadd.f32 %v1525_v37, %v1524_v30  ;;  %v1535_v45 = vadd.f32 %v1534_v40, %v1533_v33 }
 0x1a2   : > { %v1509_v44 = vrot.slane %v1508_v39, 1  ;;  %v1518_v47 = vrot.slane %v1517_v42, 1 }
 0x1a3   : > { %v1456_v31 = vcombine.low %v1424_v23, %v1433_v24  ;;  %v1457_v35 = vcombine.low %v1442_v27, %v1451_v28  ;;  %v1527_v48 = vrot.slane %v1526_v43, 1  ;;  %v1536_v50 = vrot.slane %v1535_v45, 1 }
 0x1a4   : > { %v1510_v49 = vadd.f32 %v1509_v44, %v1508_v39  ;;  %v1519_v52 = vadd.f32 %v1518_v47, %v1517_v42 }
 0x1a5   : > { %v1464_v38 = vrot.slane %v1456_v31, %v2574_v34  ;;  %v1471_v41 = vrot.slane %v1457_v35, %v2574_v34  ;;  %v1528_v53 = vadd.f32 %v1527_v48, %v1526_v43  ;;  %v1537_v54 = vadd.f32 %v1536_v50, %v1535_v45 }
 0x1a6   : > { %v1542_v55 = vcombine.low %v1510_v49, %v1519_v52 }
 0x1a7   : > { %v1472_v46 = vcombine.low %v1464_v38, %v1471_v41  ;;  %v1543_v56 = vcombine.low %v1528_v53, %v1537_v54 }
 0x1a8   : > { %v1550_v57 = vrot.slane %v1542_v55, %v2574_v34 }
 0x1a9   : > { %v1479_v51 = vrot.slane %v1472_v46, %v2574_v34  ;;  %v1557_v58 = vrot.slane %v1543_v56, %v2574_v34 }
 0x1ab   : > { %1485 = vst.msk [vmem:[%s2613_s3] sm:$0xf] %vm1483_vm0, %v1479_v51  ;;  %v1558_v59 = vcombine.low %v1550_v57, %v1557_v58 }
 0x1ad   : > { %v1565_v4 = vrot.slane %v1558_v59, %v2574_v34 }
 0x1af   : > { %1567 = vst.msk [vmem:[%s2614_s4] sm:$0xf] %vm1483_vm0, %v1565_v4 }
 0x1b0 PF: > { %s15_s19 = sadd.s32 1, %s2166_s19   ;;  %s2615_s15 = smov %s2154_s16 }
 0x1b1   : > { %p12_p12 = scmp.ge.s32.totalorder %s15_s19, 10   ;;  %s2616_s16 = smov %s2230_s23 }
 0x1b2   : > { %s2617_s17 = smov %s2162_s18  ;;  %s2618_s18 = smov %s2620_s20 }
 0x1b3   :  { %14 = sbr.rel (!%p12_p12) target bundleno = 3 (0x3), region = 121 }

// kernel: image_encoder_forward.15
= control target key start
LH: loop header
LB: loop body
LE: loop exit
PB: predicated region body
PF: predicated region fallthrough
CT: control target
= control target key end

     0   :  { %8 = vsyncpa [#allocation3], 0  ;;  %s907_s12 = smov 0   ;;  %s909_s13 = smov 0   ;;  %s1020_s0 = inlined_call_operand.vmem [shape: bf16[2,8192], index: 0, kind: input, shape index: {}]   ;;  %s1021_s1 = inlined_call_operand.vmem [shape: bf16[8192,32], index: 1, kind: input, shape index: {}]   ;;  %s1022_s2 = inlined_call_operand.vmem [shape: f32[1,32], index: 2, kind: input, shape index: {}]   ;;  %s1023_s3 = inlined_call_operand.hbm [shape: f32[2,32], index: 3, kind: output, shape index: {}]  }
   0x1   :  { %s911_s14 = smov 0  }
   0x2 LB: > { %s674_s15 = sadd.s32 4294967295, %s882_s14   ;;  %s23_s16 = sadd.s32 1, %s878_s13  ;;  %s882_s14 = sphi %s911_s14, %s14_s14   ;;  %s878_s13 = sphi %s909_s13, %s1026_s13   ;;  %s874_s12 = sphi %s907_s12, %s1025_s12  }
   0x3   : > { %p24_p0 = scmp.ge.s32.totalorder %s23_s16, 16  ;;  %p677_p1 = scmp.ge.s32.totalorder %s882_s14, 1 }
   0x4   : > { %p167_p2 = scmp.lt.s32.totalorder %s882_s14, 17 }
   0x5   : > { %s1028_s16 = smov (%p24_p0, %s23_s16), 0 }
   0x6   : > { %p168_p3 = pnand %p677_p1, %p167_p2 }
   0x7   : > { %s678_s17 = sshll.u32 (!%p168_p3), %s874_s12, 2  ;;  %s679_s18 = sshll.u32 (!%p168_p3), %s874_s12, 6 }
   0x8   : > { %171 = sbr.rel (%p168_p3) target bundleno = 314 (0x13a), region = 32  ;;  %p197_p4 = scmp.lt.s32.totalorder (!%p168_p3), %s678_s17, 63 }
   0x9   : > { %p204_p5 = scmp.lt.s32.totalorder (!%p168_p3), %s679_s18, 1023  ;;  %p681_p6 = scmp.ne.s32.totalorder (!%p168_p3), %s874_s12, 0 }
   0xf   : > { %s1030_s17 = smov (!%p197_p4, %s678_s17), 63  ;;  %s1032_s18 = smov (!%p204_p5, %s679_s18), 1023 }
  0x10   : > { %s201_s21 = scalar_lea.vmem %s1020_s0, %s1030_s17  ;;  %s680_s22 = sshll.u32 %s1032_s18, 2  ;;  %vm214_vm0 = vcmask (!%p681_p6), 254976   ;;  %v884_v0 = vmov (!%p681_p6), 0.0  }
  0x11   : > { %s939_s25 = scalar_lea.vmem %s1021_s1, %s680_s22  ;;  %213 = sbr.rel (%p681_p6) target bundleno = 24 (0x18), region = 36  ;;  %215 = vst.msk [vmem:[#allocation2] sm:$0x3] (!%p681_p6), %vm214_vm0, %v884_v0 }
  0x18 PF: > { %v798_v1 = vld [vmem:[%s939_s25 + $0x40] sm:$0xff]   ;;  %v802_v5 = vld [vmem:[%s939_s25 + $0x48] sm:$0xff]   ;;  %v806_v9 = vld [vmem:[%s939_s25 + $0x50] sm:$0xff]   ;;  %v294_v31 = vlaneseq  ;;  %v885_v35 = vmov 1966171168   ;;  %vm584_vm1 = vcmask 254976  }
  0x19   : > { %v799_v2 = vld [vmem:[%s939_s25 + $0xc0] sm:$0xff]   ;;  %721 = vmatprep.subr.bf16.mxu0 %v798_v1  ;;  %v803_v6 = vld [vmem:[%s939_s25 + $0xc8] sm:$0xff]   ;;  %v807_v10 = vld [vmem:[%s939_s25 + $0xd0] sm:$0xff]   ;;  %v292_v36 = vunpack.c.l.s4 %v885_v35  ;;  %p715_p7 = scmp.ne.s32.totalorder %s874_s12, 15 }
  0x1a   : > { %v800_v3 = vld [vmem:[%s939_s25] sm:$0xff]   ;;  %743 = vmatprep.subr.bf16.mxu1 %v799_v2  ;;  %v804_v7 = vld [vmem:[%s939_s25 + $0x8] sm:$0xff]   ;;  %v808_v11 = vld [vmem:[%s939_s25 + $0x10] sm:$0xff]   ;;  %v295_v37 = vshrl.u32 %v294_v31, 7 }
  0x1b   : > { %v801_v4 = vld [vmem:[%s939_s25 + $0x80] sm:$0xff]   ;;  %722 = vmatpush3.bf16.msra.mxu0 %v800_v3  ;;  %v805_v8 = vld [vmem:[%s939_s25 + $0x88] sm:$0xff]   ;;  %v809_v12 = vld [vmem:[%s939_s25 + $0x90] sm:$0xff]   ;;  %v293_v39 = vunpack.c.0.s8 %v292_v36 }
  0x1c   : > { %744 = vmatpush3.bf16.msra.mxu1 %v801_v4  ;;  %723 = vmatprep.subr.bf16.mxu0 %v802_v5  ;;  %v810_v13 = vld [vmem:[%s939_s25 + $0x58] sm:$0xff]   ;;  %v814_v17 = vld [vmem:[%s939_s25 + $0x60] sm:$0xff]   ;;  %v818_v21 = vld [vmem:[%s939_s25 + $0x68] sm:$0xff]  }
  0x1d   : > { %745 = vmatprep.subr.bf16.mxu1 %v803_v6  ;;  %v811_v14 = vld [vmem:[%s939_s25 + $0xd8] sm:$0xff]   ;;  %v815_v18 = vld [vmem:[%s939_s25 + $0xe0] sm:$0xff]   ;;  %v819_v22 = vld [vmem:[%s939_s25 + $0xe8] sm:$0xff]   ;;  %v296_v40 = vsub.s32 %v293_v39, %v295_v37 }
  0x1e   : > { %v812_v15 = vld [vmem:[%s939_s25 + $0x18] sm:$0xff]   ;;  %v816_v19 = vld [vmem:[%s939_s25 + $0x20] sm:$0xff]   ;;  %v820_v23 = vld [vmem:[%s939_s25 + $0x28] sm:$0xff]  }
  0x1f   : > { %724 = vmatpush3.bf16.msra.mxu0 %v804_v7  ;;  %v813_v16 = vld [vmem:[%s939_s25 + $0x98] sm:$0xff]   ;;  %v817_v20 = vld [vmem:[%s939_s25 + $0xa0] sm:$0xff]   ;;  %v821_v24 = vld [vmem:[%s939_s25 + $0xa8] sm:$0xff]  }
  0x20   : > { %746 = vmatpush3.bf16.msra.mxu1 %v805_v8  ;;  %725 = vmatprep.subr.bf16.mxu0 %v806_v9  ;;  %v822_v25 = vld [vmem:[%s939_s25 + $0x70] sm:$0xff]   ;;  %v826_v29 = vld [vmem:[%s939_s25 + $0x78] sm:$0xff]   ;;  %v682_v34 = vld.sshfl [vmem:[%s201_s21] sm:$0x33 pattern:$0x75316420] }
  0x21   : > { %747 = vmatprep.subr.bf16.mxu1 %v807_v10  ;;  %v823_v26 = vld [vmem:[%s939_s25 + $0xf0] sm:$0xff]   ;;  %v827_v30 = vld [vmem:[%s939_s25 + $0xf8] sm:$0xff]   ;;  %v290_v38 = vcombine.high %v682_v34, %v682_v34  ;;  %v297_v42 = vrot.slane %v682_v34, %v296_v40  ;;  %v216_v54 = vld [vmem:[#allocation2] sm:$0x3] }
  0x22   : > { %v824_v27 = vld [vmem:[%s939_s25 + $0x30] sm:$0xff]   ;;  %v828_v32 = vld [vmem:[%s939_s25 + $0x38] sm:$0xff]   ;;  %v716_v59 = vld [vmem:[%s1022_s2] ss:$0 sm:$0xff] (!%p715_p7) }
  0x23   : > { %726 = vmatpush3.bf16.msra.mxu0 %v808_v11  ;;  %v825_v28 = vld [vmem:[%s939_s25 + $0xb0] sm:$0xff]   ;;  %v829_v33 = vld [vmem:[%s939_s25 + $0xb8] sm:$0xff]   ;;  %v304_v41 = vrot.slane %v290_v38, %v296_v40  ;;  %v305_v44 = vcombine.high %v297_v42, %v297_v42 }
  0x24   : > { %748 = vmatpush3.bf16.msra.mxu1 %v809_v12  ;;  %727 = vmatprep.subr.bf16.mxu0 %v810_v13 }
  0x25   : > { %749 = vmatprep.subr.bf16.mxu1 %v811_v14  ;;  %535 = vmatprep.mubr.bf16.mxu0 %v304_v41  ;;  %v306_v43 = vcombine.high %v304_v41, %v304_v41 }
  0x27   : > { %728 = vmatpush3.bf16.msra.mxu0 %v812_v15  ;;  %575 = vmatprep.mubr.bf16.mxu1 %v306_v43 }
  0x28   : > { %750 = vmatpush3.bf16.msra.mxu1 %v813_v16  ;;  %729 = vmatprep.subr.bf16.mxu0 %v814_v17 }
  0x29   : > { %751 = vmatprep.subr.bf16.mxu1 %v815_v18 }
  0x2b   : > { %730 = vmatpush3.bf16.msra.mxu0 %v816_v19 }
  0x2c   : > { %752 = vmatpush3.bf16.msra.mxu1 %v817_v20  ;;  %731 = vmatprep.subr.bf16.mxu0 %v818_v21 }
  0x2d   : > { %753 = vmatprep.subr.bf16.mxu1 %v819_v22 }
  0x2f   : > { %732 = vmatpush3.bf16.msra.mxu0 %v820_v23 }
  0x30   : > { %754 = vmatpush3.bf16.msra.mxu1 %v821_v24  ;;  %733 = vmatprep.subr.bf16.mxu0 %v822_v25 }
  0x31   : > { %755 = vmatprep.subr.bf16.mxu1 %v823_v26 }
  0x33   : > { %734 = vmatpush3.bf16.msra.mxu0 %v824_v27 }
  0x34   : > { %756 = vmatpush3.bf16.msra.mxu1 %v825_v28  ;;  %735 = vmatprep.subr.bf16.mxu0 %v826_v29 }
  0x35   : > { %757 = vmatprep.subr.bf16.mxu1 %v827_v30 }
  0x37   : > { %736 = vmatpush3.bf16.msra.mxu0 %v828_v32 }
  0x38   : > { %758 = vmatpush3.bf16.msra.mxu1 %v829_v33 }
  0x3a   : > { %536 = vmatmul.mubr.bf16.vlgmr.msra.gmra.mrb[0].mxu0 %v297_v42 }
  0x3b   : > { %576 = vmatmul.mubr.bf16.vlgmr.msra.gmra.mrb[0].mxu1 %v305_v44 }
 0x10d   : > { %v737_v45 = vpop.f32.mrb[0].mxu0 }
 0x10e   : > { %v738_v46 = vpop.f32.mrb[1].mxu0  ;;  %v759_v47 = vpop.f32.mrb[0].mxu1 }
 0x10f   : > { %v739_v48 = vadd.f32 %v738_v46, %v737_v45  ;;  %v740_v49 = vpop.f32.mrb[2].mxu0  ;;  %v760_v50 = vpop.f32.mrb[1].mxu1 }
 0x110   : > { %v741_v51 = vpop.f32.mrb[3].mxu0  ;;  %v761_v52 = vadd.f32 %v760_v50, %v759_v47  ;;  %v762_v53 = vpop.f32.mrb[2].mxu1  ;;  %589 = sbr.rel (%p715_p7) target bundleno = 289 (0x121), region = 40 }
 0x111   : > { %v763_v55 = vpop.f32.mrb[3].mxu1 }
 0x112   : > { %v578_v56 = vadd.f32 %v761_v52, %v739_v48 }
 0x114   : > { %v583_v57 = vadd.f32 %v578_v56, %v216_v54 }
 0x116   : > { %585 = vst.msk [vmem:[#allocation2] sm:$0x3] %vm584_vm1, %v583_v57 }
 0x11d   : > { %v590_v58 = vld [vmem:[#allocation2] sm:$0x3] }
 0x11e   : > { %v598_v60 = vadd.f32 %v716_v59, %v590_v58 }
 0x120   : > { %599 = vst.msk [vmem:[#allocation2] sm:$0x3] %vm584_vm1, %v598_v60 }
 0x121 PF: > { %p985_p8 = scmp.eq.s32.totalorder %s674_s15, 15  ;;  %s886_s4 = smov [#allocation2]  }
 0x122   : > { %s609_s5 = sshll.u32 %s886_s4, 4  ;;  %s610_s5 = int_to_ptr.vmem [resolvable:$true] %s609_s5 }
 0x123   : > { %s830_s6 = scalar_lea.vmem %s610_s5, 32  ;;  %p837_p12 = scmp.lt.s32.totalorder %s610_s5, %s610_s5 }
 0x124   : > { %p831_p9 = scmp.ne.s32.totalorder %s610_s5, %s830_s6  ;;  %p838_p13 = scmp.lt.s32.totalorder %s830_s6, %s830_s6 }
 0x126   : > { %p832_p10 = pnand %p831_p9, %p985_p8  ;;  %p839_p0 = por %p838_p13, %p837_p12 }
 0x128   : > { %p833_p11 = pneg %p832_p10 }
 0x12a   : > { %p840_p1 = pnand %p839_p0, %p833_p11 }
 0x12c   : > { %843 = shalt.err (!%p840_p1)
}
 0x12d   : > { %s844_s9 = scalar_lea.hbm %s1023_s3, 32 }
 0x12e   : > { %p845_p2 = scmp.ne.s32.totalorder %s1023_s3, %s844_s9  ;;  %p850_p5 = scmp.lt.u32.totalorder %s844_s9, %s1023_s3 }
 0x130   : > { %p846_p3 = pnand %p845_p2, %p985_p8 }
 0x132   : > { %p847_p4 = pneg %p846_p3 }
 0x134   : > { %p852_p6 = pnand %p850_p5, %p847_p4 }
 0x136   : > { %855 = shalt.err (!%p852_p6)
}
 0x137   : > { %766 = dma.vmem_to_hbm [thread:$0]  (%p985_p8), %s610_s5, 32, %s1023_s3, [#allocation3]  }
 0x138   : > { %869 = dma.done.wait (%p985_p8), [#allocation3], 32  }
 0x139   : > { %871 = vsyncadd (%p985_p8), [#allocation3], 4294967264 }
 0x13a PF: > { %s14_s14 = sadd.s32 1, %s882_s14   ;;  %s1025_s12 = smov %s878_s13 }
 0x13b   : > { %p11_p7 = scmp.ge.s32.totalorder %s14_s14, 18   ;;  %s1026_s13 = smov %s1028_s16 }
 0x13d   :  { %13 = sbr.rel (!%p11_p7) target bundleno = 2 (0x2), region = 71 }
 0x144   :  { %622 = vsyncpa [#allocation3], 1 }
 0x145   :  { %624 = vsyncpa [#allocation3 + $0x1], 1 }

</bundles_post_ra>
